<compile_context>
chip_gen: v5e
topology: v5e:2x2
jax: 0.10.0
libtpu: 0.0.40
codegen_flags: <defaults>
</compile_context>

<pallas_src>
import jax
import jax.numpy as jnp
from jax.experimental import pallas as pl
from jax.experimental.pallas import tpu as pltpu

VOCAB = 16
EMBED = 8
HIDDEN = 32
HEADS = 4
HEAD_DIM = HIDDEN // HEADS
FFN = 512
LAYERS = 4
LN_EPS = 1e-5
OUT_PAD = 128           # lane-dense output slab width (multiple of 128)


# ----------------------------- fused kernel ---------------------------------

def _layernorm(y, g, b):
    mu = jnp.mean(y, axis=-1, keepdims=True)
    var = jnp.mean(jnp.square(y - mu), axis=-1, keepdims=True)
    return (y - mu) * jax.lax.rsqrt(var + LN_EPS) * g + b


def _fused_forward_kernel(onehot_ref, table_ref, mask_ref,
                          in_w_ref, in_b_ref, out_w_ref, out_b_ref,
                          ln1_g_ref, ln1_b_ref,
                          w1_ref, b1_ref, w2_ref, b2_ref,
                          ln2_g_ref, ln2_b_ref,
                          tag_w_ref, tag_b_ref, o_ref):
    scale = 1.0 / (HEAD_DIM ** 0.5)
    mask2d = mask_ref[...]                                   # (BS, BS) additive

    # embedding + mapper, folded into one table (bias already folded in)
    h = jnp.dot(onehot_ref[...], table_ref[...],
                preferred_element_type=jnp.float32)          # (BS, HIDDEN)

    for l in range(LAYERS):                                  # unrolled, weights resident
        # ---------------- self-attention (all batches at once) -------------
        qkv = jnp.dot(h, in_w_ref[l],
                      preferred_element_type=jnp.float32) + in_b_ref[l]  # (BS, 3H)
        out_w = out_w_ref[l]                                 # (H, H)
        attn = jnp.zeros_like(h)
        for hh in range(HEADS):
            lo = hh * HEAD_DIM
            q = qkv[:, lo:lo + HEAD_DIM]                                 # (BS, dh)
            k = qkv[:, HIDDEN + lo:HIDDEN + lo + HEAD_DIM]
            v = qkv[:, 2 * HIDDEN + lo:2 * HIDDEN + lo + HEAD_DIM]
            # q @ k^T via dot_general contracting head_dim (no explicit .T)
            s = jax.lax.dot_general(
                q, k, (((1,), (1,)), ((), ())),
                preferred_element_type=jnp.float32) * scale              # (BS, BS)
            s = s + mask2d                  # block-diag batches + key padding
            s = s - jnp.max(s, axis=-1, keepdims=True)
            p = jnp.exp(s)
            p = p * pl.reciprocal(jnp.sum(p, axis=-1, keepdims=True), approx=True)
            ctx = jnp.dot(p, v, preferred_element_type=jnp.float32)      # (BS, dh)
            # out_proj folded per head: concat(heads) @ W == sum_h ctx_h @ W[rows_h]
            attn = attn + jnp.dot(ctx, out_w[lo:lo + HEAD_DIM, :],
                                  preferred_element_type=jnp.float32)
        attn = attn + out_b_ref[l]
        # post-norm residual 1 (fused with out_proj above)
        h = _layernorm(h + attn, ln1_g_ref[l], ln1_b_ref[l])

        # ---------------- feed-forward (512-wide hidden stays on-chip) ------
        ff = jnp.maximum(
            jnp.dot(h, w1_ref[l], preferred_element_type=jnp.float32) + b1_ref[l],
            0.0)
        ff = jnp.dot(ff, w2_ref[l], preferred_element_type=jnp.float32) + b2_ref[l]
        h = _layernorm(h + ff, ln2_g_ref[l], ln2_b_ref[l])

    # ---------------- hidden2tag into a lane-dense (BS, 128) slab ----------
    o_ref[...] = (jnp.dot(h, tag_w_ref[...], preferred_element_type=jnp.float32)
                  + tag_b_ref[...])


# ----------------------------- params ---------------------------------------

def init_params(key):
    def dense(k, fan_in, fan_out):
        kw, kb = jax.random.split(k)
        w = 0.05 * jax.random.normal(kw, (fan_in, fan_out), jnp.float32)
        b = 0.05 * jax.random.normal(kb, (fan_out,), jnp.float32)
        return w, b

    keys = jax.random.split(key, 3 + LAYERS)
    emb = 0.05 * jax.random.normal(keys[0], (VOCAB, EMBED), jnp.float32)
    mapper_w, mapper_b = dense(keys[1], EMBED, HIDDEN)
    tag_w, tag_b = dense(keys[2], HIDDEN, VOCAB)

    in_w, in_b, out_w, out_b = [], [], [], []
    w1, b1, w2, b2 = [], [], [], []
    for i in range(LAYERS):
        lk = jax.random.split(keys[3 + i], 4)
        w, b = dense(lk[0], HIDDEN, 3 * HIDDEN); in_w.append(w); in_b.append(b)
        w, b = dense(lk[1], HIDDEN, HIDDEN);     out_w.append(w); out_b.append(b)
        w, b = dense(lk[2], HIDDEN, FFN);        w1.append(w);    b1.append(b)
        w, b = dense(lk[3], FFN, HIDDEN);        w2.append(w);    b2.append(b)

    stack = lambda xs: jnp.stack(xs, axis=0)
    return dict(
        emb=emb, mapper_w=mapper_w, mapper_b=mapper_b,
        tag_w=tag_w, tag_b=tag_b,
        in_w=stack(in_w), in_b=stack(in_b)[:, None, :],        # (L,1,3H)
        out_w=stack(out_w), out_b=stack(out_b)[:, None, :],    # (L,1,H)
        w1=stack(w1), b1=stack(b1)[:, None, :],                # (L,1,FFN)
        w2=stack(w2), b2=stack(b2)[:, None, :],                # (L,1,H)
        ln1_g=jnp.ones((LAYERS, 1, HIDDEN), jnp.float32),
        ln1_b=jnp.zeros((LAYERS, 1, HIDDEN), jnp.float32),
        ln2_g=jnp.ones((LAYERS, 1, HIDDEN), jnp.float32),
        ln2_b=jnp.zeros((LAYERS, 1, HIDDEN), jnp.float32),
    )


# ----------------------------- forward wrapper ------------------------------

@jax.jit
def forward(params, tokens, key_padding_mask):
    B, S = tokens.shape
    BS = B * S

    # Fold nn.Embedding + mapper Linear (+ bias) into one (VOCAB, HIDDEN) table.
    table = jnp.dot(params["emb"], params["mapper_w"]) + params["mapper_b"][None, :]
    onehot = jax.nn.one_hot(tokens.reshape(BS), VOCAB, dtype=jnp.float32)

    # Combined additive attention mask (BS, BS): block-diagonal over batches,
    # plus key_padding_mask; finite -1e9 sentinel avoids 0/0 NaN corner cases.
    batch_ids = jnp.arange(BS, dtype=jnp.int32) // S
    same_batch = batch_ids[:, None] == batch_ids[None, :]
    key_ok = jnp.logical_not(key_padding_mask.reshape(BS))[None, :]
    mask2d = jnp.where(same_batch & key_ok, 0.0, -1e9).astype(jnp.float32)

    # Lane-dense output slab: zero-pad the tag projection to 128 output lanes.
    tag_w = jnp.zeros((HIDDEN, OUT_PAD), jnp.float32).at[:, :VOCAB].set(params["tag_w"])
    tag_b = jnp.zeros((1, OUT_PAD), jnp.float32).at[:, :VOCAB].set(params["tag_b"])

    out = pl.pallas_call(
        _fused_forward_kernel,
        out_shape=jax.ShapeDtypeStruct((BS, OUT_PAD), jnp.float32),
        compiler_params=pltpu.CompilerParams(vmem_limit_bytes=32 * 1024 * 1024),
    )(onehot, table, mask2d,
      params["in_w"], params["in_b"], params["out_w"], params["out_b"],
      params["ln1_g"], params["ln1_b"],
      params["w1"], params["b1"], params["w2"], params["b2"],
      params["ln2_g"], params["ln2_b"],
      tag_w, tag_b)

    return out[:, :VOCAB].reshape(B, S, VOCAB)


if __name__ == "__main__":
    key = jax.random.PRNGKey(0)
    pkey, tkey = jax.random.split(key)
    params = init_params(pkey)

    B, S = 2, 8
    tokens = jax.random.randint(tkey, (B, S), 0, VOCAB, dtype=jnp.int32)
    # key_padding_mask: True = position is padding (ignored as attention key)
    key_padding_mask = jnp.zeros((B, S), dtype=bool).at[1, 6:].set(True)

    out = forward(params, tokens, key_padding_mask)
    out = jax.block_until_ready(out)
    assert out.shape == (B, S, VOCAB) and out.dtype == jnp.float32
    assert bool(jnp.all(jnp.isfinite(out)))
    print("KERNEL_OK")
</pallas_src>

<mosaic_0001>
module attributes {stable_mosaic.version = 11 : i64} {
  func.func @_fused_forward_kernel(%arg0: memref<16x16xf32, #tpu.memory_space<vmem>>, %arg1: memref<16x32xf32, #tpu.memory_space<vmem>>, %arg2: memref<16x16xf32, #tpu.memory_space<vmem>>, %arg3: memref<4x32x96xf32, #tpu.memory_space<vmem>>, %arg4: memref<4x1x96xf32, #tpu.memory_space<vmem>>, %arg5: memref<4x32x32xf32, #tpu.memory_space<vmem>>, %arg6: memref<4x1x32xf32, #tpu.memory_space<vmem>>, %arg7: memref<4x1x32xf32, #tpu.memory_space<vmem>>, %arg8: memref<4x1x32xf32, #tpu.memory_space<vmem>>, %arg9: memref<4x32x512xf32, #tpu.memory_space<vmem>>, %arg10: memref<4x1x512xf32, #tpu.memory_space<vmem>>, %arg11: memref<4x512x32xf32, #tpu.memory_space<vmem>>, %arg12: memref<4x1x32xf32, #tpu.memory_space<vmem>>, %arg13: memref<4x1x32xf32, #tpu.memory_space<vmem>>, %arg14: memref<4x1x32xf32, #tpu.memory_space<vmem>>, %arg15: memref<32x128xf32, #tpu.memory_space<vmem>>, %arg16: memref<1x128xf32, #tpu.memory_space<vmem>>, %arg17: memref<16x128xf32, #tpu.memory_space<vmem>>) attributes {dimension_semantics = [], scalar_prefetch = 0 : i64, scratch_operands = 0 : i64, tpu.core_type = #tpu.core_type<tc>} {
    %c0 = arith.constant 0 : index
    %c0_0 = arith.constant 0 : index
    %0 = vector.load %arg2[%c0, %c0_0] : memref<16x16xf32, #tpu.memory_space<vmem>>, vector<16x16xf32>
    %c0_1 = arith.constant 0 : index
    %c0_2 = arith.constant 0 : index
    %1 = vector.load %arg0[%c0_1, %c0_2] : memref<16x16xf32, #tpu.memory_space<vmem>>, vector<16x16xf32>
    %c0_3 = arith.constant 0 : index
    %c0_4 = arith.constant 0 : index
    %2 = vector.load %arg1[%c0_3, %c0_4] : memref<16x32xf32, #tpu.memory_space<vmem>>, vector<16x32xf32>
    %cst = arith.constant dense<0.000000e+00> : vector<16x32xf32>
    %3 = tpu.matmul %1, %2, %cst {dimension_numbers = #tpu.dot_dimension_numbers<[1], [0], [0], [1], [0, 0, 1, 1], [], []>} : vector<16x16xf32>, vector<16x32xf32>, vector<16x32xf32> -> vector<16x32xf32>
    %c0_5 = arith.constant 0 : index
    %c0_6 = arith.constant 0 : index
    %c0_7 = arith.constant 0 : index
    %4 = vector.load %arg3[%c0_5, %c0_6, %c0_7] : memref<4x32x96xf32, #tpu.memory_space<vmem>>, vector<1x32x96xf32>
    %5 = vector.shape_cast %4 : vector<1x32x96xf32> to vector<32x96xf32>
    %cst_8 = arith.constant dense<0.000000e+00> : vector<16x96xf32>
    %6 = tpu.matmul %3, %5, %cst_8 {dimension_numbers = #tpu.dot_dimension_numbers<[1], [0], [0], [1], [0, 0, 1, 1], [], []>} : vector<16x32xf32>, vector<32x96xf32>, vector<16x96xf32> -> vector<16x96xf32>
    %c0_9 = arith.constant 0 : index
    %c0_10 = arith.constant 0 : index
    %c0_11 = arith.constant 0 : index
    %7 = vector.load %arg4[%c0_9, %c0_10, %c0_11] : memref<4x1x96xf32, #tpu.memory_space<vmem>>, vector<1x1x96xf32>
    %8 = vector.shape_cast %7 : vector<1x1x96xf32> to vector<1x96xf32>
    %9 = vector.broadcast %8 : vector<1x96xf32> to vector<16x96xf32>
    %10 = arith.addf %6, %9 : vector<16x96xf32>
    %c0_12 = arith.constant 0 : index
    %c0_13 = arith.constant 0 : index
    %c0_14 = arith.constant 0 : index
    %11 = vector.load %arg5[%c0_12, %c0_13, %c0_14] : memref<4x32x32xf32, #tpu.memory_space<vmem>>, vector<1x32x32xf32>
    %12 = vector.shape_cast %11 : vector<1x32x32xf32> to vector<32x32xf32>
    %cst_15 = arith.constant 0.000000e+00 : f32
    %13 = vector.broadcast %cst_15 : f32 to vector<16x32xf32>
    %14 = vector.extract_strided_slice %10 {offsets = [0, 0], sizes = [16, 8], strides = [1, 1]} : vector<16x96xf32> to vector<16x8xf32>
    %15 = vector.extract_strided_slice %10 {offsets = [0, 32], sizes = [16, 8], strides = [1, 1]} : vector<16x96xf32> to vector<16x8xf32>
    %16 = vector.extract_strided_slice %10 {offsets = [0, 64], sizes = [16, 8], strides = [1, 1]} : vector<16x96xf32> to vector<16x8xf32>
    %cst_16 = arith.constant dense<0.000000e+00> : vector<16x16xf32>
    %17 = tpu.matmul %14, %15, %cst_16 {dimension_numbers = #tpu.dot_dimension_numbers<[1], [1], [0], [0], [0, 0, 1, 0], [], []>} : vector<16x8xf32>, vector<16x8xf32>, vector<16x16xf32> -> vector<16x16xf32>
    %cst_17 = arith.constant 0.353553385 : f32
    %18 = vector.broadcast %cst_17 : f32 to vector<16x16xf32>
    %19 = arith.mulf %17, %18 : vector<16x16xf32>
    %20 = arith.addf %19, %0 : vector<16x16xf32>
    %cst_18 = arith.constant dense<0xFF800000> : vector<16xf32>
    %21 = vector.multi_reduction <maximumf>, %20, %cst_18 [1] : vector<16x16xf32> to vector<16xf32>
    %22 = vector.shape_cast %21 : vector<16xf32> to vector<16x1xf32>
    %23 = vector.broadcast %22 : vector<16x1xf32> to vector<16x16xf32>
    %24 = arith.subf %20, %23 : vector<16x16xf32>
    %25 = math.exp %24 : vector<16x16xf32>
    %cst_19 = arith.constant dense<0.000000e+00> : vector<16xf32>
    %26 = vector.multi_reduction <add>, %25, %cst_19 [1] : vector<16x16xf32> to vector<16xf32>
    %27 = vector.shape_cast %26 : vector<16xf32> to vector<16x1xf32>
    %28 = tpu.reciprocal %27 {approx = true} : vector<16x1xf32> -> vector<16x1xf32>
    %29 = vector.broadcast %28 : vector<16x1xf32> to vector<16x16xf32>
    %30 = arith.mulf %25, %29 : vector<16x16xf32>
    %cst_20 = arith.constant dense<0.000000e+00> : vector<16x8xf32>
    %31 = tpu.matmul %30, %16, %cst_20 {dimension_numbers = #tpu.dot_dimension_numbers<[1], [0], [0], [1], [0, 0, 1, 1], [], []>} : vector<16x16xf32>, vector<16x8xf32>, vector<16x8xf32> -> vector<16x8xf32>
    %32 = vector.extract_strided_slice %12 {offsets = [0, 0], sizes = [8, 32], strides = [1, 1]} : vector<32x32xf32> to vector<8x32xf32>
    %cst_21 = arith.constant dense<0.000000e+00> : vector<16x32xf32>
    %33 = tpu.matmul %31, %32, %cst_21 {dimension_numbers = #tpu.dot_dimension_numbers<[1], [0], [0], [1], [0, 0, 1, 1], [], []>} : vector<16x8xf32>, vector<8x32xf32>, vector<16x32xf32> -> vector<16x32xf32>
    %34 = arith.addf %13, %33 : vector<16x32xf32>
    %35 = vector.extract_strided_slice %10 {offsets = [0, 8], sizes = [16, 8], strides = [1, 1]} : vector<16x96xf32> to vector<16x8xf32>
    %36 = vector.extract_strided_slice %10 {offsets = [0, 40], sizes = [16, 8], strides = [1, 1]} : vector<16x96xf32> to vector<16x8xf32>
    %37 = vector.extract_strided_slice %10 {offsets = [0, 72], sizes = [16, 8], strides = [1, 1]} : vector<16x96xf32> to vector<16x8xf32>
    %cst_22 = arith.constant dense<0.000000e+00> : vector<16x16xf32>
    %38 = tpu.matmul %35, %36, %cst_22 {dimension_numbers = #tpu.dot_dimension_numbers<[1], [1], [0], [0], [0, 0, 1, 0], [], []>} : vector<16x8xf32>, vector<16x8xf32>, vector<16x16xf32> -> vector<16x16xf32>
    %cst_23 = arith.constant 0.353553385 : f32
    %39 = vector.broadcast %cst_23 : f32 to vector<16x16xf32>
    %40 = arith.mulf %38, %39 : vector<16x16xf32>
    %41 = arith.addf %40, %0 : vector<16x16xf32>
    %cst_24 = arith.constant dense<0xFF800000> : vector<16xf32>
    %42 = vector.multi_reduction <maximumf>, %41, %cst_24 [1] : vector<16x16xf32> to vector<16xf32>
    %43 = vector.shape_cast %42 : vector<16xf32> to vector<16x1xf32>
    %44 = vector.broadcast %43 : vector<16x1xf32> to vector<16x16xf32>
    %45 = arith.subf %41, %44 : vector<16x16xf32>
    %46 = math.exp %45 : vector<16x16xf32>
    %cst_25 = arith.constant dense<0.000000e+00> : vector<16xf32>
    %47 = vector.multi_reduction <add>, %46, %cst_25 [1] : vector<16x16xf32> to vector<16xf32>
    %48 = vector.shape_cast %47 : vector<16xf32> to vector<16x1xf32>
    %49 = tpu.reciprocal %48 {approx = true} : vector<16x1xf32> -> vector<16x1xf32>
    %50 = vector.broadcast %49 : vector<16x1xf32> to vector<16x16xf32>
    %51 = arith.mulf %46, %50 : vector<16x16xf32>
    %cst_26 = arith.constant dense<0.000000e+00> : vector<16x8xf32>
    %52 = tpu.matmul %51, %37, %cst_26 {dimension_numbers = #tpu.dot_dimension_numbers<[1], [0], [0], [1], [0, 0, 1, 1], [], []>} : vector<16x16xf32>, vector<16x8xf32>, vector<16x8xf32> -> vector<16x8xf32>
    %53 = vector.extract_strided_slice %12 {offsets = [8, 0], sizes = [8, 32], strides = [1, 1]} : vector<32x32xf32> to vector<8x32xf32>
    %cst_27 = arith.constant dense<0.000000e+00> : vector<16x32xf32>
    %54 = tpu.matmul %52, %53, %cst_27 {dimension_numbers = #tpu.dot_dimension_numbers<[1], [0], [0], [1], [0, 0, 1, 1], [], []>} : vector<16x8xf32>, vector<8x32xf32>, vector<16x32xf32> -> vector<16x32xf32>
    %55 = arith.addf %34, %54 : vector<16x32xf32>
    %56 = vector.extract_strided_slice %10 {offsets = [0, 16], sizes = [16, 8], strides = [1, 1]} : vector<16x96xf32> to vector<16x8xf32>
    %57 = vector.extract_strided_slice %10 {offsets = [0, 48], sizes = [16, 8], strides = [1, 1]} : vector<16x96xf32> to vector<16x8xf32>
    %58 = vector.extract_strided_slice %10 {offsets = [0, 80], sizes = [16, 8], strides = [1, 1]} : vector<16x96xf32> to vector<16x8xf32>
    %cst_28 = arith.constant dense<0.000000e+00> : vector<16x16xf32>
    %59 = tpu.matmul %56, %57, %cst_28 {dimension_numbers = #tpu.dot_dimension_numbers<[1], [1], [0], [0], [0, 0, 1, 0], [], []>} : vector<16x8xf32>, vector<16x8xf32>, vector<16x16xf32> -> vector<16x16xf32>
    %cst_29 = arith.constant 0.353553385 : f32
    %60 = vector.broadcast %cst_29 : f32 to vector<16x16xf32>
    %61 = arith.mulf %59, %60 : vector<16x16xf32>
    %62 = arith.addf %61, %0 : vector<16x16xf32>
    %cst_30 = arith.constant dense<0xFF800000> : vector<16xf32>
    %63 = vector.multi_reduction <maximumf>, %62, %cst_30 [1] : vector<16x16xf32> to vector<16xf32>
    %64 = vector.shape_cast %63 : vector<16xf32> to vector<16x1xf32>
    %65 = vector.broadcast %64 : vector<16x1xf32> to vector<16x16xf32>
    %66 = arith.subf %62, %65 : vector<16x16xf32>
    %67 = math.exp %66 : vector<16x16xf32>
    %cst_31 = arith.constant dense<0.000000e+00> : vector<16xf32>
    %68 = vector.multi_reduction <add>, %67, %cst_31 [1] : vector<16x16xf32> to vector<16xf32>
    %69 = vector.shape_cast %68 : vector<16xf32> to vector<16x1xf32>
    %70 = tpu.reciprocal %69 {approx = true} : vector<16x1xf32> -> vector<16x1xf32>
    %71 = vector.broadcast %70 : vector<16x1xf32> to vector<16x16xf32>
    %72 = arith.mulf %67, %71 : vector<16x16xf32>
    %cst_32 = arith.constant dense<0.000000e+00> : vector<16x8xf32>
    %73 = tpu.matmul %72, %58, %cst_32 {dimension_numbers = #tpu.dot_dimension_numbers<[1], [0], [0], [1], [0, 0, 1, 1], [], []>} : vector<16x16xf32>, vector<16x8xf32>, vector<16x8xf32> -> vector<16x8xf32>
    %74 = vector.extract_strided_slice %12 {offsets = [16, 0], sizes = [8, 32], strides = [1, 1]} : vector<32x32xf32> to vector<8x32xf32>
    %cst_33 = arith.constant dense<0.000000e+00> : vector<16x32xf32>
    %75 = tpu.matmul %73, %74, %cst_33 {dimension_numbers = #tpu.dot_dimension_numbers<[1], [0], [0], [1], [0, 0, 1, 1], [], []>} : vector<16x8xf32>, vector<8x32xf32>, vector<16x32xf32> -> vector<16x32xf32>
    %76 = arith.addf %55, %75 : vector<16x32xf32>
    %77 = vector.extract_strided_slice %10 {offsets = [0, 24], sizes = [16, 8], strides = [1, 1]} : vector<16x96xf32> to vector<16x8xf32>
    %78 = vector.extract_strided_slice %10 {offsets = [0, 56], sizes = [16, 8], strides = [1, 1]} : vector<16x96xf32> to vector<16x8xf32>
    %79 = vector.extract_strided_slice %10 {offsets = [0, 88], sizes = [16, 8], strides = [1, 1]} : vector<16x96xf32> to vector<16x8xf32>
    %cst_34 = arith.constant dense<0.000000e+00> : vector<16x16xf32>
    %80 = tpu.matmul %77, %78, %cst_34 {dimension_numbers = #tpu.dot_dimension_numbers<[1], [1], [0], [0], [0, 0, 1, 0], [], []>} : vector<16x8xf32>, vector<16x8xf32>, vector<16x16xf32> -> vector<16x16xf32>
    %cst_35 = arith.constant 0.353553385 : f32
    %81 = vector.broadcast %cst_35 : f32 to vector<16x16xf32>
    %82 = arith.mulf %80, %81 : vector<16x16xf32>
    %83 = arith.addf %82, %0 : vector<16x16xf32>
    %cst_36 = arith.constant dense<0xFF800000> : vector<16xf32>
    %84 = vector.multi_reduction <maximumf>, %83, %cst_36 [1] : vector<16x16xf32> to vector<16xf32>
    %85 = vector.shape_cast %84 : vector<16xf32> to vector<16x1xf32>
    %86 = vector.broadcast %85 : vector<16x1xf32> to vector<16x16xf32>
    %87 = arith.subf %83, %86 : vector<16x16xf32>
    %88 = math.exp %87 : vector<16x16xf32>
    %cst_37 = arith.constant dense<0.000000e+00> : vector<16xf32>
    %89 = vector.multi_reduction <add>, %88, %cst_37 [1] : vector<16x16xf32> to vector<16xf32>
    %90 = vector.shape_cast %89 : vector<16xf32> to vector<16x1xf32>
    %91 = tpu.reciprocal %90 {approx = true} : vector<16x1xf32> -> vector<16x1xf32>
    %92 = vector.broadcast %91 : vector<16x1xf32> to vector<16x16xf32>
    %93 = arith.mulf %88, %92 : vector<16x16xf32>
    %cst_38 = arith.constant dense<0.000000e+00> : vector<16x8xf32>
    %94 = tpu.matmul %93, %79, %cst_38 {dimension_numbers = #tpu.dot_dimension_numbers<[1], [0], [0], [1], [0, 0, 1, 1], [], []>} : vector<16x16xf32>, vector<16x8xf32>, vector<16x8xf32> -> vector<16x8xf32>
    %95 = vector.extract_strided_slice %12 {offsets = [24, 0], sizes = [8, 32], strides = [1, 1]} : vector<32x32xf32> to vector<8x32xf32>
    %cst_39 = arith.constant dense<0.000000e+00> : vector<16x32xf32>
    %96 = tpu.matmul %94, %95, %cst_39 {dimension_numbers = #tpu.dot_dimension_numbers<[1], [0], [0], [1], [0, 0, 1, 1], [], []>} : vector<16x8xf32>, vector<8x32xf32>, vector<16x32xf32> -> vector<16x32xf32>
    %97 = arith.addf %76, %96 : vector<16x32xf32>
    %c0_40 = arith.constant 0 : index
    %c0_41 = arith.constant 0 : index
    %c0_42 = arith.constant 0 : index
    %98 = vector.load %arg6[%c0_40, %c0_41, %c0_42] : memref<4x1x32xf32, #tpu.memory_space<vmem>>, vector<1x1x32xf32>
    %99 = vector.shape_cast %98 : vector<1x1x32xf32> to vector<1x32xf32>
    %100 = vector.broadcast %99 : vector<1x32xf32> to vector<16x32xf32>
    %101 = arith.addf %97, %100 : vector<16x32xf32>
    %102 = arith.addf %3, %101 : vector<16x32xf32>
    %c0_43 = arith.constant 0 : index
    %c0_44 = arith.constant 0 : index
    %c0_45 = arith.constant 0 : index
    %103 = vector.load %arg7[%c0_43, %c0_44, %c0_45] : memref<4x1x32xf32, #tpu.memory_space<vmem>>, vector<1x1x32xf32>
    %104 = vector.shape_cast %103 : vector<1x1x32xf32> to vector<1x32xf32>
    %c0_46 = arith.constant 0 : index
    %c0_47 = arith.constant 0 : index
    %c0_48 = arith.constant 0 : index
    %105 = vector.load %arg8[%c0_46, %c0_47, %c0_48] : memref<4x1x32xf32, #tpu.memory_space<vmem>>, vector<1x1x32xf32>
    %106 = vector.shape_cast %105 : vector<1x1x32xf32> to vector<1x32xf32>
    %cst_49 = arith.constant dense<0.000000e+00> : vector<16xf32>
    %107 = vector.multi_reduction <add>, %102, %cst_49 [1] : vector<16x32xf32> to vector<16xf32>
    %108 = vector.shape_cast %107 : vector<16xf32> to vector<16x1xf32>
    %cst_50 = arith.constant 3.200000e+01 : f32
    %109 = vector.broadcast %cst_50 : f32 to vector<16x1xf32>
    %110 = arith.divf %108, %109 : vector<16x1xf32>
    %111 = vector.broadcast %110 : vector<16x1xf32> to vector<16x32xf32>
    %112 = arith.subf %102, %111 : vector<16x32xf32>
    %113 = arith.mulf %112, %112 : vector<16x32xf32>
    %cst_51 = arith.constant dense<0.000000e+00> : vector<16xf32>
    %114 = vector.multi_reduction <add>, %113, %cst_51 [1] : vector<16x32xf32> to vector<16xf32>
    %115 = vector.shape_cast %114 : vector<16xf32> to vector<16x1xf32>
    %cst_52 = arith.constant 3.200000e+01 : f32
    %116 = vector.broadcast %cst_52 : f32 to vector<16x1xf32>
    %117 = arith.divf %115, %116 : vector<16x1xf32>
    %118 = vector.broadcast %110 : vector<16x1xf32> to vector<16x32xf32>
    %119 = arith.subf %102, %118 : vector<16x32xf32>
    %cst_53 = arith.constant 9.99999974E-6 : f32
    %120 = vector.broadcast %cst_53 : f32 to vector<16x1xf32>
    %121 = arith.addf %117, %120 : vector<16x1xf32>
    %122 = math.rsqrt %121 : vector<16x1xf32>
    %123 = vector.broadcast %122 : vector<16x1xf32> to vector<16x32xf32>
    %124 = arith.mulf %119, %123 : vector<16x32xf32>
    %125 = vector.broadcast %104 : vector<1x32xf32> to vector<16x32xf32>
    %126 = arith.mulf %124, %125 : vector<16x32xf32>
    %127 = vector.broadcast %106 : vector<1x32xf32> to vector<16x32xf32>
    %128 = arith.addf %126, %127 : vector<16x32xf32>
    %c0_54 = arith.constant 0 : index
    %c0_55 = arith.constant 0 : index
    %c0_56 = arith.constant 0 : index
    %129 = vector.load %arg9[%c0_54, %c0_55, %c0_56] : memref<4x32x512xf32, #tpu.memory_space<vmem>>, vector<1x32x512xf32>
    %130 = vector.shape_cast %129 : vector<1x32x512xf32> to vector<32x512xf32>
    %cst_57 = arith.constant dense<0.000000e+00> : vector<16x512xf32>
    %131 = tpu.matmul %128, %130, %cst_57 {dimension_numbers = #tpu.dot_dimension_numbers<[1], [0], [0], [1], [0, 0, 1, 1], [], []>} : vector<16x32xf32>, vector<32x512xf32>, vector<16x512xf32> -> vector<16x512xf32>
    %c0_58 = arith.constant 0 : index
    %c0_59 = arith.constant 0 : index
    %c0_60 = arith.constant 0 : index
    %132 = vector.load %arg10[%c0_58, %c0_59, %c0_60] : memref<4x1x512xf32, #tpu.memory_space<vmem>>, vector<1x1x512xf32>
    %133 = vector.shape_cast %132 : vector<1x1x512xf32> to vector<1x512xf32>
    %134 = vector.broadcast %133 : vector<1x512xf32> to vector<16x512xf32>
    %135 = arith.addf %131, %134 : vector<16x512xf32>
    %cst_61 = arith.constant 0.000000e+00 : f32
    %136 = vector.broadcast %cst_61 : f32 to vector<16x512xf32>
    %137 = arith.maximumf %135, %136 : vector<16x512xf32>
    %c0_62 = arith.constant 0 : index
    %c0_63 = arith.constant 0 : index
    %c0_64 = arith.constant 0 : index
    %138 = vector.load %arg11[%c0_62, %c0_63, %c0_64] : memref<4x512x32xf32, #tpu.memory_space<vmem>>, vector<1x512x32xf32>
    %139 = vector.shape_cast %138 : vector<1x512x32xf32> to vector<512x32xf32>
    %cst_65 = arith.constant dense<0.000000e+00> : vector<16x32xf32>
    %140 = tpu.matmul %137, %139, %cst_65 {dimension_numbers = #tpu.dot_dimension_numbers<[1], [0], [0], [1], [0, 0, 1, 1], [], []>} : vector<16x512xf32>, vector<512x32xf32>, vector<16x32xf32> -> vector<16x32xf32>
    %c0_66 = arith.constant 0 : index
    %c0_67 = arith.constant 0 : index
    %c0_68 = arith.constant 0 : index
    %141 = vector.load %arg12[%c0_66, %c0_67, %c0_68] : memref<4x1x32xf32, #tpu.memory_space<vmem>>, vector<1x1x32xf32>
    %142 = vector.shape_cast %141 : vector<1x1x32xf32> to vector<1x32xf32>
    %143 = vector.broadcast %142 : vector<1x32xf32> to vector<16x32xf32>
    %144 = arith.addf %140, %143 : vector<16x32xf32>
    %145 = arith.addf %128, %144 : vector<16x32xf32>
    %c0_69 = arith.constant 0 : index
    %c0_70 = arith.constant 0 : index
    %c0_71 = arith.constant 0 : index
    %146 = vector.load %arg13[%c0_69, %c0_70, %c0_71] : memref<4x1x32xf32, #tpu.memory_space<vmem>>, vector<1x1x32xf32>
    %147 = vector.shape_cast %146 : vector<1x1x32xf32> to vector<1x32xf32>
    %c0_72 = arith.constant 0 : index
    %c0_73 = arith.constant 0 : index
    %c0_74 = arith.constant 0 : index
    %148 = vector.load %arg14[%c0_72, %c0_73, %c0_74] : memref<4x1x32xf32, #tpu.memory_space<vmem>>, vector<1x1x32xf32>
    %149 = vector.shape_cast %148 : vector<1x1x32xf32> to vector<1x32xf32>
    %cst_75 = arith.constant dense<0.000000e+00> : vector<16xf32>
    %150 = vector.multi_reduction <add>, %145, %cst_75 [1] : vector<16x32xf32> to vector<16xf32>
    %151 = vector.shape_cast %150 : vector<16xf32> to vector<16x1xf32>
    %cst_76 = arith.constant 3.200000e+01 : f32
    %152 = vector.broadcast %cst_76 : f32 to vector<16x1xf32>
    %153 = arith.divf %151, %152 : vector<16x1xf32>
    %154 = vector.broadcast %153 : vector<16x1xf32> to vector<16x32xf32>
    %155 = arith.subf %145, %154 : vector<16x32xf32>
    %156 = arith.mulf %155, %155 : vector<16x32xf32>
    %cst_77 = arith.constant dense<0.000000e+00> : vector<16xf32>
    %157 = vector.multi_reduction <add>, %156, %cst_77 [1] : vector<16x32xf32> to vector<16xf32>
    %158 = vector.shape_cast %157 : vector<16xf32> to vector<16x1xf32>
    %cst_78 = arith.constant 3.200000e+01 : f32
    %159 = vector.broadcast %cst_78 : f32 to vector<16x1xf32>
    %160 = arith.divf %158, %159 : vector<16x1xf32>
    %161 = vector.broadcast %153 : vector<16x1xf32> to vector<16x32xf32>
    %162 = arith.subf %145, %161 : vector<16x32xf32>
    %cst_79 = arith.constant 9.99999974E-6 : f32
    %163 = vector.broadcast %cst_79 : f32 to vector<16x1xf32>
    %164 = arith.addf %160, %163 : vector<16x1xf32>
    %165 = math.rsqrt %164 : vector<16x1xf32>
    %166 = vector.broadcast %165 : vector<16x1xf32> to vector<16x32xf32>
    %167 = arith.mulf %162, %166 : vector<16x32xf32>
    %168 = vector.broadcast %147 : vector<1x32xf32> to vector<16x32xf32>
    %169 = arith.mulf %167, %168 : vector<16x32xf32>
    %170 = vector.broadcast %149 : vector<1x32xf32> to vector<16x32xf32>
    %171 = arith.addf %169, %170 : vector<16x32xf32>
    %c1 = arith.constant 1 : index
    %c0_80 = arith.constant 0 : index
    %c0_81 = arith.constant 0 : index
    %172 = vector.load %arg3[%c1, %c0_80, %c0_81] : memref<4x32x96xf32, #tpu.memory_space<vmem>>, vector<1x32x96xf32>
    %173 = vector.shape_cast %172 : vector<1x32x96xf32> to vector<32x96xf32>
    %cst_82 = arith.constant dense<0.000000e+00> : vector<16x96xf32>
    %174 = tpu.matmul %171, %173, %cst_82 {dimension_numbers = #tpu.dot_dimension_numbers<[1], [0], [0], [1], [0, 0, 1, 1], [], []>} : vector<16x32xf32>, vector<32x96xf32>, vector<16x96xf32> -> vector<16x96xf32>
    %c1_83 = arith.constant 1 : index
    %c0_84 = arith.constant 0 : index
    %c0_85 = arith.constant 0 : index
    %175 = vector.load %arg4[%c1_83, %c0_84, %c0_85] : memref<4x1x96xf32, #tpu.memory_space<vmem>>, vector<1x1x96xf32>
    %176 = vector.shape_cast %175 : vector<1x1x96xf32> to vector<1x96xf32>
    %177 = vector.broadcast %176 : vector<1x96xf32> to vector<16x96xf32>
    %178 = arith.addf %174, %177 : vector<16x96xf32>
    %c1_86 = arith.constant 1 : index
    %c0_87 = arith.constant 0 : index
    %c0_88 = arith.constant 0 : index
    %179 = vector.load %arg5[%c1_86, %c0_87, %c0_88] : memref<4x32x32xf32, #tpu.memory_space<vmem>>, vector<1x32x32xf32>
    %180 = vector.shape_cast %179 : vector<1x32x32xf32> to vector<32x32xf32>
    %cst_89 = arith.constant 0.000000e+00 : f32
    %181 = vector.broadcast %cst_89 : f32 to vector<16x32xf32>
    %182 = vector.extract_strided_slice %178 {offsets = [0, 0], sizes = [16, 8], strides = [1, 1]} : vector<16x96xf32> to vector<16x8xf32>
    %183 = vector.extract_strided_slice %178 {offsets = [0, 32], sizes = [16, 8], strides = [1, 1]} : vector<16x96xf32> to vector<16x8xf32>
    %184 = vector.extract_strided_slice %178 {offsets = [0, 64], sizes = [16, 8], strides = [1, 1]} : vector<16x96xf32> to vector<16x8xf32>
    %cst_90 = arith.constant dense<0.000000e+00> : vector<16x16xf32>
    %185 = tpu.matmul %182, %183, %cst_90 {dimension_numbers = #tpu.dot_dimension_numbers<[1], [1], [0], [0], [0, 0, 1, 0], [], []>} : vector<16x8xf32>, vector<16x8xf32>, vector<16x16xf32> -> vector<16x16xf32>
    %cst_91 = arith.constant 0.353553385 : f32
    %186 = vector.broadcast %cst_91 : f32 to vector<16x16xf32>
    %187 = arith.mulf %185, %186 : vector<16x16xf32>
    %188 = arith.addf %187, %0 : vector<16x16xf32>
    %cst_92 = arith.constant dense<0xFF800000> : vector<16xf32>
    %189 = vector.multi_reduction <maximumf>, %188, %cst_92 [1] : vector<16x16xf32> to vector<16xf32>
    %190 = vector.shape_cast %189 : vector<16xf32> to vector<16x1xf32>
    %191 = vector.broadcast %190 : vector<16x1xf32> to vector<16x16xf32>
    %192 = arith.subf %188, %191 : vector<16x16xf32>
    %193 = math.exp %192 : vector<16x16xf32>
    %cst_93 = arith.constant dense<0.000000e+00> : vector<16xf32>
    %194 = vector.multi_reduction <add>, %193, %cst_93 [1] : vector<16x16xf32> to vector<16xf32>
    %195 = vector.shape_cast %194 : vector<16xf32> to vector<16x1xf32>
    %196 = tpu.reciprocal %195 {approx = true} : vector<16x1xf32> -> vector<16x1xf32>
    %197 = vector.broadcast %196 : vector<16x1xf32> to vector<16x16xf32>
    %198 = arith.mulf %193, %197 : vector<16x16xf32>
    %cst_94 = arith.constant dense<0.000000e+00> : vector<16x8xf32>
    %199 = tpu.matmul %198, %184, %cst_94 {dimension_numbers = #tpu.dot_dimension_numbers<[1], [0], [0], [1], [0, 0, 1, 1], [], []>} : vector<16x16xf32>, vector<16x8xf32>, vector<16x8xf32> -> vector<16x8xf32>
    %200 = vector.extract_strided_slice %180 {offsets = [0, 0], sizes = [8, 32], strides = [1, 1]} : vector<32x32xf32> to vector<8x32xf32>
    %cst_95 = arith.constant dense<0.000000e+00> : vector<16x32xf32>
    %201 = tpu.matmul %199, %200, %cst_95 {dimension_numbers = #tpu.dot_dimension_numbers<[1], [0], [0], [1], [0, 0, 1, 1], [], []>} : vector<16x8xf32>, vector<8x32xf32>, vector<16x32xf32> -> vector<16x32xf32>
    %202 = arith.addf %181, %201 : vector<16x32xf32>
    %203 = vector.extract_strided_slice %178 {offsets = [0, 8], sizes = [16, 8], strides = [1, 1]} : vector<16x96xf32> to vector<16x8xf32>
    %204 = vector.extract_strided_slice %178 {offsets = [0, 40], sizes = [16, 8], strides = [1, 1]} : vector<16x96xf32> to vector<16x8xf32>
    %205 = vector.extract_strided_slice %178 {offsets = [0, 72], sizes = [16, 8], strides = [1, 1]} : vector<16x96xf32> to vector<16x8xf32>
    %cst_96 = arith.constant dense<0.000000e+00> : vector<16x16xf32>
    %206 = tpu.matmul %203, %204, %cst_96 {dimension_numbers = #tpu.dot_dimension_numbers<[1], [1], [0], [0], [0, 0, 1, 0], [], []>} : vector<16x8xf32>, vector<16x8xf32>, vector<16x16xf32> -> vector<16x16xf32>
    %cst_97 = arith.constant 0.353553385 : f32
    %207 = vector.broadcast %cst_97 : f32 to vector<16x16xf32>
    %208 = arith.mulf %206, %207 : vector<16x16xf32>
    %209 = arith.addf %208, %0 : vector<16x16xf32>
    %cst_98 = arith.constant dense<0xFF800000> : vector<16xf32>
    %210 = vector.multi_reduction <maximumf>, %209, %cst_98 [1] : vector<16x16xf32> to vector<16xf32>
    %211 = vector.shape_cast %210 : vector<16xf32> to vector<16x1xf32>
    %212 = vector.broadcast %211 : vector<16x1xf32> to vector<16x16xf32>
    %213 = arith.subf %209, %212 : vector<16x16xf32>
    %214 = math.exp %213 : vector<16x16xf32>
    %cst_99 = arith.constant dense<0.000000e+00> : vector<16xf32>
    %215 = vector.multi_reduction <add>, %214, %cst_99 [1] : vector<16x16xf32> to vector<16xf32>
    %216 = vector.shape_cast %215 : vector<16xf32> to vector<16x1xf32>
    %217 = tpu.reciprocal %216 {approx = true} : vector<16x1xf32> -> vector<16x1xf32>
    %218 = vector.broadcast %217 : vector<16x1xf32> to vector<16x16xf32>
    %219 = arith.mulf %214, %218 : vector<16x16xf32>
    %cst_100 = arith.constant dense<0.000000e+00> : vector<16x8xf32>
    %220 = tpu.matmul %219, %205, %cst_100 {dimension_numbers = #tpu.dot_dimension_numbers<[1], [0], [0], [1], [0, 0, 1, 1], [], []>} : vector<16x16xf32>, vector<16x8xf32>, vector<16x8xf32> -> vector<16x8xf32>
    %221 = vector.extract_strided_slice %180 {offsets = [8, 0], sizes = [8, 32], strides = [1, 1]} : vector<32x32xf32> to vector<8x32xf32>
    %cst_101 = arith.constant dense<0.000000e+00> : vector<16x32xf32>
    %222 = tpu.matmul %220, %221, %cst_101 {dimension_numbers = #tpu.dot_dimension_numbers<[1], [0], [0], [1], [0, 0, 1, 1], [], []>} : vector<16x8xf32>, vector<8x32xf32>, vector<16x32xf32> -> vector<16x32xf32>
    %223 = arith.addf %202, %222 : vector<16x32xf32>
    %224 = vector.extract_strided_slice %178 {offsets = [0, 16], sizes = [16, 8], strides = [1, 1]} : vector<16x96xf32> to vector<16x8xf32>
    %225 = vector.extract_strided_slice %178 {offsets = [0, 48], sizes = [16, 8], strides = [1, 1]} : vector<16x96xf32> to vector<16x8xf32>
    %226 = vector.extract_strided_slice %178 {offsets = [0, 80], sizes = [16, 8], strides = [1, 1]} : vector<16x96xf32> to vector<16x8xf32>
    %cst_102 = arith.constant dense<0.000000e+00> : vector<16x16xf32>
    %227 = tpu.matmul %224, %225, %cst_102 {dimension_numbers = #tpu.dot_dimension_numbers<[1], [1], [0], [0], [0, 0, 1, 0], [], []>} : vector<16x8xf32>, vector<16x8xf32>, vector<16x16xf32> -> vector<16x16xf32>
    %cst_103 = arith.constant 0.353553385 : f32
    %228 = vector.broadcast %cst_103 : f32 to vector<16x16xf32>
    %229 = arith.mulf %227, %228 : vector<16x16xf32>
    %230 = arith.addf %229, %0 : vector<16x16xf32>
    %cst_104 = arith.constant dense<0xFF800000> : vector<16xf32>
    %231 = vector.multi_reduction <maximumf>, %230, %cst_104 [1] : vector<16x16xf32> to vector<16xf32>
    %232 = vector.shape_cast %231 : vector<16xf32> to vector<16x1xf32>
    %233 = vector.broadcast %232 : vector<16x1xf32> to vector<16x16xf32>
    %234 = arith.subf %230, %233 : vector<16x16xf32>
    %235 = math.exp %234 : vector<16x16xf32>
    %cst_105 = arith.constant dense<0.000000e+00> : vector<16xf32>
    %236 = vector.multi_reduction <add>, %235, %cst_105 [1] : vector<16x16xf32> to vector<16xf32>
    %237 = vector.shape_cast %236 : vector<16xf32> to vector<16x1xf32>
    %238 = tpu.reciprocal %237 {approx = true} : vector<16x1xf32> -> vector<16x1xf32>
    %239 = vector.broadcast %238 : vector<16x1xf32> to vector<16x16xf32>
    %240 = arith.mulf %235, %239 : vector<16x16xf32>
    %cst_106 = arith.constant dense<0.000000e+00> : vector<16x8xf32>
    %241 = tpu.matmul %240, %226, %cst_106 {dimension_numbers = #tpu.dot_dimension_numbers<[1], [0], [0], [1], [0, 0, 1, 1], [], []>} : vector<16x16xf32>, vector<16x8xf32>, vector<16x8xf32> -> vector<16x8xf32>
    %242 = vector.extract_strided_slice %180 {offsets = [16, 0], sizes = [8, 32], strides = [1, 1]} : vector<32x32xf32> to vector<8x32xf32>
    %cst_107 = arith.constant dense<0.000000e+00> : vector<16x32xf32>
    %243 = tpu.matmul %241, %242, %cst_107 {dimension_numbers = #tpu.dot_dimension_numbers<[1], [0], [0], [1], [0, 0, 1, 1], [], []>} : vector<16x8xf32>, vector<8x32xf32>, vector<16x32xf32> -> vector<16x32xf32>
    %244 = arith.addf %223, %243 : vector<16x32xf32>
    %245 = vector.extract_strided_slice %178 {offsets = [0, 24], sizes = [16, 8], strides = [1, 1]} : vector<16x96xf32> to vector<16x8xf32>
    %246 = vector.extract_strided_slice %178 {offsets = [0, 56], sizes = [16, 8], strides = [1, 1]} : vector<16x96xf32> to vector<16x8xf32>
    %247 = vector.extract_strided_slice %178 {offsets = [0, 88], sizes = [16, 8], strides = [1, 1]} : vector<16x96xf32> to vector<16x8xf32>
    %cst_108 = arith.constant dense<0.000000e+00> : vector<16x16xf32>
    %248 = tpu.matmul %245, %246, %cst_108 {dimension_numbers = #tpu.dot_dimension_numbers<[1], [1], [0], [0], [0, 0, 1, 0], [], []>} : vector<16x8xf32>, vector<16x8xf32>, vector<16x16xf32> -> vector<16x16xf32>
    %cst_109 = arith.constant 0.353553385 : f32
    %249 = vector.broadcast %cst_109 : f32 to vector<16x16xf32>
    %250 = arith.mulf %248, %249 : vector<16x16xf32>
    %251 = arith.addf %250, %0 : vector<16x16xf32>
    %cst_110 = arith.constant dense<0xFF800000> : vector<16xf32>
    %252 = vector.multi_reduction <maximumf>, %251, %cst_110 [1] : vector<16x16xf32> to vector<16xf32>
    %253 = vector.shape_cast %252 : vector<16xf32> to vector<16x1xf32>
    %254 = vector.broadcast %253 : vector<16x1xf32> to vector<16x16xf32>
    %255 = arith.subf %251, %254 : vector<16x16xf32>
    %256 = math.exp %255 : vector<16x16xf32>
    %cst_111 = arith.constant dense<0.000000e+00> : vector<16xf32>
    %257 = vector.multi_reduction <add>, %256, %cst_111 [1] : vector<16x16xf32> to vector<16xf32>
    %258 = vector.shape_cast %257 : vector<16xf32> to vector<16x1xf32>
    %259 = tpu.reciprocal %258 {approx = true} : vector<16x1xf32> -> vector<16x1xf32>
    %260 = vector.broadcast %259 : vector<16x1xf32> to vector<16x16xf32>
    %261 = arith.mulf %256, %260 : vector<16x16xf32>
    %cst_112 = arith.constant dense<0.000000e+00> : vector<16x8xf32>
    %262 = tpu.matmul %261, %247, %cst_112 {dimension_numbers = #tpu.dot_dimension_numbers<[1], [0], [0], [1], [0, 0, 1, 1], [], []>} : vector<16x16xf32>, vector<16x8xf32>, vector<16x8xf32> -> vector<16x8xf32>
    %263 = vector.extract_strided_slice %180 {offsets = [24, 0], sizes = [8, 32], strides = [1, 1]} : vector<32x32xf32> to vector<8x32xf32>
    %cst_113 = arith.constant dense<0.000000e+00> : vector<16x32xf32>
    %264 = tpu.matmul %262, %263, %cst_113 {dimension_numbers = #tpu.dot_dimension_numbers<[1], [0], [0], [1], [0, 0, 1, 1], [], []>} : vector<16x8xf32>, vector<8x32xf32>, vector<16x32xf32> -> vector<16x32xf32>
    %265 = arith.addf %244, %264 : vector<16x32xf32>
    %c1_114 = arith.constant 1 : index
    %c0_115 = arith.constant 0 : index
    %c0_116 = arith.constant 0 : index
    %266 = vector.load %arg6[%c1_114, %c0_115, %c0_116] : memref<4x1x32xf32, #tpu.memory_space<vmem>>, vector<1x1x32xf32>
    %267 = vector.shape_cast %266 : vector<1x1x32xf32> to vector<1x32xf32>
    %268 = vector.broadcast %267 : vector<1x32xf32> to vector<16x32xf32>
    %269 = arith.addf %265, %268 : vector<16x32xf32>
    %270 = arith.addf %171, %269 : vector<16x32xf32>
    %c1_117 = arith.constant 1 : index
    %c0_118 = arith.constant 0 : index
    %c0_119 = arith.constant 0 : index
    %271 = vector.load %arg7[%c1_117, %c0_118, %c0_119] : memref<4x1x32xf32, #tpu.memory_space<vmem>>, vector<1x1x32xf32>
    %272 = vector.shape_cast %271 : vector<1x1x32xf32> to vector<1x32xf32>
    %c1_120 = arith.constant 1 : index
    %c0_121 = arith.constant 0 : index
    %c0_122 = arith.constant 0 : index
    %273 = vector.load %arg8[%c1_120, %c0_121, %c0_122] : memref<4x1x32xf32, #tpu.memory_space<vmem>>, vector<1x1x32xf32>
    %274 = vector.shape_cast %273 : vector<1x1x32xf32> to vector<1x32xf32>
    %cst_123 = arith.constant dense<0.000000e+00> : vector<16xf32>
    %275 = vector.multi_reduction <add>, %270, %cst_123 [1] : vector<16x32xf32> to vector<16xf32>
    %276 = vector.shape_cast %275 : vector<16xf32> to vector<16x1xf32>
    %cst_124 = arith.constant 3.200000e+01 : f32
    %277 = vector.broadcast %cst_124 : f32 to vector<16x1xf32>
    %278 = arith.divf %276, %277 : vector<16x1xf32>
    %279 = vector.broadcast %278 : vector<16x1xf32> to vector<16x32xf32>
    %280 = arith.subf %270, %279 : vector<16x32xf32>
    %281 = arith.mulf %280, %280 : vector<16x32xf32>
    %cst_125 = arith.constant dense<0.000000e+00> : vector<16xf32>
    %282 = vector.multi_reduction <add>, %281, %cst_125 [1] : vector<16x32xf32> to vector<16xf32>
    %283 = vector.shape_cast %282 : vector<16xf32> to vector<16x1xf32>
    %cst_126 = arith.constant 3.200000e+01 : f32
    %284 = vector.broadcast %cst_126 : f32 to vector<16x1xf32>
    %285 = arith.divf %283, %284 : vector<16x1xf32>
    %286 = vector.broadcast %278 : vector<16x1xf32> to vector<16x32xf32>
    %287 = arith.subf %270, %286 : vector<16x32xf32>
    %cst_127 = arith.constant 9.99999974E-6 : f32
    %288 = vector.broadcast %cst_127 : f32 to vector<16x1xf32>
    %289 = arith.addf %285, %288 : vector<16x1xf32>
    %290 = math.rsqrt %289 : vector<16x1xf32>
    %291 = vector.broadcast %290 : vector<16x1xf32> to vector<16x32xf32>
    %292 = arith.mulf %287, %291 : vector<16x32xf32>
    %293 = vector.broadcast %272 : vector<1x32xf32> to vector<16x32xf32>
    %294 = arith.mulf %292, %293 : vector<16x32xf32>
    %295 = vector.broadcast %274 : vector<1x32xf32> to vector<16x32xf32>
    %296 = arith.addf %294, %295 : vector<16x32xf32>
    %c1_128 = arith.constant 1 : index
    %c0_129 = arith.constant 0 : index
    %c0_130 = arith.constant 0 : index
    %297 = vector.load %arg9[%c1_128, %c0_129, %c0_130] : memref<4x32x512xf32, #tpu.memory_space<vmem>>, vector<1x32x512xf32>
    %298 = vector.shape_cast %297 : vector<1x32x512xf32> to vector<32x512xf32>
    %cst_131 = arith.constant dense<0.000000e+00> : vector<16x512xf32>
    %299 = tpu.matmul %296, %298, %cst_131 {dimension_numbers = #tpu.dot_dimension_numbers<[1], [0], [0], [1], [0, 0, 1, 1], [], []>} : vector<16x32xf32>, vector<32x512xf32>, vector<16x512xf32> -> vector<16x512xf32>
    %c1_132 = arith.constant 1 : index
    %c0_133 = arith.constant 0 : index
    %c0_134 = arith.constant 0 : index
    %300 = vector.load %arg10[%c1_132, %c0_133, %c0_134] : memref<4x1x512xf32, #tpu.memory_space<vmem>>, vector<1x1x512xf32>
    %301 = vector.shape_cast %300 : vector<1x1x512xf32> to vector<1x512xf32>
    %302 = vector.broadcast %301 : vector<1x512xf32> to vector<16x512xf32>
    %303 = arith.addf %299, %302 : vector<16x512xf32>
    %cst_135 = arith.constant 0.000000e+00 : f32
    %304 = vector.broadcast %cst_135 : f32 to vector<16x512xf32>
    %305 = arith.maximumf %303, %304 : vector<16x512xf32>
    %c1_136 = arith.constant 1 : index
    %c0_137 = arith.constant 0 : index
    %c0_138 = arith.constant 0 : index
    %306 = vector.load %arg11[%c1_136, %c0_137, %c0_138] : memref<4x512x32xf32, #tpu.memory_space<vmem>>, vector<1x512x32xf32>
    %307 = vector.shape_cast %306 : vector<1x512x32xf32> to vector<512x32xf32>
    %cst_139 = arith.constant dense<0.000000e+00> : vector<16x32xf32>
    %308 = tpu.matmul %305, %307, %cst_139 {dimension_numbers = #tpu.dot_dimension_numbers<[1], [0], [0], [1], [0, 0, 1, 1], [], []>} : vector<16x512xf32>, vector<512x32xf32>, vector<16x32xf32> -> vector<16x32xf32>
    %c1_140 = arith.constant 1 : index
    %c0_141 = arith.constant 0 : index
    %c0_142 = arith.constant 0 : index
    %309 = vector.load %arg12[%c1_140, %c0_141, %c0_142] : memref<4x1x32xf32, #tpu.memory_space<vmem>>, vector<1x1x32xf32>
    %310 = vector.shape_cast %309 : vector<1x1x32xf32> to vector<1x32xf32>
    %311 = vector.broadcast %310 : vector<1x32xf32> to vector<16x32xf32>
    %312 = arith.addf %308, %311 : vector<16x32xf32>
    %313 = arith.addf %296, %312 : vector<16x32xf32>
    %c1_143 = arith.constant 1 : index
    %c0_144 = arith.constant 0 : index
    %c0_145 = arith.constant 0 : index
    %314 = vector.load %arg13[%c1_143, %c0_144, %c0_145] : memref<4x1x32xf32, #tpu.memory_space<vmem>>, vector<1x1x32xf32>
    %315 = vector.shape_cast %314 : vector<1x1x32xf32> to vector<1x32xf32>
    %c1_146 = arith.constant 1 : index
    %c0_147 = arith.constant 0 : index
    %c0_148 = arith.constant 0 : index
    %316 = vector.load %arg14[%c1_146, %c0_147, %c0_148] : memref<4x1x32xf32, #tpu.memory_space<vmem>>, vector<1x1x32xf32>
    %317 = vector.shape_cast %316 : vector<1x1x32xf32> to vector<1x32xf32>
    %cst_149 = arith.constant dense<0.000000e+00> : vector<16xf32>
    %318 = vector.multi_reduction <add>, %313, %cst_149 [1] : vector<16x32xf32> to vector<16xf32>
    %319 = vector.shape_cast %318 : vector<16xf32> to vector<16x1xf32>
    %cst_150 = arith.constant 3.200000e+01 : f32
    %320 = vector.broadcast %cst_150 : f32 to vector<16x1xf32>
    %321 = arith.divf %319, %320 : vector<16x1xf32>
    %322 = vector.broadcast %321 : vector<16x1xf32> to vector<16x32xf32>
    %323 = arith.subf %313, %322 : vector<16x32xf32>
    %324 = arith.mulf %323, %323 : vector<16x32xf32>
    %cst_151 = arith.constant dense<0.000000e+00> : vector<16xf32>
    %325 = vector.multi_reduction <add>, %324, %cst_151 [1] : vector<16x32xf32> to vector<16xf32>
    %326 = vector.shape_cast %325 : vector<16xf32> to vector<16x1xf32>
    %cst_152 = arith.constant 3.200000e+01 : f32
    %327 = vector.broadcast %cst_152 : f32 to vector<16x1xf32>
    %328 = arith.divf %326, %327 : vector<16x1xf32>
    %329 = vector.broadcast %321 : vector<16x1xf32> to vector<16x32xf32>
    %330 = arith.subf %313, %329 : vector<16x32xf32>
    %cst_153 = arith.constant 9.99999974E-6 : f32
    %331 = vector.broadcast %cst_153 : f32 to vector<16x1xf32>
    %332 = arith.addf %328, %331 : vector<16x1xf32>
    %333 = math.rsqrt %332 : vector<16x1xf32>
    %334 = vector.broadcast %333 : vector<16x1xf32> to vector<16x32xf32>
    %335 = arith.mulf %330, %334 : vector<16x32xf32>
    %336 = vector.broadcast %315 : vector<1x32xf32> to vector<16x32xf32>
    %337 = arith.mulf %335, %336 : vector<16x32xf32>
    %338 = vector.broadcast %317 : vector<1x32xf32> to vector<16x32xf32>
    %339 = arith.addf %337, %338 : vector<16x32xf32>
    %c2 = arith.constant 2 : index
    %c0_154 = arith.constant 0 : index
    %c0_155 = arith.constant 0 : index
    %340 = vector.load %arg3[%c2, %c0_154, %c0_155] : memref<4x32x96xf32, #tpu.memory_space<vmem>>, vector<1x32x96xf32>
    %341 = vector.shape_cast %340 : vector<1x32x96xf32> to vector<32x96xf32>
    %cst_156 = arith.constant dense<0.000000e+00> : vector<16x96xf32>
    %342 = tpu.matmul %339, %341, %cst_156 {dimension_numbers = #tpu.dot_dimension_numbers<[1], [0], [0], [1], [0, 0, 1, 1], [], []>} : vector<16x32xf32>, vector<32x96xf32>, vector<16x96xf32> -> vector<16x96xf32>
    %c2_157 = arith.constant 2 : index
    %c0_158 = arith.constant 0 : index
    %c0_159 = arith.constant 0 : index
    %343 = vector.load %arg4[%c2_157, %c0_158, %c0_159] : memref<4x1x96xf32, #tpu.memory_space<vmem>>, vector<1x1x96xf32>
    %344 = vector.shape_cast %343 : vector<1x1x96xf32> to vector<1x96xf32>
    %345 = vector.broadcast %344 : vector<1x96xf32> to vector<16x96xf32>
    %346 = arith.addf %342, %345 : vector<16x96xf32>
    %c2_160 = arith.constant 2 : index
    %c0_161 = arith.constant 0 : index
    %c0_162 = arith.constant 0 : index
    %347 = vector.load %arg5[%c2_160, %c0_161, %c0_162] : memref<4x32x32xf32, #tpu.memory_space<vmem>>, vector<1x32x32xf32>
    %348 = vector.shape_cast %347 : vector<1x32x32xf32> to vector<32x32xf32>
    %cst_163 = arith.constant 0.000000e+00 : f32
    %349 = vector.broadcast %cst_163 : f32 to vector<16x32xf32>
    %350 = vector.extract_strided_slice %346 {offsets = [0, 0], sizes = [16, 8], strides = [1, 1]} : vector<16x96xf32> to vector<16x8xf32>
    %351 = vector.extract_strided_slice %346 {offsets = [0, 32], sizes = [16, 8], strides = [1, 1]} : vector<16x96xf32> to vector<16x8xf32>
    %352 = vector.extract_strided_slice %346 {offsets = [0, 64], sizes = [16, 8], strides = [1, 1]} : vector<16x96xf32> to vector<16x8xf32>
    %cst_164 = arith.constant dense<0.000000e+00> : vector<16x16xf32>
    %353 = tpu.matmul %350, %351, %cst_164 {dimension_numbers = #tpu.dot_dimension_numbers<[1], [1], [0], [0], [0, 0, 1, 0], [], []>} : vector<16x8xf32>, vector<16x8xf32>, vector<16x16xf32> -> vector<16x16xf32>
    %cst_165 = arith.constant 0.353553385 : f32
    %354 = vector.broadcast %cst_165 : f32 to vector<16x16xf32>
    %355 = arith.mulf %353, %354 : vector<16x16xf32>
    %356 = arith.addf %355, %0 : vector<16x16xf32>
    %cst_166 = arith.constant dense<0xFF800000> : vector<16xf32>
    %357 = vector.multi_reduction <maximumf>, %356, %cst_166 [1] : vector<16x16xf32> to vector<16xf32>
    %358 = vector.shape_cast %357 : vector<16xf32> to vector<16x1xf32>
    %359 = vector.broadcast %358 : vector<16x1xf32> to vector<16x16xf32>
    %360 = arith.subf %356, %359 : vector<16x16xf32>
    %361 = math.exp %360 : vector<16x16xf32>
    %cst_167 = arith.constant dense<0.000000e+00> : vector<16xf32>
    %362 = vector.multi_reduction <add>, %361, %cst_167 [1] : vector<16x16xf32> to vector<16xf32>
    %363 = vector.shape_cast %362 : vector<16xf32> to vector<16x1xf32>
    %364 = tpu.reciprocal %363 {approx = true} : vector<16x1xf32> -> vector<16x1xf32>
    %365 = vector.broadcast %364 : vector<16x1xf32> to vector<16x16xf32>
    %366 = arith.mulf %361, %365 : vector<16x16xf32>
    %cst_168 = arith.constant dense<0.000000e+00> : vector<16x8xf32>
    %367 = tpu.matmul %366, %352, %cst_168 {dimension_numbers = #tpu.dot_dimension_numbers<[1], [0], [0], [1], [0, 0, 1, 1], [], []>} : vector<16x16xf32>, vector<16x8xf32>, vector<16x8xf32> -> vector<16x8xf32>
    %368 = vector.extract_strided_slice %348 {offsets = [0, 0], sizes = [8, 32], strides = [1, 1]} : vector<32x32xf32> to vector<8x32xf32>
    %cst_169 = arith.constant dense<0.000000e+00> : vector<16x32xf32>
    %369 = tpu.matmul %367, %368, %cst_169 {dimension_numbers = #tpu.dot_dimension_numbers<[1], [0], [0], [1], [0, 0, 1, 1], [], []>} : vector<16x8xf32>, vector<8x32xf32>, vector<16x32xf32> -> vector<16x32xf32>
    %370 = arith.addf %349, %369 : vector<16x32xf32>
    %371 = vector.extract_strided_slice %346 {offsets = [0, 8], sizes = [16, 8], strides = [1, 1]} : vector<16x96xf32> to vector<16x8xf32>
    %372 = vector.extract_strided_slice %346 {offsets = [0, 40], sizes = [16, 8], strides = [1, 1]} : vector<16x96xf32> to vector<16x8xf32>
    %373 = vector.extract_strided_slice %346 {offsets = [0, 72], sizes = [16, 8], strides = [1, 1]} : vector<16x96xf32> to vector<16x8xf32>
    %cst_170 = arith.constant dense<0.000000e+00> : vector<16x16xf32>
    %374 = tpu.matmul %371, %372, %cst_170 {dimension_numbers = #tpu.dot_dimension_numbers<[1], [1], [0], [0], [0, 0, 1, 0], [], []>} : vector<16x8xf32>, vector<16x8xf32>, vector<16x16xf32> -> vector<16x16xf32>
    %cst_171 = arith.constant 0.353553385 : f32
    %375 = vector.broadcast %cst_171 : f32 to vector<16x16xf32>
    %376 = arith.mulf %374, %375 : vector<16x16xf32>
    %377 = arith.addf %376, %0 : vector<16x16xf32>
    %cst_172 = arith.constant dense<0xFF800000> : vector<16xf32>
    %378 = vector.multi_reduction <maximumf>, %377, %cst_172 [1] : vector<16x16xf32> to vector<16xf32>
    %379 = vector.shape_cast %378 : vector<16xf32> to vector<16x1xf32>
    %380 = vector.broadcast %379 : vector<16x1xf32> to vector<16x16xf32>
    %381 = arith.subf %377, %380 : vector<16x16xf32>
    %382 = math.exp %381 : vector<16x16xf32>
    %cst_173 = arith.constant dense<0.000000e+00> : vector<16xf32>
    %383 = vector.multi_reduction <add>, %382, %cst_173 [1] : vector<16x16xf32> to vector<16xf32>
    %384 = vector.shape_cast %383 : vector<16xf32> to vector<16x1xf32>
    %385 = tpu.reciprocal %384 {approx = true} : vector<16x1xf32> -> vector<16x1xf32>
    %386 = vector.broadcast %385 : vector<16x1xf32> to vector<16x16xf32>
    %387 = arith.mulf %382, %386 : vector<16x16xf32>
    %cst_174 = arith.constant dense<0.000000e+00> : vector<16x8xf32>
    %388 = tpu.matmul %387, %373, %cst_174 {dimension_numbers = #tpu.dot_dimension_numbers<[1], [0], [0], [1], [0, 0, 1, 1], [], []>} : vector<16x16xf32>, vector<16x8xf32>, vector<16x8xf32> -> vector<16x8xf32>
    %389 = vector.extract_strided_slice %348 {offsets = [8, 0], sizes = [8, 32], strides = [1, 1]} : vector<32x32xf32> to vector<8x32xf32>
    %cst_175 = arith.constant dense<0.000000e+00> : vector<16x32xf32>
    %390 = tpu.matmul %388, %389, %cst_175 {dimension_numbers = #tpu.dot_dimension_numbers<[1], [0], [0], [1], [0, 0, 1, 1], [], []>} : vector<16x8xf32>, vector<8x32xf32>, vector<16x32xf32> -> vector<16x32xf32>
    %391 = arith.addf %370, %390 : vector<16x32xf32>
    %392 = vector.extract_strided_slice %346 {offsets = [0, 16], sizes = [16, 8], strides = [1, 1]} : vector<16x96xf32> to vector<16x8xf32>
    %393 = vector.extract_strided_slice %346 {offsets = [0, 48], sizes = [16, 8], strides = [1, 1]} : vector<16x96xf32> to vector<16x8xf32>
    %394 = vector.extract_strided_slice %346 {offsets = [0, 80], sizes = [16, 8], strides = [1, 1]} : vector<16x96xf32> to vector<16x8xf32>
    %cst_176 = arith.constant dense<0.000000e+00> : vector<16x16xf32>
    %395 = tpu.matmul %392, %393, %cst_176 {dimension_numbers = #tpu.dot_dimension_numbers<[1], [1], [0], [0], [0, 0, 1, 0], [], []>} : vector<16x8xf32>, vector<16x8xf32>, vector<16x16xf32> -> vector<16x16xf32>
    %cst_177 = arith.constant 0.353553385 : f32
    %396 = vector.broadcast %cst_177 : f32 to vector<16x16xf32>
    %397 = arith.mulf %395, %396 : vector<16x16xf32>
    %398 = arith.addf %397, %0 : vector<16x16xf32>
    %cst_178 = arith.constant dense<0xFF800000> : vector<16xf32>
    %399 = vector.multi_reduction <maximumf>, %398, %cst_178 [1] : vector<16x16xf32> to vector<16xf32>
    %400 = vector.shape_cast %399 : vector<16xf32> to vector<16x1xf32>
    %401 = vector.broadcast %400 : vector<16x1xf32> to vector<16x16xf32>
    %402 = arith.subf %398, %401 : vector<16x16xf32>
    %403 = math.exp %402 : vector<16x16xf32>
    %cst_179 = arith.constant dense<0.000000e+00> : vector<16xf32>
    %404 = vector.multi_reduction <add>, %403, %cst_179 [1] : vector<16x16xf32> to vector<16xf32>
    %405 = vector.shape_cast %404 : vector<16xf32> to vector<16x1xf32>
    %406 = tpu.reciprocal %405 {approx = true} : vector<16x1xf32> -> vector<16x1xf32>
    %407 = vector.broadcast %406 : vector<16x1xf32> to vector<16x16xf32>
    %408 = arith.mulf %403, %407 : vector<16x16xf32>
    %cst_180 = arith.constant dense<0.000000e+00> : vector<16x8xf32>
    %409 = tpu.matmul %408, %394, %cst_180 {dimension_numbers = #tpu.dot_dimension_numbers<[1], [0], [0], [1], [0, 0, 1, 1], [], []>} : vector<16x16xf32>, vector<16x8xf32>, vector<16x8xf32> -> vector<16x8xf32>
    %410 = vector.extract_strided_slice %348 {offsets = [16, 0], sizes = [8, 32], strides = [1, 1]} : vector<32x32xf32> to vector<8x32xf32>
    %cst_181 = arith.constant dense<0.000000e+00> : vector<16x32xf32>
    %411 = tpu.matmul %409, %410, %cst_181 {dimension_numbers = #tpu.dot_dimension_numbers<[1], [0], [0], [1], [0, 0, 1, 1], [], []>} : vector<16x8xf32>, vector<8x32xf32>, vector<16x32xf32> -> vector<16x32xf32>
    %412 = arith.addf %391, %411 : vector<16x32xf32>
    %413 = vector.extract_strided_slice %346 {offsets = [0, 24], sizes = [16, 8], strides = [1, 1]} : vector<16x96xf32> to vector<16x8xf32>
    %414 = vector.extract_strided_slice %346 {offsets = [0, 56], sizes = [16, 8], strides = [1, 1]} : vector<16x96xf32> to vector<16x8xf32>
    %415 = vector.extract_strided_slice %346 {offsets = [0, 88], sizes = [16, 8], strides = [1, 1]} : vector<16x96xf32> to vector<16x8xf32>
    %cst_182 = arith.constant dense<0.000000e+00> : vector<16x16xf32>
    %416 = tpu.matmul %413, %414, %cst_182 {dimension_numbers = #tpu.dot_dimension_numbers<[1], [1], [0], [0], [0, 0, 1, 0], [], []>} : vector<16x8xf32>, vector<16x8xf32>, vector<16x16xf32> -> vector<16x16xf32>
    %cst_183 = arith.constant 0.353553385 : f32
    %417 = vector.broadcast %cst_183 : f32 to vector<16x16xf32>
    %418 = arith.mulf %416, %417 : vector<16x16xf32>
    %419 = arith.addf %418, %0 : vector<16x16xf32>
    %cst_184 = arith.constant dense<0xFF800000> : vector<16xf32>
    %420 = vector.multi_reduction <maximumf>, %419, %cst_184 [1] : vector<16x16xf32> to vector<16xf32>
    %421 = vector.shape_cast %420 : vector<16xf32> to vector<16x1xf32>
    %422 = vector.broadcast %421 : vector<16x1xf32> to vector<16x16xf32>
    %423 = arith.subf %419, %422 : vector<16x16xf32>
    %424 = math.exp %423 : vector<16x16xf32>
    %cst_185 = arith.constant dense<0.000000e+00> : vector<16xf32>
    %425 = vector.multi_reduction <add>, %424, %cst_185 [1] : vector<16x16xf32> to vector<16xf32>
    %426 = vector.shape_cast %425 : vector<16xf32> to vector<16x1xf32>
    %427 = tpu.reciprocal %426 {approx = true} : vector<16x1xf32> -> vector<16x1xf32>
    %428 = vector.broadcast %427 : vector<16x1xf32> to vector<16x16xf32>
    %429 = arith.mulf %424, %428 : vector<16x16xf32>
    %cst_186 = arith.constant dense<0.000000e+00> : vector<16x8xf32>
    %430 = tpu.matmul %429, %415, %cst_186 {dimension_numbers = #tpu.dot_dimension_numbers<[1], [0], [0], [1], [0, 0, 1, 1], [], []>} : vector<16x16xf32>, vector<16x8xf32>, vector<16x8xf32> -> vector<16x8xf32>
    %431 = vector.extract_strided_slice %348 {offsets = [24, 0], sizes = [8, 32], strides = [1, 1]} : vector<32x32xf32> to vector<8x32xf32>
    %cst_187 = arith.constant dense<0.000000e+00> : vector<16x32xf32>
    %432 = tpu.matmul %430, %431, %cst_187 {dimension_numbers = #tpu.dot_dimension_numbers<[1], [0], [0], [1], [0, 0, 1, 1], [], []>} : vector<16x8xf32>, vector<8x32xf32>, vector<16x32xf32> -> vector<16x32xf32>
    %433 = arith.addf %412, %432 : vector<16x32xf32>
    %c2_188 = arith.constant 2 : index
    %c0_189 = arith.constant 0 : index
    %c0_190 = arith.constant 0 : index
    %434 = vector.load %arg6[%c2_188, %c0_189, %c0_190] : memref<4x1x32xf32, #tpu.memory_space<vmem>>, vector<1x1x32xf32>
    %435 = vector.shape_cast %434 : vector<1x1x32xf32> to vector<1x32xf32>
    %436 = vector.broadcast %435 : vector<1x32xf32> to vector<16x32xf32>
    %437 = arith.addf %433, %436 : vector<16x32xf32>
    %438 = arith.addf %339, %437 : vector<16x32xf32>
    %c2_191 = arith.constant 2 : index
    %c0_192 = arith.constant 0 : index
    %c0_193 = arith.constant 0 : index
    %439 = vector.load %arg7[%c2_191, %c0_192, %c0_193] : memref<4x1x32xf32, #tpu.memory_space<vmem>>, vector<1x1x32xf32>
    %440 = vector.shape_cast %439 : vector<1x1x32xf32> to vector<1x32xf32>
    %c2_194 = arith.constant 2 : index
    %c0_195 = arith.constant 0 : index
    %c0_196 = arith.constant 0 : index
    %441 = vector.load %arg8[%c2_194, %c0_195, %c0_196] : memref<4x1x32xf32, #tpu.memory_space<vmem>>, vector<1x1x32xf32>
    %442 = vector.shape_cast %441 : vector<1x1x32xf32> to vector<1x32xf32>
    %cst_197 = arith.constant dense<0.000000e+00> : vector<16xf32>
    %443 = vector.multi_reduction <add>, %438, %cst_197 [1] : vector<16x32xf32> to vector<16xf32>
    %444 = vector.shape_cast %443 : vector<16xf32> to vector<16x1xf32>
    %cst_198 = arith.constant 3.200000e+01 : f32
    %445 = vector.broadcast %cst_198 : f32 to vector<16x1xf32>
    %446 = arith.divf %444, %445 : vector<16x1xf32>
    %447 = vector.broadcast %446 : vector<16x1xf32> to vector<16x32xf32>
    %448 = arith.subf %438, %447 : vector<16x32xf32>
    %449 = arith.mulf %448, %448 : vector<16x32xf32>
    %cst_199 = arith.constant dense<0.000000e+00> : vector<16xf32>
    %450 = vector.multi_reduction <add>, %449, %cst_199 [1] : vector<16x32xf32> to vector<16xf32>
    %451 = vector.shape_cast %450 : vector<16xf32> to vector<16x1xf32>
    %cst_200 = arith.constant 3.200000e+01 : f32
    %452 = vector.broadcast %cst_200 : f32 to vector<16x1xf32>
    %453 = arith.divf %451, %452 : vector<16x1xf32>
    %454 = vector.broadcast %446 : vector<16x1xf32> to vector<16x32xf32>
    %455 = arith.subf %438, %454 : vector<16x32xf32>
    %cst_201 = arith.constant 9.99999974E-6 : f32
    %456 = vector.broadcast %cst_201 : f32 to vector<16x1xf32>
    %457 = arith.addf %453, %456 : vector<16x1xf32>
    %458 = math.rsqrt %457 : vector<16x1xf32>
    %459 = vector.broadcast %458 : vector<16x1xf32> to vector<16x32xf32>
    %460 = arith.mulf %455, %459 : vector<16x32xf32>
    %461 = vector.broadcast %440 : vector<1x32xf32> to vector<16x32xf32>
    %462 = arith.mulf %460, %461 : vector<16x32xf32>
    %463 = vector.broadcast %442 : vector<1x32xf32> to vector<16x32xf32>
    %464 = arith.addf %462, %463 : vector<16x32xf32>
    %c2_202 = arith.constant 2 : index
    %c0_203 = arith.constant 0 : index
    %c0_204 = arith.constant 0 : index
    %465 = vector.load %arg9[%c2_202, %c0_203, %c0_204] : memref<4x32x512xf32, #tpu.memory_space<vmem>>, vector<1x32x512xf32>
    %466 = vector.shape_cast %465 : vector<1x32x512xf32> to vector<32x512xf32>
    %cst_205 = arith.constant dense<0.000000e+00> : vector<16x512xf32>
    %467 = tpu.matmul %464, %466, %cst_205 {dimension_numbers = #tpu.dot_dimension_numbers<[1], [0], [0], [1], [0, 0, 1, 1], [], []>} : vector<16x32xf32>, vector<32x512xf32>, vector<16x512xf32> -> vector<16x512xf32>
    %c2_206 = arith.constant 2 : index
    %c0_207 = arith.constant 0 : index
    %c0_208 = arith.constant 0 : index
    %468 = vector.load %arg10[%c2_206, %c0_207, %c0_208] : memref<4x1x512xf32, #tpu.memory_space<vmem>>, vector<1x1x512xf32>
    %469 = vector.shape_cast %468 : vector<1x1x512xf32> to vector<1x512xf32>
    %470 = vector.broadcast %469 : vector<1x512xf32> to vector<16x512xf32>
    %471 = arith.addf %467, %470 : vector<16x512xf32>
    %cst_209 = arith.constant 0.000000e+00 : f32
    %472 = vector.broadcast %cst_209 : f32 to vector<16x512xf32>
    %473 = arith.maximumf %471, %472 : vector<16x512xf32>
    %c2_210 = arith.constant 2 : index
    %c0_211 = arith.constant 0 : index
    %c0_212 = arith.constant 0 : index
    %474 = vector.load %arg11[%c2_210, %c0_211, %c0_212] : memref<4x512x32xf32, #tpu.memory_space<vmem>>, vector<1x512x32xf32>
    %475 = vector.shape_cast %474 : vector<1x512x32xf32> to vector<512x32xf32>
    %cst_213 = arith.constant dense<0.000000e+00> : vector<16x32xf32>
    %476 = tpu.matmul %473, %475, %cst_213 {dimension_numbers = #tpu.dot_dimension_numbers<[1], [0], [0], [1], [0, 0, 1, 1], [], []>} : vector<16x512xf32>, vector<512x32xf32>, vector<16x32xf32> -> vector<16x32xf32>
    %c2_214 = arith.constant 2 : index
    %c0_215 = arith.constant 0 : index
    %c0_216 = arith.constant 0 : index
    %477 = vector.load %arg12[%c2_214, %c0_215, %c0_216] : memref<4x1x32xf32, #tpu.memory_space<vmem>>, vector<1x1x32xf32>
    %478 = vector.shape_cast %477 : vector<1x1x32xf32> to vector<1x32xf32>
    %479 = vector.broadcast %478 : vector<1x32xf32> to vector<16x32xf32>
    %480 = arith.addf %476, %479 : vector<16x32xf32>
    %481 = arith.addf %464, %480 : vector<16x32xf32>
    %c2_217 = arith.constant 2 : index
    %c0_218 = arith.constant 0 : index
    %c0_219 = arith.constant 0 : index
    %482 = vector.load %arg13[%c2_217, %c0_218, %c0_219] : memref<4x1x32xf32, #tpu.memory_space<vmem>>, vector<1x1x32xf32>
    %483 = vector.shape_cast %482 : vector<1x1x32xf32> to vector<1x32xf32>
    %c2_220 = arith.constant 2 : index
    %c0_221 = arith.constant 0 : index
    %c0_222 = arith.constant 0 : index
    %484 = vector.load %arg14[%c2_220, %c0_221, %c0_222] : memref<4x1x32xf32, #tpu.memory_space<vmem>>, vector<1x1x32xf32>
    %485 = vector.shape_cast %484 : vector<1x1x32xf32> to vector<1x32xf32>
    %cst_223 = arith.constant dense<0.000000e+00> : vector<16xf32>
    %486 = vector.multi_reduction <add>, %481, %cst_223 [1] : vector<16x32xf32> to vector<16xf32>
    %487 = vector.shape_cast %486 : vector<16xf32> to vector<16x1xf32>
    %cst_224 = arith.constant 3.200000e+01 : f32
    %488 = vector.broadcast %cst_224 : f32 to vector<16x1xf32>
    %489 = arith.divf %487, %488 : vector<16x1xf32>
    %490 = vector.broadcast %489 : vector<16x1xf32> to vector<16x32xf32>
    %491 = arith.subf %481, %490 : vector<16x32xf32>
    %492 = arith.mulf %491, %491 : vector<16x32xf32>
    %cst_225 = arith.constant dense<0.000000e+00> : vector<16xf32>
    %493 = vector.multi_reduction <add>, %492, %cst_225 [1] : vector<16x32xf32> to vector<16xf32>
    %494 = vector.shape_cast %493 : vector<16xf32> to vector<16x1xf32>
    %cst_226 = arith.constant 3.200000e+01 : f32
    %495 = vector.broadcast %cst_226 : f32 to vector<16x1xf32>
    %496 = arith.divf %494, %495 : vector<16x1xf32>
    %497 = vector.broadcast %489 : vector<16x1xf32> to vector<16x32xf32>
    %498 = arith.subf %481, %497 : vector<16x32xf32>
    %cst_227 = arith.constant 9.99999974E-6 : f32
    %499 = vector.broadcast %cst_227 : f32 to vector<16x1xf32>
    %500 = arith.addf %496, %499 : vector<16x1xf32>
    %501 = math.rsqrt %500 : vector<16x1xf32>
    %502 = vector.broadcast %501 : vector<16x1xf32> to vector<16x32xf32>
    %503 = arith.mulf %498, %502 : vector<16x32xf32>
    %504 = vector.broadcast %483 : vector<1x32xf32> to vector<16x32xf32>
    %505 = arith.mulf %503, %504 : vector<16x32xf32>
    %506 = vector.broadcast %485 : vector<1x32xf32> to vector<16x32xf32>
    %507 = arith.addf %505, %506 : vector<16x32xf32>
    %c3 = arith.constant 3 : index
    %c0_228 = arith.constant 0 : index
    %c0_229 = arith.constant 0 : index
    %508 = vector.load %arg3[%c3, %c0_228, %c0_229] : memref<4x32x96xf32, #tpu.memory_space<vmem>>, vector<1x32x96xf32>
    %509 = vector.shape_cast %508 : vector<1x32x96xf32> to vector<32x96xf32>
    %cst_230 = arith.constant dense<0.000000e+00> : vector<16x96xf32>
    %510 = tpu.matmul %507, %509, %cst_230 {dimension_numbers = #tpu.dot_dimension_numbers<[1], [0], [0], [1], [0, 0, 1, 1], [], []>} : vector<16x32xf32>, vector<32x96xf32>, vector<16x96xf32> -> vector<16x96xf32>
    %c3_231 = arith.constant 3 : index
    %c0_232 = arith.constant 0 : index
    %c0_233 = arith.constant 0 : index
    %511 = vector.load %arg4[%c3_231, %c0_232, %c0_233] : memref<4x1x96xf32, #tpu.memory_space<vmem>>, vector<1x1x96xf32>
    %512 = vector.shape_cast %511 : vector<1x1x96xf32> to vector<1x96xf32>
    %513 = vector.broadcast %512 : vector<1x96xf32> to vector<16x96xf32>
    %514 = arith.addf %510, %513 : vector<16x96xf32>
    %c3_234 = arith.constant 3 : index
    %c0_235 = arith.constant 0 : index
    %c0_236 = arith.constant 0 : index
    %515 = vector.load %arg5[%c3_234, %c0_235, %c0_236] : memref<4x32x32xf32, #tpu.memory_space<vmem>>, vector<1x32x32xf32>
    %516 = vector.shape_cast %515 : vector<1x32x32xf32> to vector<32x32xf32>
    %cst_237 = arith.constant 0.000000e+00 : f32
    %517 = vector.broadcast %cst_237 : f32 to vector<16x32xf32>
    %518 = vector.extract_strided_slice %514 {offsets = [0, 0], sizes = [16, 8], strides = [1, 1]} : vector<16x96xf32> to vector<16x8xf32>
    %519 = vector.extract_strided_slice %514 {offsets = [0, 32], sizes = [16, 8], strides = [1, 1]} : vector<16x96xf32> to vector<16x8xf32>
    %520 = vector.extract_strided_slice %514 {offsets = [0, 64], sizes = [16, 8], strides = [1, 1]} : vector<16x96xf32> to vector<16x8xf32>
    %cst_238 = arith.constant dense<0.000000e+00> : vector<16x16xf32>
    %521 = tpu.matmul %518, %519, %cst_238 {dimension_numbers = #tpu.dot_dimension_numbers<[1], [1], [0], [0], [0, 0, 1, 0], [], []>} : vector<16x8xf32>, vector<16x8xf32>, vector<16x16xf32> -> vector<16x16xf32>
    %cst_239 = arith.constant 0.353553385 : f32
    %522 = vector.broadcast %cst_239 : f32 to vector<16x16xf32>
    %523 = arith.mulf %521, %522 : vector<16x16xf32>
    %524 = arith.addf %523, %0 : vector<16x16xf32>
    %cst_240 = arith.constant dense<0xFF800000> : vector<16xf32>
    %525 = vector.multi_reduction <maximumf>, %524, %cst_240 [1] : vector<16x16xf32> to vector<16xf32>
    %526 = vector.shape_cast %525 : vector<16xf32> to vector<16x1xf32>
    %527 = vector.broadcast %526 : vector<16x1xf32> to vector<16x16xf32>
    %528 = arith.subf %524, %527 : vector<16x16xf32>
    %529 = math.exp %528 : vector<16x16xf32>
    %cst_241 = arith.constant dense<0.000000e+00> : vector<16xf32>
    %530 = vector.multi_reduction <add>, %529, %cst_241 [1] : vector<16x16xf32> to vector<16xf32>
    %531 = vector.shape_cast %530 : vector<16xf32> to vector<16x1xf32>
    %532 = tpu.reciprocal %531 {approx = true} : vector<16x1xf32> -> vector<16x1xf32>
    %533 = vector.broadcast %532 : vector<16x1xf32> to vector<16x16xf32>
    %534 = arith.mulf %529, %533 : vector<16x16xf32>
    %cst_242 = arith.constant dense<0.000000e+00> : vector<16x8xf32>
    %535 = tpu.matmul %534, %520, %cst_242 {dimension_numbers = #tpu.dot_dimension_numbers<[1], [0], [0], [1], [0, 0, 1, 1], [], []>} : vector<16x16xf32>, vector<16x8xf32>, vector<16x8xf32> -> vector<16x8xf32>
    %536 = vector.extract_strided_slice %516 {offsets = [0, 0], sizes = [8, 32], strides = [1, 1]} : vector<32x32xf32> to vector<8x32xf32>
    %cst_243 = arith.constant dense<0.000000e+00> : vector<16x32xf32>
    %537 = tpu.matmul %535, %536, %cst_243 {dimension_numbers = #tpu.dot_dimension_numbers<[1], [0], [0], [1], [0, 0, 1, 1], [], []>} : vector<16x8xf32>, vector<8x32xf32>, vector<16x32xf32> -> vector<16x32xf32>
    %538 = arith.addf %517, %537 : vector<16x32xf32>
    %539 = vector.extract_strided_slice %514 {offsets = [0, 8], sizes = [16, 8], strides = [1, 1]} : vector<16x96xf32> to vector<16x8xf32>
    %540 = vector.extract_strided_slice %514 {offsets = [0, 40], sizes = [16, 8], strides = [1, 1]} : vector<16x96xf32> to vector<16x8xf32>
    %541 = vector.extract_strided_slice %514 {offsets = [0, 72], sizes = [16, 8], strides = [1, 1]} : vector<16x96xf32> to vector<16x8xf32>
    %cst_244 = arith.constant dense<0.000000e+00> : vector<16x16xf32>
    %542 = tpu.matmul %539, %540, %cst_244 {dimension_numbers = #tpu.dot_dimension_numbers<[1], [1], [0], [0], [0, 0, 1, 0], [], []>} : vector<16x8xf32>, vector<16x8xf32>, vector<16x16xf32> -> vector<16x16xf32>
    %cst_245 = arith.constant 0.353553385 : f32
    %543 = vector.broadcast %cst_245 : f32 to vector<16x16xf32>
    %544 = arith.mulf %542, %543 : vector<16x16xf32>
    %545 = arith.addf %544, %0 : vector<16x16xf32>
    %cst_246 = arith.constant dense<0xFF800000> : vector<16xf32>
    %546 = vector.multi_reduction <maximumf>, %545, %cst_246 [1] : vector<16x16xf32> to vector<16xf32>
    %547 = vector.shape_cast %546 : vector<16xf32> to vector<16x1xf32>
    %548 = vector.broadcast %547 : vector<16x1xf32> to vector<16x16xf32>
    %549 = arith.subf %545, %548 : vector<16x16xf32>
    %550 = math.exp %549 : vector<16x16xf32>
    %cst_247 = arith.constant dense<0.000000e+00> : vector<16xf32>
    %551 = vector.multi_reduction <add>, %550, %cst_247 [1] : vector<16x16xf32> to vector<16xf32>
    %552 = vector.shape_cast %551 : vector<16xf32> to vector<16x1xf32>
    %553 = tpu.reciprocal %552 {approx = true} : vector<16x1xf32> -> vector<16x1xf32>
    %554 = vector.broadcast %553 : vector<16x1xf32> to vector<16x16xf32>
    %555 = arith.mulf %550, %554 : vector<16x16xf32>
    %cst_248 = arith.constant dense<0.000000e+00> : vector<16x8xf32>
    %556 = tpu.matmul %555, %541, %cst_248 {dimension_numbers = #tpu.dot_dimension_numbers<[1], [0], [0], [1], [0, 0, 1, 1], [], []>} : vector<16x16xf32>, vector<16x8xf32>, vector<16x8xf32> -> vector<16x8xf32>
    %557 = vector.extract_strided_slice %516 {offsets = [8, 0], sizes = [8, 32], strides = [1, 1]} : vector<32x32xf32> to vector<8x32xf32>
    %cst_249 = arith.constant dense<0.000000e+00> : vector<16x32xf32>
    %558 = tpu.matmul %556, %557, %cst_249 {dimension_numbers = #tpu.dot_dimension_numbers<[1], [0], [0], [1], [0, 0, 1, 1], [], []>} : vector<16x8xf32>, vector<8x32xf32>, vector<16x32xf32> -> vector<16x32xf32>
    %559 = arith.addf %538, %558 : vector<16x32xf32>
    %560 = vector.extract_strided_slice %514 {offsets = [0, 16], sizes = [16, 8], strides = [1, 1]} : vector<16x96xf32> to vector<16x8xf32>
    %561 = vector.extract_strided_slice %514 {offsets = [0, 48], sizes = [16, 8], strides = [1, 1]} : vector<16x96xf32> to vector<16x8xf32>
    %562 = vector.extract_strided_slice %514 {offsets = [0, 80], sizes = [16, 8], strides = [1, 1]} : vector<16x96xf32> to vector<16x8xf32>
    %cst_250 = arith.constant dense<0.000000e+00> : vector<16x16xf32>
    %563 = tpu.matmul %560, %561, %cst_250 {dimension_numbers = #tpu.dot_dimension_numbers<[1], [1], [0], [0], [0, 0, 1, 0], [], []>} : vector<16x8xf32>, vector<16x8xf32>, vector<16x16xf32> -> vector<16x16xf32>
    %cst_251 = arith.constant 0.353553385 : f32
    %564 = vector.broadcast %cst_251 : f32 to vector<16x16xf32>
    %565 = arith.mulf %563, %564 : vector<16x16xf32>
    %566 = arith.addf %565, %0 : vector<16x16xf32>
    %cst_252 = arith.constant dense<0xFF800000> : vector<16xf32>
    %567 = vector.multi_reduction <maximumf>, %566, %cst_252 [1] : vector<16x16xf32> to vector<16xf32>
    %568 = vector.shape_cast %567 : vector<16xf32> to vector<16x1xf32>
    %569 = vector.broadcast %568 : vector<16x1xf32> to vector<16x16xf32>
    %570 = arith.subf %566, %569 : vector<16x16xf32>
    %571 = math.exp %570 : vector<16x16xf32>
    %cst_253 = arith.constant dense<0.000000e+00> : vector<16xf32>
    %572 = vector.multi_reduction <add>, %571, %cst_253 [1] : vector<16x16xf32> to vector<16xf32>
    %573 = vector.shape_cast %572 : vector<16xf32> to vector<16x1xf32>
    %574 = tpu.reciprocal %573 {approx = true} : vector<16x1xf32> -> vector<16x1xf32>
    %575 = vector.broadcast %574 : vector<16x1xf32> to vector<16x16xf32>
    %576 = arith.mulf %571, %575 : vector<16x16xf32>
    %cst_254 = arith.constant dense<0.000000e+00> : vector<16x8xf32>
    %577 = tpu.matmul %576, %562, %cst_254 {dimension_numbers = #tpu.dot_dimension_numbers<[1], [0], [0], [1], [0, 0, 1, 1], [], []>} : vector<16x16xf32>, vector<16x8xf32>, vector<16x8xf32> -> vector<16x8xf32>
    %578 = vector.extract_strided_slice %516 {offsets = [16, 0], sizes = [8, 32], strides = [1, 1]} : vector<32x32xf32> to vector<8x32xf32>
    %cst_255 = arith.constant dense<0.000000e+00> : vector<16x32xf32>
    %579 = tpu.matmul %577, %578, %cst_255 {dimension_numbers = #tpu.dot_dimension_numbers<[1], [0], [0], [1], [0, 0, 1, 1], [], []>} : vector<16x8xf32>, vector<8x32xf32>, vector<16x32xf32> -> vector<16x32xf32>
    %580 = arith.addf %559, %579 : vector<16x32xf32>
    %581 = vector.extract_strided_slice %514 {offsets = [0, 24], sizes = [16, 8], strides = [1, 1]} : vector<16x96xf32> to vector<16x8xf32>
    %582 = vector.extract_strided_slice %514 {offsets = [0, 56], sizes = [16, 8], strides = [1, 1]} : vector<16x96xf32> to vector<16x8xf32>
    %583 = vector.extract_strided_slice %514 {offsets = [0, 88], sizes = [16, 8], strides = [1, 1]} : vector<16x96xf32> to vector<16x8xf32>
    %cst_256 = arith.constant dense<0.000000e+00> : vector<16x16xf32>
    %584 = tpu.matmul %581, %582, %cst_256 {dimension_numbers = #tpu.dot_dimension_numbers<[1], [1], [0], [0], [0, 0, 1, 0], [], []>} : vector<16x8xf32>, vector<16x8xf32>, vector<16x16xf32> -> vector<16x16xf32>
    %cst_257 = arith.constant 0.353553385 : f32
    %585 = vector.broadcast %cst_257 : f32 to vector<16x16xf32>
    %586 = arith.mulf %584, %585 : vector<16x16xf32>
    %587 = arith.addf %586, %0 : vector<16x16xf32>
    %cst_258 = arith.constant dense<0xFF800000> : vector<16xf32>
    %588 = vector.multi_reduction <maximumf>, %587, %cst_258 [1] : vector<16x16xf32> to vector<16xf32>
    %589 = vector.shape_cast %588 : vector<16xf32> to vector<16x1xf32>
    %590 = vector.broadcast %589 : vector<16x1xf32> to vector<16x16xf32>
    %591 = arith.subf %587, %590 : vector<16x16xf32>
    %592 = math.exp %591 : vector<16x16xf32>
    %cst_259 = arith.constant dense<0.000000e+00> : vector<16xf32>
    %593 = vector.multi_reduction <add>, %592, %cst_259 [1] : vector<16x16xf32> to vector<16xf32>
    %594 = vector.shape_cast %593 : vector<16xf32> to vector<16x1xf32>
    %595 = tpu.reciprocal %594 {approx = true} : vector<16x1xf32> -> vector<16x1xf32>
    %596 = vector.broadcast %595 : vector<16x1xf32> to vector<16x16xf32>
    %597 = arith.mulf %592, %596 : vector<16x16xf32>
    %cst_260 = arith.constant dense<0.000000e+00> : vector<16x8xf32>
    %598 = tpu.matmul %597, %583, %cst_260 {dimension_numbers = #tpu.dot_dimension_numbers<[1], [0], [0], [1], [0, 0, 1, 1], [], []>} : vector<16x16xf32>, vector<16x8xf32>, vector<16x8xf32> -> vector<16x8xf32>
    %599 = vector.extract_strided_slice %516 {offsets = [24, 0], sizes = [8, 32], strides = [1, 1]} : vector<32x32xf32> to vector<8x32xf32>
    %cst_261 = arith.constant dense<0.000000e+00> : vector<16x32xf32>
    %600 = tpu.matmul %598, %599, %cst_261 {dimension_numbers = #tpu.dot_dimension_numbers<[1], [0], [0], [1], [0, 0, 1, 1], [], []>} : vector<16x8xf32>, vector<8x32xf32>, vector<16x32xf32> -> vector<16x32xf32>
    %601 = arith.addf %580, %600 : vector<16x32xf32>
    %c3_262 = arith.constant 3 : index
    %c0_263 = arith.constant 0 : index
    %c0_264 = arith.constant 0 : index
    %602 = vector.load %arg6[%c3_262, %c0_263, %c0_264] : memref<4x1x32xf32, #tpu.memory_space<vmem>>, vector<1x1x32xf32>
    %603 = vector.shape_cast %602 : vector<1x1x32xf32> to vector<1x32xf32>
    %604 = vector.broadcast %603 : vector<1x32xf32> to vector<16x32xf32>
    %605 = arith.addf %601, %604 : vector<16x32xf32>
    %606 = arith.addf %507, %605 : vector<16x32xf32>
    %c3_265 = arith.constant 3 : index
    %c0_266 = arith.constant 0 : index
    %c0_267 = arith.constant 0 : index
    %607 = vector.load %arg7[%c3_265, %c0_266, %c0_267] : memref<4x1x32xf32, #tpu.memory_space<vmem>>, vector<1x1x32xf32>
    %608 = vector.shape_cast %607 : vector<1x1x32xf32> to vector<1x32xf32>
    %c3_268 = arith.constant 3 : index
    %c0_269 = arith.constant 0 : index
    %c0_270 = arith.constant 0 : index
    %609 = vector.load %arg8[%c3_268, %c0_269, %c0_270] : memref<4x1x32xf32, #tpu.memory_space<vmem>>, vector<1x1x32xf32>
    %610 = vector.shape_cast %609 : vector<1x1x32xf32> to vector<1x32xf32>
    %cst_271 = arith.constant dense<0.000000e+00> : vector<16xf32>
    %611 = vector.multi_reduction <add>, %606, %cst_271 [1] : vector<16x32xf32> to vector<16xf32>
    %612 = vector.shape_cast %611 : vector<16xf32> to vector<16x1xf32>
    %cst_272 = arith.constant 3.200000e+01 : f32
    %613 = vector.broadcast %cst_272 : f32 to vector<16x1xf32>
    %614 = arith.divf %612, %613 : vector<16x1xf32>
    %615 = vector.broadcast %614 : vector<16x1xf32> to vector<16x32xf32>
    %616 = arith.subf %606, %615 : vector<16x32xf32>
    %617 = arith.mulf %616, %616 : vector<16x32xf32>
    %cst_273 = arith.constant dense<0.000000e+00> : vector<16xf32>
    %618 = vector.multi_reduction <add>, %617, %cst_273 [1] : vector<16x32xf32> to vector<16xf32>
    %619 = vector.shape_cast %618 : vector<16xf32> to vector<16x1xf32>
    %cst_274 = arith.constant 3.200000e+01 : f32
    %620 = vector.broadcast %cst_274 : f32 to vector<16x1xf32>
    %621 = arith.divf %619, %620 : vector<16x1xf32>
    %622 = vector.broadcast %614 : vector<16x1xf32> to vector<16x32xf32>
    %623 = arith.subf %606, %622 : vector<16x32xf32>
    %cst_275 = arith.constant 9.99999974E-6 : f32
    %624 = vector.broadcast %cst_275 : f32 to vector<16x1xf32>
    %625 = arith.addf %621, %624 : vector<16x1xf32>
    %626 = math.rsqrt %625 : vector<16x1xf32>
    %627 = vector.broadcast %626 : vector<16x1xf32> to vector<16x32xf32>
    %628 = arith.mulf %623, %627 : vector<16x32xf32>
    %629 = vector.broadcast %608 : vector<1x32xf32> to vector<16x32xf32>
    %630 = arith.mulf %628, %629 : vector<16x32xf32>
    %631 = vector.broadcast %610 : vector<1x32xf32> to vector<16x32xf32>
    %632 = arith.addf %630, %631 : vector<16x32xf32>
    %c3_276 = arith.constant 3 : index
    %c0_277 = arith.constant 0 : index
    %c0_278 = arith.constant 0 : index
    %633 = vector.load %arg9[%c3_276, %c0_277, %c0_278] : memref<4x32x512xf32, #tpu.memory_space<vmem>>, vector<1x32x512xf32>
    %634 = vector.shape_cast %633 : vector<1x32x512xf32> to vector<32x512xf32>
    %cst_279 = arith.constant dense<0.000000e+00> : vector<16x512xf32>
    %635 = tpu.matmul %632, %634, %cst_279 {dimension_numbers = #tpu.dot_dimension_numbers<[1], [0], [0], [1], [0, 0, 1, 1], [], []>} : vector<16x32xf32>, vector<32x512xf32>, vector<16x512xf32> -> vector<16x512xf32>
    %c3_280 = arith.constant 3 : index
    %c0_281 = arith.constant 0 : index
    %c0_282 = arith.constant 0 : index
    %636 = vector.load %arg10[%c3_280, %c0_281, %c0_282] : memref<4x1x512xf32, #tpu.memory_space<vmem>>, vector<1x1x512xf32>
    %637 = vector.shape_cast %636 : vector<1x1x512xf32> to vector<1x512xf32>
    %638 = vector.broadcast %637 : vector<1x512xf32> to vector<16x512xf32>
    %639 = arith.addf %635, %638 : vector<16x512xf32>
    %cst_283 = arith.constant 0.000000e+00 : f32
    %640 = vector.broadcast %cst_283 : f32 to vector<16x512xf32>
    %641 = arith.maximumf %639, %640 : vector<16x512xf32>
    %c3_284 = arith.constant 3 : index
    %c0_285 = arith.constant 0 : index
    %c0_286 = arith.constant 0 : index
    %642 = vector.load %arg11[%c3_284, %c0_285, %c0_286] : memref<4x512x32xf32, #tpu.memory_space<vmem>>, vector<1x512x32xf32>
    %643 = vector.shape_cast %642 : vector<1x512x32xf32> to vector<512x32xf32>
    %cst_287 = arith.constant dense<0.000000e+00> : vector<16x32xf32>
    %644 = tpu.matmul %641, %643, %cst_287 {dimension_numbers = #tpu.dot_dimension_numbers<[1], [0], [0], [1], [0, 0, 1, 1], [], []>} : vector<16x512xf32>, vector<512x32xf32>, vector<16x32xf32> -> vector<16x32xf32>
    %c3_288 = arith.constant 3 : index
    %c0_289 = arith.constant 0 : index
    %c0_290 = arith.constant 0 : index
    %645 = vector.load %arg12[%c3_288, %c0_289, %c0_290] : memref<4x1x32xf32, #tpu.memory_space<vmem>>, vector<1x1x32xf32>
    %646 = vector.shape_cast %645 : vector<1x1x32xf32> to vector<1x32xf32>
    %647 = vector.broadcast %646 : vector<1x32xf32> to vector<16x32xf32>
    %648 = arith.addf %644, %647 : vector<16x32xf32>
    %649 = arith.addf %632, %648 : vector<16x32xf32>
    %c3_291 = arith.constant 3 : index
    %c0_292 = arith.constant 0 : index
    %c0_293 = arith.constant 0 : index
    %650 = vector.load %arg13[%c3_291, %c0_292, %c0_293] : memref<4x1x32xf32, #tpu.memory_space<vmem>>, vector<1x1x32xf32>
    %651 = vector.shape_cast %650 : vector<1x1x32xf32> to vector<1x32xf32>
    %c3_294 = arith.constant 3 : index
    %c0_295 = arith.constant 0 : index
    %c0_296 = arith.constant 0 : index
    %652 = vector.load %arg14[%c3_294, %c0_295, %c0_296] : memref<4x1x32xf32, #tpu.memory_space<vmem>>, vector<1x1x32xf32>
    %653 = vector.shape_cast %652 : vector<1x1x32xf32> to vector<1x32xf32>
    %cst_297 = arith.constant dense<0.000000e+00> : vector<16xf32>
    %654 = vector.multi_reduction <add>, %649, %cst_297 [1] : vector<16x32xf32> to vector<16xf32>
    %655 = vector.shape_cast %654 : vector<16xf32> to vector<16x1xf32>
    %cst_298 = arith.constant 3.200000e+01 : f32
    %656 = vector.broadcast %cst_298 : f32 to vector<16x1xf32>
    %657 = arith.divf %655, %656 : vector<16x1xf32>
    %658 = vector.broadcast %657 : vector<16x1xf32> to vector<16x32xf32>
    %659 = arith.subf %649, %658 : vector<16x32xf32>
    %660 = arith.mulf %659, %659 : vector<16x32xf32>
    %cst_299 = arith.constant dense<0.000000e+00> : vector<16xf32>
    %661 = vector.multi_reduction <add>, %660, %cst_299 [1] : vector<16x32xf32> to vector<16xf32>
    %662 = vector.shape_cast %661 : vector<16xf32> to vector<16x1xf32>
    %cst_300 = arith.constant 3.200000e+01 : f32
    %663 = vector.broadcast %cst_300 : f32 to vector<16x1xf32>
    %664 = arith.divf %662, %663 : vector<16x1xf32>
    %665 = vector.broadcast %657 : vector<16x1xf32> to vector<16x32xf32>
    %666 = arith.subf %649, %665 : vector<16x32xf32>
    %cst_301 = arith.constant 9.99999974E-6 : f32
    %667 = vector.broadcast %cst_301 : f32 to vector<16x1xf32>
    %668 = arith.addf %664, %667 : vector<16x1xf32>
    %669 = math.rsqrt %668 : vector<16x1xf32>
    %670 = vector.broadcast %669 : vector<16x1xf32> to vector<16x32xf32>
    %671 = arith.mulf %666, %670 : vector<16x32xf32>
    %672 = vector.broadcast %651 : vector<1x32xf32> to vector<16x32xf32>
    %673 = arith.mulf %671, %672 : vector<16x32xf32>
    %674 = vector.broadcast %653 : vector<1x32xf32> to vector<16x32xf32>
    %675 = arith.addf %673, %674 : vector<16x32xf32>
    %c0_302 = arith.constant 0 : index
    %c0_303 = arith.constant 0 : index
    %676 = vector.load %arg15[%c0_302, %c0_303] : memref<32x128xf32, #tpu.memory_space<vmem>>, vector<32x128xf32>
    %cst_304 = arith.constant dense<0.000000e+00> : vector<16x128xf32>
    %677 = tpu.matmul %675, %676, %cst_304 {dimension_numbers = #tpu.dot_dimension_numbers<[1], [0], [0], [1], [0, 0, 1, 1], [], []>} : vector<16x32xf32>, vector<32x128xf32>, vector<16x128xf32> -> vector<16x128xf32>
    %c0_305 = arith.constant 0 : index
    %c0_306 = arith.constant 0 : index
    %678 = vector.load %arg16[%c0_305, %c0_306] : memref<1x128xf32, #tpu.memory_space<vmem>>, vector<1x128xf32>
    %679 = vector.broadcast %678 : vector<1x128xf32> to vector<16x128xf32>
    %680 = arith.addf %677, %679 : vector<16x128xf32>
    %c0_307 = arith.constant 0 : index
    %c0_308 = arith.constant 0 : index
    %681 = vector.load %arg17[%c0_307, %c0_308] : memref<16x128xf32, #tpu.memory_space<vmem>>, vector<16x128xf32>
    tpu.vector_store %arg17[%c0_307, %c0_308], %680 {strides = array<i32>} : memref<16x128xf32, #tpu.memory_space<vmem>>, vector<16x128xf32>,
    return
  }
}

</mosaic_0001>

<bundles_post_ra>
// kernel: eq.1
= control target key start
LH: loop header
LB: loop body
LE: loop exit
PB: predicated region body
PF: predicated region fallthrough
CT: control target
= control target key end

     0   :  { %vm7_vm0 = vcmask 64512   ;;  %vm13_vm1 = vcmask 130112   ;;  %s39_s0 = inlined_call_operand.vmem [shape: s32[2,8], index: 0, kind: input, shape index: {}]   ;;  %s40_s1 = inlined_call_operand.vmem [shape: s32[16], index: 1, kind: output, shape index: {}]  }
   0x1   :  { %v4_v0 = vld [vmem:[%s39_s0] sm:$0x3]  ;;  %s22_s0 = smov 8  }
   0x2   :  { %5 = vst [vmem:[#allocation1] sm:$0x3] %v4_v0 }
   0x9   :  { %v10_v1 = vld [vmem:[#allocation1 + $0x1] sm:$0x1]   ;;  %v6_v2 = vld [vmem:[#allocation1] sm:$0x1]  }
   0xa   :  { %11 = vrot.lane.b32.xlu0 %v10_v1, %s22_s0  ;;  %8 = vst.msk [vmem:[#allocation0] sm:$0x1] %vm7_vm0, %v6_v2  }
  0x7c   :  { %v12_v3 = vpop.permute.xlu0 %11  }
  0x7d   :  { %14 = vst.msk [vmem:[#allocation0] sm:$0x1] %vm13_vm1, %v12_v3  }
  0x84   :  { %v17_v4 = vld [vmem:[#allocation0] sm:$0x1] }
  0x85   :  { %20 = vst [vmem:[%s40_s1] sm:$0x1] %v17_v4 }

// kernel: forward.1
= control target key start
LH: loop header
LB: loop body
LE: loop exit
PB: predicated region body
PF: predicated region fallthrough
CT: control target
= control target key end

     0   :  { %vm62_vm0 = vcmask 130048   ;;  %vm100_vm1 = vcmask 261120   ;;  %s6846_s29 = smov 96   ;;  %vm140_vm2 = vcmask 64512   ;;  %s6836_s20 = smov 72   ;;  %s6806_s1 = inlined_call_operand.vmem [shape: f32[16,32], index: 1, kind: input, shape index: {}]   ;;  %s6807_s0 = inlined_call_operand.vmem [shape: f32[16,16], index: 0, kind: input, shape index: {}]   ;;  %s6808_s3 = inlined_call_operand.vmem [shape: f32[4,32,96], index: 3, kind: input, shape index: {}]   ;;  %s6809_s4 = inlined_call_operand.vmem [shape: f32[4,1,96], index: 4, kind: input, shape index: {}]   ;;  %s6810_s2 = inlined_call_operand.vmem [shape: f32[16,16], index: 2, kind: input, shape index: {}]   ;;  %s6811_s5 = inlined_call_operand.vmem [shape: f32[4,32,32], index: 5, kind: input, shape index: {}]   ;;  %s6812_s6 = inlined_call_operand.vmem [shape: f32[4,1,32], index: 6, kind: input, shape index: {}]   ;;  %s6813_s7 = inlined_call_operand.vmem [shape: f32[4,1,32], index: 7, kind: input, shape index: {}]   ;;  %s6814_s8 = inlined_call_operand.vmem [shape: f32[4,1,32], index: 8, kind: input, shape index: {}]   ;;  %s6815_s9 = inlined_call_operand.vmem [shape: f32[4,32,512], index: 9, kind: input, shape index: {}]   ;;  %s6816_s11 = inlined_call_operand.vmem [shape: f32[4,512,32], index: 11, kind: input, shape index: {}]   ;;  %s6817_s12 = inlined_call_operand.vmem [shape: f32[4,1,32], index: 12, kind: input, shape index: {}]   ;;  %s6818_s10 = inlined_call_operand.vmem [shape: f32[4,1,512], index: 10, kind: input, shape index: {}]   ;;  %s6819_s13 = inlined_call_operand.vmem [shape: f32[4,1,32], index: 13, kind: input, shape index: {}]   ;;  %s6820_s14 = inlined_call_operand.vmem [shape: f32[4,1,32], index: 14, kind: input, shape index: {}]   ;;  %s6821_s16 = inlined_call_operand.vmem [shape: f32[1,128], index: 16, kind: input, shape index: {}]   ;;  %s6822_s15 = inlined_call_operand.vmem [shape: f32[32,128], index: 15, kind: input, shape index: {}]   ;;  %s6823_s17 = inlined_call_operand.vmem [shape: f32[16,128], index: 17, kind: output, shape index: {}]  }
   0x1   :  { %6853 = sst [smem:[#allocation2_spill]] %s6806_s1  ;;  %v95_v4 = vld [vmem:[%s6808_s3 + $0x18] sm:$0xff]  ;;  %v94_v5 = vld [vmem:[%s6808_s3 + $0x10] sm:$0xff]  ;;  %v93_v6 = vld [vmem:[%s6808_s3 + $0x8] sm:$0xff]  ;;  %s6838_s21 = smov 80  }
   0x2   :  { %6854 = sst [smem:[#allocation3_spill]] %s6807_s0  ;;  %v92_v7 = vld [vmem:[%s6808_s3] sm:$0xff]  ;;  %v4980_v23 = vld [vmem:[%s6810_s2 + $0x8] sm:$0xff]  ;;  %s6842_s0 = smov 88  }
   0x3   :  { %6855 = sst [smem:[#allocation4_spill]] %s6812_s6  ;;  %v4628_v11 = vld [vmem:[%s6809_s4] ss:$0 sm:$0xff]  ;;  %s6834_s22 = smov 104  }
   0x4   :  { %6856 = sst [smem:[#allocation5_spill]] %s6821_s16  ;;  %v4973_v18 = vld [vmem:[%s6810_s2] sm:$0xff]  ;;  %s6844_s23 = smov 64  }
   0x5   :  { %6857 = sst [smem:[#allocation6_spill]] %s6822_s15  ;;  %s6840_s24 = smov 120   ;;  %v130_v47 = vld [vmem:[%s6811_s5] sm:$0xff] }
   0x6   :  { %6858 = sst [smem:[#allocation7_spill]] %s6823_s17  ;;  %s6832_s25 = smov 112  }
   0x7   :  { %s6859_s26 = sld [smem:[#allocation2_spill]]  ;;  %s6830_s28 = smov 56  }
   0x8   :  { %s6860_s30 = sld [smem:[#allocation3_spill]]  ;;  %s6826_s1 = smov 40  }
   0x9   :  { %s6862_s27 = smov 104   ;;  %s6864_s19 = smov 56  }
   0xa   :  { %s6868_s18 = smov 64  }
   0xd   :  { %v61_v0 = vld [vmem:[%s6859_s26 + $0x8] sm:$0xff]  ;;  %v60_v1 = vld [vmem:[%s6859_s26] sm:$0xff]  ;;  %s6861_s26 = smov 72  }
   0xe   :  { %83 = vmatpush.msra.mxu0 %v61_v0  ;;  %v58_v2 = vld [vmem:[%s6860_s30] sm:$0xff]  ;;  %4532 = vmatpush.msra.mxu1 %v61_v0  ;;  %v59_v3 = vld [vmem:[%s6860_s30 + $0x8] sm:$0xff]  ;;  %s6828_s30 = smov 48  }
  0x10   :  { %84 = vmatpush.msra.mxu0 %v60_v1  ;;  %4533 = vmatpush.msra.mxu1 %v60_v1 }
  0x11   :  { %4072 = vmatmul.msk.f32.vlgmr.msra.gmra.mxu0 %vm62_vm0, %v58_v2  ;;  %4073 = vmatmul.msk.f32.vlgmr.msra.gmra.mxu1 %vm62_vm0, %v59_v3 }
  0x12   :  { %119 = vmatpush.msrb.mxu1 %v95_v4 }
  0x14   :  { %120 = vmatpush.msrb.mxu1 %v94_v5 }
  0x16   :  { %121 = vmatpush.msrb.mxu1 %v93_v6 }
  0x18   :  { %122 = vmatpush.msrb.mxu1 %v92_v7 }
  0x8e   :  { %v4953_v8 = vpop.f32.mrf.mxu0  ;;  %v4957_v9 = vpop.f32.mrf.mxu1 }
  0x8f   :  { %4074 = vmatmul.msk.f32.vlgmr.msrb.gmra.mxu1 %vm100_vm1, %v4953_v8 }
  0x97   :  { %4075 = vmatmul.msk.f32.gmra.mxu1 %vm100_vm1, %v4957_v9 }
 0x10c   :  { %v124_v10 = vpop.f32.mrf.mxu1 }
 0x10d   :  { %v125_v14 = vadd.f32 %v4628_v11, %v124_v10 }
 0x114   :  { %v127_v12 = vpop.f32.mrf.mxu1 }
 0x115   :  { %v128_v13 = vadd.f32 %v4628_v11, %v127_v12 }
 0x117   :  { %138 = vrot.lane.b32.xlu0 %v128_v13, %s6846_s29  ;;  %v4992_v38 = vpack.i.bf16 %v125_v14, %v128_v13 }
 0x11f   :  { %136 = vrot.lane.b32.xlu0 %v125_v14, %s6846_s29 }
 0x189   :  { %v139_v15 = vpop.permute.xlu0 %138 }
 0x18a   :  { %4076 = vmatpush.xpose.msk.msra.mxu2 %vm140_vm2, %v139_v15 }
 0x191   :  { %v137_v16 = vpop.permute.xlu0 %136 }
 0x192   :  { %4077 = vmatpush.xpose.msk.msra.mxu2 %vm140_vm2, %v137_v16 }
 0x195   :  { %4078 = vmatmul.msk.f32.vlgmr.msra.gmra.mxu2 %vm140_vm2, %v125_v14 }
 0x19d   :  { %4079 = vmatmul.msk.f32.gmra.mxu2 %vm140_vm2, %v128_v13 }
 0x218   :  { %v166_v17 = vpop.f32.mrf.mxu2 }
 0x219   :  { %v172_v19 = vmul.f32 0.35355338, %v166_v17 }
 0x21b   :  { %v174_v20 = vadd.f32 %v172_v19, %v4973_v18 }
 0x21d   :  { %v176_v21 = vsel %vm62_vm0, %v174_v20, -inf }
 0x21e   :  { %177 = vmax.xlane.f32.xlu1 %v176_v21 }
 0x220   :  { %v169_v22 = vpop.f32.mrf.mxu2 }
 0x221   :  { %v173_v24 = vmul.f32 0.35355338, %v169_v22 }
 0x223   :  { %v175_v25 = vadd.f32 %v173_v24, %v4980_v23 }
 0x225   :  { %v179_v26 = vsel %vm62_vm0, %v175_v25, -inf }
 0x226   :  { %180 = vmax.xlane.f32.xlu1 %v179_v26 }
 0x23f   :  { %239 = vrot.lane.b32.xlu1 %v128_v13, %s6842_s0 }
 0x247   :  { %528 = vrot.lane.b32.xlu1 %v128_v13, %s6836_s20 }
 0x24f   :  { %397 = vrot.lane.b32.xlu1 %v128_v13, %s6838_s21 }
 0x257   :  { %522 = vrot.lane.b32.xlu1 %v125_v14, %s6834_s22 }
 0x25f   :  { %524 = vrot.lane.b32.xlu1 %v128_v13, %s6834_s22  ;;  %s6867_s22 = smov 96  }
 0x291   :  { %v178_v27 = vpop.xlane.xlu1 %177 }
 0x292   :  { %v182_v28 = vsub.f32 %v174_v20, %v178_v27 }
 0x294   :  { %v184_v29 = vmul.f32 1.442695, %v182_v28 }
 0x296   :  { %4657 = vpow2.f32 %v184_v29 }
 0x299   :  { %v181_v30 = vpop.xlane.xlu1 %180 }
 0x29a   :  { %v183_v31 = vsub.f32 %v175_v25, %v181_v30 }
 0x29c   :  { %v4658_v32 = vpop.eup %4657  ;;  %v186_v33 = vmul.f32 1.442695, %v183_v31 }
 0x29d   :  { %v188_v34 = vsel %vm62_vm0, %v4658_v32, 0.0 }
 0x29e   :  { %4659 = vpow2.f32 %v186_v33  ;;  %189 = vadd.xlane.f32.xlu2 %v188_v34 }
 0x2a4   :  { %v4660_v35 = vpop.eup %4659 }
 0x2a5   :  { %v191_v36 = vsel %vm62_vm0, %v4660_v35, 0.0 }
 0x2a6   :  { %192 = vadd.xlane.f32.xlu0 %v191_v36 }
 0x2b1   :  { %v240_v37 = vpop.permute.xlu1 %239 }
 0x2b2   :  { %4082 = vmatpush.xpose.msk.msrb.mxu0 %vm140_vm2, %v240_v37 }
 0x2b6   :  { %4549 = vrot.lane.b32.xlu2 %v4992_v38, %s6844_s23 }
 0x2b9   :  { %v529_v40 = vpop.permute.xlu1 %528 }
 0x2ba   :  { %395 = vrot.lane.b32.xlu0 %v125_v14, %s6838_s21 }
 0x2be   :  { %237 = vrot.lane.b32.xlu2 %v125_v14, %s6842_s0 }
 0x2c1   :  { %v398_v51 = vpop.permute.xlu1 %397 }
 0x2c6   :  { %233 = vrot.lane.b32.xlu2 %v125_v14, %s6840_s24 }
 0x2c9   :  { %v523_v1 = vpop.permute.xlu1 %522 }
 0x2ce   :  { %235 = vrot.lane.b32.xlu2 %v128_v13, %s6840_s24 }
 0x2d1   :  { %v525_v5 = vpop.permute.xlu1 %524 }
 0x2d6   :  { %526 = vrot.lane.b32.xlu2 %v125_v14, %s6836_s20  ;;  %s6863_s20 = smov 112  }
 0x2de   :  { %391 = vrot.lane.b32.xlu2 %v125_v14, %s6832_s25 }
 0x2e6   :  { %393 = vrot.lane.b32.xlu2 %v128_v13, %s6832_s25  ;;  %s6874_s25 = sld [smem:[#allocation4_spill]] }
 0x311   :  { %v190_v39 = vpop.xlane.xlu2 %189 }
 0x312   :  { %4661 = vrcp.f32 %v190_v39 }
 0x318   :  { %v4662_v43 = vpop.eup %4661 }
 0x319   :  { %v4550_v41 = vpop.permute.xlu2 %4549  ;;  %v193_v42 = vpop.xlane.xlu0 %192  ;;  %v196_v46 = vmul.f32 %v4662_v43, %v4658_v32 }
 0x31a   :  { %4663 = vrcp.f32 %v193_v42  ;;  %v4551_v44 = vunpack.i.l.bf16 %v4550_v41  ;;  %v4552_v45 = vunpack.i.h.bf16 %v4550_v41 }
 0x31c   :  { %224 = vmatpush.msrb.mxu2 %v4551_v44  ;;  %4534 = vmatpush.msra.mxu3 %v4551_v44 }
 0x31e   :  { %225 = vmatpush.msrb.mxu2 %v4552_v45  ;;  %4535 = vmatpush.msra.mxu3 %v4552_v45 }
 0x31f   :  { %4080 = vmatmul.msk.f32.vlgmr.msrb.gmra.mxu2 %vm62_vm0, %v196_v46 }
 0x320   :  { %v4664_v48 = vpop.eup %4663  ;;  %383 = vmatpush.msra.mxu2 %v130_v47 }
 0x321   :  { %v238_v49 = vpop.permute.xlu2 %237  ;;  %v197_v50 = vmul.f32 %v4664_v48, %v4660_v35 }
 0x322   :  { %4100 = vmatpush.xpose.msk.msrb.mxu2 %vm140_vm2, %v529_v40  ;;  %4083 = vmatpush.xpose.msk.msrb.mxu0 %vm140_vm2, %v238_v49 }
 0x323   :  { %4081 = vmatmul.msk.f32.vlgmr.msra.gmra.mxu3 %vm62_vm0, %v197_v50 }
 0x326   :  { %4092 = vmatpush.xpose.msk.msra.mxu0 %vm140_vm2, %v398_v51 }
 0x329   :  { %v234_v52 = vpop.permute.xlu2 %233 }
 0x32a   :  { %4084 = vmatmul.msk.f32.vlgmr.msrb.gmra.mxu0 %vm140_vm2, %v234_v52 }
 0x32c   :  { %v396_v53 = vpop.permute.xlu0 %395 }
 0x32d   :  { %4093 = vmatpush.xpose.msk.msra.mxu0 %vm140_vm2, %v396_v53 }
 0x331   :  { %v236_v54 = vpop.permute.xlu2 %235 }
 0x332   :  { %4085 = vmatmul.msk.f32.gmra.mxu0 %vm140_vm2, %v236_v54 }
 0x339   :  { %v527_v55 = vpop.permute.xlu2 %526 }
 0x33a   :  { %4101 = vmatpush.xpose.msk.msrb.mxu2 %vm140_vm2, %v527_v55 }
 0x341   :  { %v392_v56 = vpop.permute.xlu2 %391 }
 0x342   :  { %4094 = vmatmul.msk.f32.vlgmr.msra.gmra.mxu0 %vm140_vm2, %v392_v56 }
 0x349   :  { %v394_v57 = vpop.permute.xlu2 %393 }
 0x34a   :  { %4095 = vmatmul.msk.f32.gmra.mxu0 %vm140_vm2, %v394_v57 }
 0x3a2   :  { %v227_v58 = vpop.f32.mrf.mxu2 }
 0x3a3   :  { %4090 = vmatmul.msk.f32.vlgmr.msra.gmra.mxu2 %vm140_vm2, %v227_v58 }
 0x3a6   :  { %v230_v61 = vpop.f32.mrf.mxu3 }
 0x3a7   :  { %v266_v59 = vpop.f32.mrf.mxu0 }
 0x3a8   :  { %v272_v60 = vmul.f32 0.35355338, %v266_v59 }
 0x3aa   :  { %v274_v62 = vadd.f32 %v272_v60, %v4973_v18 }
 0x3ab   :  { %4091 = vmatmul.msk.f32.gmra.mxu2 %vm140_vm2, %v230_v61 }
 0x3ac   :  { %v276_v63 = vsel %vm62_vm0, %v274_v62, -inf }
 0x3ad   :  { %277 = vmax.xlane.f32.xlu1 %v276_v63 }
 0x3af   :  { %v269_v0 = vpop.f32.mrf.mxu0 }
 0x3b0   :  { %v273_v2 = vmul.f32 0.35355338, %v269_v0 }
 0x3b2   :  { %v275_v3 = vadd.f32 %v273_v2, %v4980_v23 }
 0x3b3   :  { %4102 = vmatmul.msk.f32.vlgmr.msrb.gmra.mxu2 %vm140_vm2, %v523_v1 }
 0x3b4   :  { %v279_v4 = vsel %vm62_vm0, %v275_v3, -inf }
 0x3b5   :  { %280 = vmax.xlane.f32.xlu0 %v279_v4 }
 0x3bb   :  { %4103 = vmatmul.msk.f32.gmra.mxu2 %vm140_vm2, %v525_v5 }
 0x3bf   :  { %v424_v6 = vpop.f32.mrf.mxu0 }
 0x3c0   :  { %v430_v7 = vmul.f32 0.35355338, %v424_v6 }
 0x3c2   :  { %v432_v10 = vadd.f32 %v430_v7, %v4973_v18 }
 0x3c4   :  { %v434_v11 = vsel %vm62_vm0, %v432_v10, -inf }
 0x3c5   :  { %435 = vmax.xlane.f32.xlu2 %v434_v11 }
 0x3c7   :  { %v427_v12 = vpop.f32.mrf.mxu0 }
 0x3c8   :  { %v431_v13 = vmul.f32 0.35355338, %v427_v12 }
 0x3ca   :  { %v433_v14 = vadd.f32 %v431_v13, %v4980_v23 }
 0x3cc   :  { %v437_v15 = vsel %vm62_vm0, %v433_v14, -inf }
 0x3cd   :  { %438 = vmax.xlane.f32.xlu0 %v437_v15  ;;  %v131_v15 = vld [vmem:[%s6811_s5 + $0x8] sm:$0xff] }
 0x3ce   :  { %354 = vmatpush.msra.mxu1 %v131_v15  ;;  %v725_v15 = vld [vmem:[%s6815_s9 + $0x8] sm:$0xff] }
 0x3e1   :  { %4554 = vrot.lane.b32.xlu0 %v4992_v38, %s6830_s28 }
 0x3e9   :  { %4564 = vrot.lane.b32.xlu0 %v4992_v38, %s6826_s1  ;;  %s6865_s1 = smov 48  }
 0x420   :  { %v278_v19 = vpop.xlane.xlu1 %277 }
 0x421   :  { %v282_v20 = vsub.f32 %v274_v62, %v278_v19 }
 0x423   :  { %v284_v21 = vmul.f32 1.442695, %v282_v20 }
 0x425   :  { %4665 = vpow2.f32 %v284_v21 }
 0x426   :  { %v5033_v16 = vpop.f32.mrf.mxu2 }
 0x428   :  { %v281_v22 = vpop.xlane.xlu0 %280 }
 0x429   :  { %v283_v27 = vsub.f32 %v275_v3, %v281_v22 }
 0x42b   :  { %v286_v31 = vmul.f32 1.442695, %v283_v27  ;;  %v4666_v35 = vpop.eup %4665 }
 0x42d   :  { %4667 = vpow2.f32 %v286_v31 }
 0x42e   :  { %v5035_v17 = vpop.f32.mrf.mxu2 }
 0x433   :  { %v4668_v42 = vpop.eup %4667 }
 0x434   :  { %v291_v44 = vsel %vm62_vm0, %v4668_v42, 0.0 }
 0x436   :  { %v555_v24 = vpop.f32.mrf.mxu2 }
 0x437   :  { %v561_v25 = vmul.f32 0.35355338, %v555_v24 }
 0x438   :  { %v436_v26 = vpop.xlane.xlu2 %435 }
 0x439   :  { %v563_v28 = vadd.f32 %v561_v25, %v4973_v18  ;;  %v440_v29 = vsub.f32 %v432_v10, %v436_v26  ;;  %v288_v18 = vsel %vm62_vm0, %v4666_v35, 0.0  ;;  %v132_v26 = vld [vmem:[%s6811_s5 + $0x10] sm:$0xff] }
 0x43a   :  { %512 = vmatpush.msrb.mxu1 %v132_v26  ;;  %v903_v26 = vld [vmem:[%s6816_s11 + $0x178] sm:$0xff] }
 0x43b   :  { %v565_v30 = vsel %vm62_vm0, %v563_v28, -inf  ;;  %v442_v32 = vmul.f32 1.442695, %v440_v29 }
 0x43c   :  { %566 = vmax.xlane.f32.xlu1 %v565_v30 }
 0x43d   :  { %4669 = vpow2.f32 %v442_v32 }
 0x43e   :  { %v558_v33 = vpop.f32.mrf.mxu2 }
 0x43f   :  { %v562_v34 = vmul.f32 0.35355338, %v558_v33 }
 0x440   :  { %v439_v36 = vpop.xlane.xlu0 %438 }
 0x441   :  { %v564_v37 = vadd.f32 %v562_v34, %v4980_v23  ;;  %v441_v39 = vsub.f32 %v433_v14, %v439_v36 }
 0x443   :  { %v568_v40 = vsel %vm62_vm0, %v564_v37, -inf  ;;  %v444_v41 = vmul.f32 1.442695, %v441_v39  ;;  %v4670_v43 = vpop.eup %4669 }
 0x444   :  { %569 = vmax.xlane.f32.xlu2 %v568_v40  ;;  %289 = vadd.xlane.f32.xlu1 %v288_v18  ;;  %v446_v45 = vsel %vm62_vm0, %v4670_v43, 0.0  ;;  %v4629_v40 = vld [vmem:[%s6812_s6] ss:$0 sm:$0xff] }
 0x445   :  { %4671 = vpow2.f32 %v444_v41 }
 0x44b   :  { %v4672_v46 = vpop.eup %4671 }
 0x44c   :  { %292 = vadd.xlane.f32.xlu2 %v291_v44  ;;  %447 = vadd.xlane.f32.xlu1 %v446_v45  ;;  %v449_v47 = vsel %vm62_vm0, %v4672_v46, 0.0 }
 0x453   :  { %v4555_v23 = vpop.permute.xlu0 %4554 }
 0x454   :  { %450 = vadd.xlane.f32.xlu2 %v449_v47  ;;  %v4556_v48 = vunpack.i.l.bf16 %v4555_v23  ;;  %v4557_v49 = vunpack.i.h.bf16 %v4555_v23 }
 0x456   :  { %324 = vmatpush.msrb.mxu3 %v4556_v48 }
 0x458   :  { %325 = vmatpush.msrb.mxu3 %v4557_v49 }
 0x45b   :  { %v4565_v50 = vpop.permute.xlu0 %4564 }
 0x45c   :  { %v4566_v51 = vunpack.i.l.bf16 %v4565_v50  ;;  %v4567_v52 = vunpack.i.h.bf16 %v4565_v50 }
 0x45e   :  { %613 = vmatpush.msrb.mxu0 %v4566_v51  ;;  %v4836_v51 = vmov 32.0  }
 0x460   :  { %614 = vmatpush.msrb.mxu0 %v4567_v52 }
 0x465   :  { %4559 = vrot.lane.b32.xlu1 %v4992_v38, %s6828_s30  ;;  %s6866_s30 = smov 40  }
 0x4af   :  { %v567_v53 = vpop.xlane.xlu1 %566 }
 0x4b0   :  { %v571_v54 = vsub.f32 %v563_v28, %v567_v53  ;;  %v133_v28 = vld [vmem:[%s6811_s5 + $0x18] sm:$0xff] }
 0x4b2   :  { %v573_v55 = vmul.f32 1.442695, %v571_v54 }
 0x4b4   :  { %4673 = vpow2.f32 %v573_v55 }
 0x4b7   :  { %v570_v56 = vpop.xlane.xlu2 %569  ;;  %v290_v57 = vpop.xlane.xlu1 %289 }
 0x4b8   :  { %v572_v58 = vsub.f32 %v564_v37, %v570_v56  ;;  %4675 = vrcp.f32 %v290_v57 }
 0x4ba   :  { %v4674_v59 = vpop.eup %4673  ;;  %v575_v60 = vmul.f32 1.442695, %v572_v58 }
 0x4bb   :  { %v577_v61 = vsel %vm62_vm0, %v4674_v59, 0.0 }
 0x4bc   :  { %4677 = vpow2.f32 %v575_v60  ;;  %578 = vadd.xlane.f32.xlu2 %v577_v61 }
 0x4be   :  { %v4676_v62 = vpop.eup %4675 }
 0x4bf   :  { %v293_v63 = vpop.xlane.xlu2 %292  ;;  %v296_v0 = vmul.f32 %v4676_v62, %v4666_v35  ;;  %v448_v4 = vpop.xlane.xlu1 %447 }
 0x4c0   :  { %4679 = vrcp.f32 %v293_v63 }
 0x4c1   :  { %4086 = vmatmul.msk.f32.vlgmr.msrb.gmra.mxu3 %vm62_vm0, %v296_v0  ;;  %4681 = vrcp.f32 %v448_v4  ;;  %v732_v4 = vld [vmem:[%s6815_s9 + $0x40] sm:$0xff] }
 0x4c2   :  { %v4678_v38 = vpop.eup %4677 }
 0x4c3   :  { %v580_v1 = vsel %vm62_vm0, %v4678_v38, 0.0 }
 0x4c4   :  { %581 = vadd.xlane.f32.xlu2 %v580_v1  ;;  %v737_v1 = vld [vmem:[%s6815_s9 + $0x68] sm:$0xff] }
 0x4c5   :  { %791 = vmatpush.msra.mxu2 %v737_v1  ;;  %v895_v1 = vld [vmem:[%s6816_s11 + $0x138] sm:$0xff] }
 0x4c6   :  { %v4680_v2 = vpop.eup %4679 }
 0x4c7   :  { %v297_v3 = vmul.f32 %v4680_v2, %v4668_v42  ;;  %v451_v5 = vpop.xlane.xlu2 %450  ;;  %v4682_v7 = vpop.eup %4681  ;;  %v738_v2 = vld [vmem:[%s6815_s9 + $0x70] sm:$0xff] }
 0x4c8   :  { %4683 = vrcp.f32 %v451_v5  ;;  %v454_v12 = vmul.f32 %v4682_v7, %v4670_v43  ;;  %814 = vmatpush.msra.mxu0 %v738_v2  ;;  %v733_v5 = vld [vmem:[%s6815_s9 + $0x48] sm:$0xff]  ;;  %v735_v7 = vld [vmem:[%s6815_s9 + $0x58] sm:$0xff]  ;;  %v880_v2 = vld [vmem:[%s6816_s11 + $0xc0] sm:$0xff] }
 0x4c9   :  { %4087 = vmatmul.msk.f32.gmra.mxu3 %vm62_vm0, %v297_v3  ;;  %v739_v3 = vld [vmem:[%s6815_s9 + $0x78] sm:$0xff]  ;;  %792 = vmatpush.msra.mxu2 %v733_v5 }
 0x4ce   :  { %v4684_v13 = vpop.eup %4683 }
 0x4cf   :  { %v455_v14 = vmul.f32 %v4684_v13, %v4672_v46  ;;  %v731_v13 = vld [vmem:[%s6815_s9 + $0x38] sm:$0xff] }
 0x4d7   :  { %v4560_v6 = vpop.permute.xlu1 %4559 }
 0x4d8   :  { %v4561_v10 = vunpack.i.l.bf16 %v4560_v6  ;;  %v4562_v11 = vunpack.i.h.bf16 %v4560_v6  ;;  %v734_v6 = vld [vmem:[%s6815_s9 + $0x50] sm:$0xff] }
 0x4d9   :  { %815 = vmatpush.msra.mxu0 %v734_v6  ;;  %v862_v6 = vld [vmem:[%s6816_s11 + $0x30] sm:$0xff] }
 0x4da   :  { %482 = vmatpush.msra.mxu3 %v4561_v10  ;;  %v728_v10 = vld [vmem:[%s6815_s9 + $0x20] sm:$0xff] }
 0x4dc   :  { %483 = vmatpush.msra.mxu3 %v4562_v11  ;;  %v729_v11 = vld [vmem:[%s6815_s9 + $0x28] sm:$0xff] }
 0x4dd   :  { %4096 = vmatmul.msk.f32.vlgmr.msra.gmra.mxu3 %vm62_vm0, %v454_v12  ;;  %v730_v12 = vld [vmem:[%s6815_s9 + $0x30] sm:$0xff]  ;;  %793 = vmatpush.msra.mxu2 %v729_v11  ;;  %v4631_v11 = vld [vmem:[%s6814_s8] ss:$0 sm:$0xff] }
 0x4de   :  { %643 = vmatpush.msrb.mxu3 %v133_v28  ;;  %816 = vmatpush.msra.mxu0 %v730_v12  ;;  %v902_v28 = vld [vmem:[%s6816_s11 + $0x170] sm:$0xff]  ;;  %v879_v12 = vld [vmem:[%s6816_s11 + $0xb8] sm:$0xff] }
 0x4df   :  { %794 = vmatpush.msra.mxu2 %v725_v15  ;;  %v861_v15 = vld [vmem:[%s6816_s11 + $0x28] sm:$0xff] }
 0x4e0   :  { %837 = vmatpush.msra.mxu3 %v739_v3  ;;  %v912_v3 = vld [vmem:[%s6816_s11 + $0x1c0] sm:$0xff] }
 0x4e2   :  { %838 = vmatpush.msra.mxu3 %v735_v7  ;;  %v894_v7 = vld [vmem:[%s6816_s11 + $0x130] sm:$0xff] }
 0x4e4   :  { %839 = vmatpush.msra.mxu3 %v731_v13  ;;  %v911_v13 = vld [vmem:[%s6816_s11 + $0x1b8] sm:$0xff] }
 0x4e5   :  { %4097 = vmatmul.msk.f32.gmra.mxu3 %vm62_vm0, %v455_v14  ;;  %v724_v14 = vld [vmem:[%s6815_s9] sm:$0xff] }
 0x52f   :  { %v579_v19 = vpop.xlane.xlu2 %578 }
 0x530   :  { %4685 = vrcp.f32 %v579_v19  ;;  %v726_v19 = vld [vmem:[%s6815_s9 + $0x10] sm:$0xff] }
 0x531   :  { %817 = vmatpush.msra.mxu0 %v726_v19 }
 0x536   :  { %v4686_v20 = vpop.eup %4685 }
 0x537   :  { %v585_v21 = vmul.f32 %v4686_v20, %v4674_v59  ;;  %v582_v22 = vpop.xlane.xlu2 %581  ;;  %v727_v20 = vld [vmem:[%s6815_s9 + $0x18] sm:$0xff] }
 0x538   :  { %4687 = vrcp.f32 %v582_v22  ;;  %840 = vmatpush.msra.mxu3 %v727_v20  ;;  %v878_v20 = vld [vmem:[%s6816_s11 + $0xb0] sm:$0xff] }
 0x539   :  { %4104 = vmatmul.msk.f32.vlgmr.msrb.gmra.mxu0 %vm62_vm0, %v585_v21  ;;  %4689 = vrcp.f32 %v4836_v51 }
 0x53a   :  { %970 = vmatpush.msrb.mxu0 %v903_v26  ;;  %v860_v26 = vld [vmem:[%s6816_s11 + $0x20] sm:$0xff] }
 0x53c   :  { %971 = vmatpush.msrb.mxu0 %v902_v28 }
 0x53e   :  { %v4688_v24 = vpop.eup %4687 }
 0x53f   :  { %v586_v25 = vmul.f32 %v4688_v24, %v4678_v38  ;;  %v4690_v52 = vpop.eup %4689  ;;  %v736_v38 = vld [vmem:[%s6815_s9 + $0x60] sm:$0xff] }
 0x540   :  { %v670_v53 = vmul.f32 32.0, %v4690_v52  ;;  %vm674_vm3 = vweird.f32 %v4690_v52 }
 0x541   :  { %4105 = vmatmul.msk.f32.gmra.mxu0 %vm62_vm0, %v586_v25  ;;  %v871_v25 = vld [vmem:[%s6816_s11 + $0x78] sm:$0xff] }
 0x542   :  { %v671_v54 = vsub.f32 1.0, %v670_v53  ;;  %v897_v53 = vld [vmem:[%s6816_s11 + $0x148] sm:$0xff] }
 0x544   :  { %v327_v27 = vpop.f32.mrf.mxu3 }
 0x545   :  { %4088 = vmatmul.msk.f32.vlgmr.msra.gmra.mxu1 %vm140_vm2, %v327_v27  ;;  %v870_v27 = vld [vmem:[%s6816_s11 + $0x70] sm:$0xff] }
 0x546   :  { %768 = vmatpush.msra.mxu1 %v736_v38  ;;  %v863_v38 = vld [vmem:[%s6816_s11 + $0x38] sm:$0xff] }
 0x548   :  { %769 = vmatpush.msra.mxu1 %v732_v4 }
 0x54a   :  { %770 = vmatpush.msra.mxu1 %v728_v10 }
 0x54c   :  { %v330_v29 = vpop.f32.mrf.mxu3  ;;  %771 = vmatpush.msra.mxu1 %v724_v14 }
 0x54d   :  { %4089 = vmatmul.msk.f32.gmra.mxu1 %vm140_vm2, %v330_v29 }
 0x560   :  { %v485_v30 = vpop.f32.mrf.mxu3 }
 0x561   :  { %4098 = vmatmul.msk.f32.vlgmr.msrb.gmra.mxu1 %vm140_vm2, %v485_v30  ;;  %v869_v30 = vld [vmem:[%s6816_s11 + $0x68] sm:$0xff] }
 0x562   :  { %924 = vmatpush.msrb.mxu1 %v871_v25 }
 0x564   :  { %925 = vmatpush.msrb.mxu1 %v870_v27  ;;  %v892_v27 = vld [vmem:[%s6816_s11 + $0x120] sm:$0xff] }
 0x566   :  { %926 = vmatpush.msrb.mxu1 %v869_v30  ;;  %v891_v30 = vld [vmem:[%s6816_s11 + $0x118] sm:$0xff] }
 0x568   :  { %v488_v31 = vpop.f32.mrf.mxu3 }
 0x569   :  { %4099 = vmatmul.msk.f32.gmra.mxu1 %vm140_vm2, %v488_v31  ;;  %v901_v31 = vld [vmem:[%s6816_s11 + $0x168] sm:$0xff] }
 0x56a   :  { %972 = vmatpush.msrb.mxu0 %v901_v31 }
 0x5b6   :  { %v616_v32 = vpop.f32.mrf.mxu0 }
 0x5b7   :  { %4106 = vmatmul.msk.f32.vlgmr.msrb.gmra.mxu3 %vm140_vm2, %v616_v32  ;;  %v887_v32 = vld [vmem:[%s6816_s11 + $0xf8] sm:$0xff] }
 0x5b8   :  { %947 = vmatpush.msrb.mxu2 %v887_v32 }
 0x5be   :  { %v619_v33 = vpop.f32.mrf.mxu0 }
 0x5bf   :  { %4107 = vmatmul.msk.f32.gmra.mxu3 %vm140_vm2, %v619_v33 }
 0x5c2   :  { %v356_v34 = vpop.f32.mrf.mxu1 }
 0x5c3   :  { %v386_v37 = vadd.f32 %v5033_v16, %v356_v34  ;;  %v919_v34 = vld [vmem:[%s6816_s11 + $0x1f8] sm:$0xff] }
 0x5c4   :  { %993 = vmatpush.msrb.mxu3 %v919_v34  ;;  %v877_v34 = vld [vmem:[%s6816_s11 + $0xa8] sm:$0xff] }
 0x5ca   :  { %v359_v35 = vpop.f32.mrf.mxu1 }
 0x5cb   :  { %v389_v44 = vadd.f32 %v5035_v17, %v359_v35  ;;  %v672_v17 = vmul.f32 %v4690_v52, %v671_v54  ;;  %v886_v35 = vld [vmem:[%s6816_s11 + $0xf0] sm:$0xff] }
 0x5cc   :  { %948 = vmatpush.msrb.mxu2 %v886_v35  ;;  %v882_v54 = vld [vmem:[%s6816_s11 + $0xd0] sm:$0xff] }
 0x5cd   :  { %v673_v55 = vadd.f32 %v4690_v52, %v672_v17  ;;  %v914_v17 = vld [vmem:[%s6816_s11 + $0x1d0] sm:$0xff] }
 0x5ce   :  { %v890_v35 = vld [vmem:[%s6816_s11 + $0x110] sm:$0xff] }
 0x5de   :  { %v514_v36 = vpop.f32.mrf.mxu1 }
 0x5df   :  { %v520_v39 = vadd.f32 %v514_v36, %v386_v37  ;;  %v868_v36 = vld [vmem:[%s6816_s11 + $0x60] sm:$0xff] }
 0x5e0   :  { %v900_v37 = vld [vmem:[%s6816_s11 + $0x160] sm:$0xff]  ;;  %927 = vmatpush.msrb.mxu1 %v868_v36  ;;  %v909_v36 = vld [vmem:[%s6816_s11 + $0x1a8] sm:$0xff] }
 0x5e1   :  { %973 = vmatpush.msrb.mxu0 %v900_v37  ;;  %v857_v37 = vld [vmem:[%s6816_s11 + $0x8] sm:$0xff] }
 0x5e6   :  { %v517_v43 = vpop.f32.mrf.mxu1 }
 0x5e7   :  { %v521_v46 = vadd.f32 %v517_v43, %v389_v44  ;;  %v867_v44 = vld [vmem:[%s6816_s11 + $0x58] sm:$0xff] }
 0x5e8   :  { %928 = vmatpush.msrb.mxu1 %v867_v44  ;;  %v907_v44 = vld [vmem:[%s6816_s11 + $0x198] sm:$0xff] }
 0x63a   :  { %v645_v18 = vpop.f32.mrf.mxu3 }
 0x63b   :  { %v651_v41 = vadd.f32 %v645_v18, %v520_v39  ;;  %v918_v39 = vld [vmem:[%s6816_s11 + $0x1f0] sm:$0xff] }
 0x63c   :  { %994 = vmatpush.msrb.mxu3 %v918_v39  ;;  %v876_v39 = vld [vmem:[%s6816_s11 + $0xa0] sm:$0xff] }
 0x63d   :  { %v657_v42 = vadd.f32 %v4629_v40, %v651_v41  ;;  %v885_v41 = vld [vmem:[%s6816_s11 + $0xe8] sm:$0xff] }
 0x63e   :  { %949 = vmatpush.msrb.mxu2 %v885_v41  ;;  %v856_v41 = vld [vmem:[%s6816_s11] sm:$0xff] }
 0x63f   :  { %v659_v45 = vadd.f32 %v657_v42, %v4953_v8  ;;  %v5079_v8 = vsel %vm674_vm3, %v4690_v52, %v673_v55  ;;  %v917_v42 = vld [vmem:[%s6816_s11 + $0x1e8] sm:$0xff] }
 0x640   :  { %995 = vmatpush.msrb.mxu3 %v917_v42  ;;  %v865_v52 = vld [vmem:[%s6816_s11 + $0x48] sm:$0xff]  ;;  %v875_v42 = vld [vmem:[%s6816_s11 + $0x98] sm:$0xff] }
 0x641   :  { %v663_v23 = vsel %vm100_vm1, %v659_v45, 0.0 }
 0x642   :  { %664 = vadd.xlane.f32.xlu0 %v663_v23  ;;  %v648_v47 = vpop.f32.mrf.mxu3  ;;  %v916_v23 = vld [vmem:[%s6816_s11 + $0x1e0] sm:$0xff] }
 0x643   :  { %v652_v48 = vadd.f32 %v648_v47, %v521_v46  ;;  %v884_v46 = vld [vmem:[%s6816_s11 + $0xe0] sm:$0xff]  ;;  %996 = vmatpush.msrb.mxu3 %v916_v23  ;;  %v873_v23 = vld [vmem:[%s6816_s11 + $0x88] sm:$0xff] }
 0x644   :  { %950 = vmatpush.msrb.mxu2 %v884_v46  ;;  %v906_v46 = vld [vmem:[%s6816_s11 + $0x190] sm:$0xff] }
 0x645   :  { %v658_v16 = vadd.f32 %v4629_v40, %v652_v48  ;;  %v866_v48 = vld [vmem:[%s6816_s11 + $0x50] sm:$0xff] }
 0x646   :  { %929 = vmatpush.msrb.mxu1 %v866_v48  ;;  %v872_v48 = vld [vmem:[%s6816_s11 + $0x80] sm:$0xff] }
 0x647   :  { %v660_v49 = vadd.f32 %v658_v16, %v4957_v9  ;;  %v898_v16 = vld [vmem:[%s6816_s11 + $0x150] sm:$0xff] }
 0x648   :  { %930 = vmatpush.msrb.mxu1 %v865_v52 }
 0x649   :  { %v666_v50 = vsel %vm100_vm1, %v660_v49, 0.0 }
 0x64a   :  { %667 = vadd.xlane.f32.xlu2 %v666_v50  ;;  %v915_v50 = vld [vmem:[%s6816_s11 + $0x1d8] sm:$0xff] }
 0x64b   :  { %997 = vmatpush.msrb.mxu3 %v915_v50 }
 0x64d   :  { %998 = vmatpush.msrb.mxu3 %v914_v17 }
 0x6b5   :  { %v665_v56 = vpop.xlane.xlu0 %664 }
 0x6b6   :  { %v676_v57 = vmul.f32 %v5079_v8, %v665_v56  ;;  %v864_v56 = vld [vmem:[%s6816_s11 + $0x40] sm:$0xff] }
 0x6b7   :  { %931 = vmatpush.msrb.mxu1 %v864_v56 }
 0x6b8   :  { %v5082_v58 = vsub.f32 %v659_v45, %v676_v57  ;;  %v899_v45 = vld [vmem:[%s6816_s11 + $0x158] sm:$0xff]  ;;  %v896_v57 = vld [vmem:[%s6816_s11 + $0x140] sm:$0xff] }
 0x6b9   :  { %974 = vmatpush.msrb.mxu0 %v899_v45  ;;  %932 = vmatpush.msrb.mxu1 %v863_v38  ;;  %v874_v45 = vld [vmem:[%s6816_s11 + $0x90] sm:$0xff] }
 0x6ba   :  { %v680_v9 = vmul.f32 %v5082_v58, %v5082_v58 }
 0x6bb   :  { %975 = vmatpush.msrb.mxu0 %v898_v16  ;;  %933 = vmatpush.msrb.mxu1 %v862_v6  ;;  %v904_v16 = vld [vmem:[%s6816_s11 + $0x180] sm:$0xff] }
 0x6bc   :  { %v682_v59 = vsel %vm100_vm1, %v680_v9, 0.0 }
 0x6bd   :  { %683 = vadd.xlane.f32.xlu1 %v682_v59  ;;  %v668_v60 = vpop.xlane.xlu2 %667  ;;  %976 = vmatpush.msrb.mxu0 %v897_v53  ;;  %v881_v59 = vld [vmem:[%s6816_s11 + $0xc8] sm:$0xff] }
 0x6be   :  { %v677_v61 = vmul.f32 %v5079_v8, %v668_v60  ;;  %v913_v60 = vld [vmem:[%s6816_s11 + $0x1c8] sm:$0xff]  ;;  %934 = vmatpush.msrb.mxu1 %v861_v15 }
 0x6bf   :  { %977 = vmatpush.msrb.mxu0 %v896_v57  ;;  %999 = vmatpush.msrb.mxu3 %v913_v60 }
 0x6c0   :  { %v5088_v62 = vsub.f32 %v660_v49, %v677_v61  ;;  %v883_v49 = vld [vmem:[%s6816_s11 + $0xd8] sm:$0xff]  ;;  %v4630_v61 = vld [vmem:[%s6813_s7] ss:$0 sm:$0xff]  ;;  %935 = vmatpush.msrb.mxu1 %v860_v26 }
 0x6c1   :  { %951 = vmatpush.msrb.mxu2 %v883_v49  ;;  %978 = vmatpush.msrb.mxu0 %v895_v1  ;;  %v740_v49 = vld [vmem:[%s6818_s10] sm:$0xf] }
 0x6c2   :  { %v681_v63 = vmul.f32 %v5088_v62, %v5088_v62  ;;  %1000 = vmatpush.msrb.mxu3 %v912_v3  ;;  %v742_v50 = vperm.slane %v740_v49, 0  ;;  %v743_v56 = vperm.slane %v740_v49, 1 }
 0x6c3   :  { %952 = vmatpush.msrb.mxu2 %v882_v54  ;;  %979 = vmatpush.msrb.mxu0 %v894_v7 }
 0x6c4   :  { %v685_v0 = vsel %vm100_vm1, %v681_v63, 0.0  ;;  %1001 = vmatpush.msrb.mxu3 %v911_v13 }
 0x6c5   :  { %686 = vadd.xlane.f32.xlu2 %v685_v0  ;;  %953 = vmatpush.msrb.mxu2 %v881_v59 }
 0x6c7   :  { %954 = vmatpush.msrb.mxu2 %v880_v2 }
 0x6c9   :  { %955 = vmatpush.msrb.mxu2 %v879_v12 }
 0x6cb   :  { %956 = vmatpush.msrb.mxu2 %v878_v20 }
 0x6cd   :  { %957 = vmatpush.msrb.mxu2 %v877_v34 }
 0x6cf   :  { %958 = vmatpush.msrb.mxu2 %v876_v39 }
 0x6d1   :  { %959 = vmatpush.msrb.mxu2 %v875_v42 }
 0x6d3   :  { %960 = vmatpush.msrb.mxu2 %v874_v45 }
 0x6d5   :  { %961 = vmatpush.msrb.mxu2 %v873_v23 }
 0x6d7   :  { %962 = vmatpush.msrb.mxu2 %v872_v48  ;;  %v4118_v48 = vld [vmem:[%s6808_s3 + $0x30] sm:$0xff] }
 0x730   :  { %v684_v21 = vpop.xlane.xlu1 %683 }
 0x731   :  { %v688_v22 = vmul.f32 %v684_v21, %v5079_v8  ;;  %v910_v21 = vld [vmem:[%s6816_s11 + $0x1b0] sm:$0xff] }
 0x732   :  { %1002 = vmatpush.msrb.mxu3 %v910_v21 }
 0x733   :  { %v5142_v24 = vadd.f32 1e-05, %v688_v22 }
 0x734   :  { %1003 = vmatpush.msrb.mxu3 %v909_v36 }
 0x735   :  { %4691 = vrsqrt.f32 %v5142_v24  ;;  %vm698_vm5 = vweird.f32 %v5142_v24 }
 0x738   :  { %v687_v29 = vpop.xlane.xlu2 %686 }
 0x739   :  { %v689_v33 = vmul.f32 %v687_v29, %v5079_v8  ;;  %v859_v29 = vld [vmem:[%s6816_s11 + $0x18] sm:$0xff] }
 0x73a   :  { %936 = vmatpush.msrb.mxu1 %v859_v29 }
 0x73b   :  { %v5182_v40 = vpop.eup %4691  ;;  %v5184_v18 = vadd.f32 1e-05, %v689_v33 }
 0x73c   :  { %v693_v43 = vmul.f32 %v5182_v40, %v5142_v24  ;;  %vm699_vm4 = vweird.f32 %v5182_v40 }
 0x73d   :  { %4693 = vrsqrt.f32 %v5184_v18  ;;  %vm700_vm6 = vmor %vm698_vm5, %vm699_vm4  ;;  %vm708_vm8 = vweird.f32 %v5184_v18 }
 0x73e   :  { %v694_v47 = vmul.f32 %v5182_v40, %v693_v43  ;;  %v888_v43 = vld [vmem:[%s6816_s11 + $0x100] sm:$0xff] }
 0x740   :  { %v695_v51 = vmul.f32 0.5, %v694_v47  ;;  %v905_v47 = vld [vmem:[%s6816_s11 + $0x188] sm:$0xff] }
 0x742   :  { %v696_v55 = vsub.f32 1.5, %v695_v51  ;;  %v744_v51 = vperm.slane %v740_v49, 2 }
 0x743   :  { %v4694_v9 = vpop.eup %4693 }
 0x744   :  { %v697_v63 = vmul.f32 %v5182_v40, %v696_v55  ;;  %v703_v0 = vmul.f32 %v4694_v9, %v5184_v18  ;;  %vm709_vm7 = vweird.f32 %v4694_v9  ;;  %v908_v18 = vld [vmem:[%s6816_s11 + $0x1a0] sm:$0xff] }
 0x745   :  { %vm710_vm9 = vmor %vm708_vm8, %vm709_vm7  ;;  %1004 = vmatpush.msrb.mxu3 %v908_v18 }
 0x746   :  { %v701_v4 = vsel %vm700_vm6, %v5182_v40, %v697_v63  ;;  %v704_v5 = vmul.f32 %v4694_v9, %v703_v0  ;;  %v889_v40 = vld [vmem:[%s6816_s11 + $0x108] sm:$0xff] }
 0x747   :  { %v712_v10 = vmul.f32 %v701_v4, %v5082_v58  ;;  %v893_v58 = vld [vmem:[%s6816_s11 + $0x128] sm:$0xff]  ;;  %1005 = vmatpush.msrb.mxu3 %v907_v44 }
 0x748   :  { %v705_v14 = vmul.f32 0.5, %v704_v5  ;;  %980 = vmatpush.msrb.mxu0 %v893_v58  ;;  %v4632_v58 = vld [vmem:[%s6817_s12] ss:$0 sm:$0xff] }
 0x749   :  { %v717_v19 = vmul.f32 %v4630_v61, %v712_v10  ;;  %1006 = vmatpush.msrb.mxu3 %v906_v46 }
 0x74a   :  { %v706_v22 = vsub.f32 1.5, %v705_v14  ;;  %981 = vmatpush.msrb.mxu0 %v892_v27 }
 0x74b   :  { %v5294_v24 = vadd.f32 %v4631_v11, %v717_v19  ;;  %1007 = vmatpush.msrb.mxu3 %v905_v47 }
 0x74c   :  { %v707_v25 = vmul.f32 %v4694_v9, %v706_v22  ;;  %982 = vmatpush.msrb.mxu0 %v891_v30 }
 0x74d   :  { %4108 = vmatmul.msk.f32.vlgmr.msra.gmra.mxu1 %vm100_vm1, %v5294_v24  ;;  %4110 = vmatmul.msk.f32.vlgmr.msra.gmra.mxu2 %vm100_vm1, %v5294_v24 }
 0x74e   :  { %v711_v28 = vsel %vm710_vm9, %v4694_v9, %v707_v25  ;;  %4112 = vmatmul.msk.f32.vlgmr.msra.gmra.mxu0 %vm100_vm1, %v5294_v24  ;;  %4114 = vmatmul.msk.f32.vlgmr.msra.gmra.mxu3 %vm100_vm1, %v5294_v24  ;;  %v745_v9 = vperm.slane %v740_v49, 3  ;;  %v4116_v49 = vld [vmem:[%s6808_s3 + $0x20] sm:$0xff] }
 0x74f   :  { %v713_v31 = vmul.f32 %v711_v28, %v5088_v62  ;;  %v858_v62 = vld [vmem:[%s6816_s11 + $0x10] sm:$0xff]  ;;  %983 = vmatpush.msrb.mxu0 %v890_v35  ;;  %1008 = vmatpush.msrb.mxu3 %v904_v16  ;;  %v4117_v16 = vld [vmem:[%s6808_s3 + $0x28] sm:$0xff] }
 0x750   :  { %937 = vmatpush.msrb.mxu1 %v858_v62 }
 0x751   :  { %v718_v32 = vmul.f32 %v4630_v61, %v713_v31  ;;  %984 = vmatpush.msrb.mxu0 %v889_v40 }
 0x752   :  { %938 = vmatpush.msrb.mxu1 %v857_v37 }
 0x753   :  { %v5318_v33 = vadd.f32 %v4631_v11, %v718_v32  ;;  %985 = vmatpush.msrb.mxu0 %v888_v43 }
 0x754   :  { %939 = vmatpush.msrb.mxu1 %v856_v41 }
 0x755   :  { %4109 = vmatmul.msk.f32.gmra.mxu1 %vm100_vm1, %v5318_v33  ;;  %4111 = vmatmul.msk.f32.gmra.mxu2 %vm100_vm1, %v5318_v33 }
 0x756   :  { %4113 = vmatmul.msk.f32.gmra.mxu0 %vm100_vm1, %v5318_v33  ;;  %4115 = vmatmul.msk.f32.gmra.mxu3 %vm100_vm1, %v5318_v33 }
 0x7ca   :  { %v773_v52 = vpop.f32.mrf.mxu1 }
 0x7cb   :  { %v774_v53 = vadd.f32 %v773_v52, %v742_v50  ;;  %v819_v54 = vpop.f32.mrf.mxu0 }
 0x7cc   :  { %v820_v17 = vadd.f32 %v819_v54, %v744_v51 }
 0x7cd   :  { %v848_v55 = vmax.f32 %v774_v53, 0.0 }
 0x7ce   :  { %v850_v57 = vmax.f32 %v820_v17, 0.0 }
 0x7cf   :  { %940 = vmatmul.f32.vlgmr.msrb.gmra.mxu1 %v848_v55 }
 0x7d0   :  { %986 = vmatmul.f32.vlgmr.msrb.gmra.mxu0 %v850_v57  ;;  %v796_v59 = vpop.f32.mrf.mxu2 }
 0x7d1   :  { %v797_v60 = vadd.f32 %v796_v59, %v743_v56  ;;  %v842_v61 = vpop.f32.mrf.mxu3 }
 0x7d2   :  { %v843_v63 = vadd.f32 %v842_v61, %v745_v9  ;;  %v776_v0 = vpop.f32.mrf.mxu1 }
 0x7d3   :  { %v849_v38 = vmax.f32 %v797_v60, 0.0  ;;  %v777_v1 = vadd.f32 %v776_v0, %v742_v50  ;;  %v822_v2 = vpop.f32.mrf.mxu0  ;;  %v4633_v0 = vld [vmem:[%s6819_s13] ss:$0 sm:$0xff] }
 0x7d4   :  { %v851_v3 = vmax.f32 %v843_v63, 0.0  ;;  %v823_v4 = vadd.f32 %v822_v2, %v744_v51 }
 0x7d5   :  { %963 = vmatmul.f32.vlgmr.msrb.gmra.mxu2 %v849_v38  ;;  %v852_v5 = vmax.f32 %v777_v1, 0.0 }
 0x7d6   :  { %1009 = vmatmul.f32.vlgmr.msrb.gmra.mxu3 %v851_v3  ;;  %v854_v6 = vmax.f32 %v823_v4, 0.0  ;;  %v4634_v3 = vld [vmem:[%s6820_s14] ss:$0 sm:$0xff] }
 0x7d7   :  { %943 = vmatmul.f32.gmra.mxu1 %v852_v5 }
 0x7d8   :  { %989 = vmatmul.f32.gmra.mxu0 %v854_v6  ;;  %v799_v7 = vpop.f32.mrf.mxu2 }
 0x7d9   :  { %v800_v10 = vadd.f32 %v799_v7, %v743_v56  ;;  %v845_v11 = vpop.f32.mrf.mxu3 }
 0x7da   :  { %v846_v12 = vadd.f32 %v845_v11, %v745_v9 }
 0x7db   :  { %v853_v13 = vmax.f32 %v800_v10, 0.0 }
 0x7dc   :  { %v855_v14 = vmax.f32 %v846_v12, 0.0 }
 0x7dd   :  { %966 = vmatmul.f32.gmra.mxu2 %v853_v13 }
 0x7de   :  { %1012 = vmatmul.f32.gmra.mxu3 %v855_v14 }
 0x84c   :  { %v941_v15 = vpop.f32.mrf.mxu1 }
 0x84d   :  { %v942_v19 = vadd.f32 %v4632_v58, %v941_v15  ;;  %v987_v20 = vpop.f32.mrf.mxu0  ;;  %v4635_v15 = vld [vmem:[%s6809_s4 + $0x1] ss:$0 sm:$0xff] }
 0x854   :  { %v944_v27 = vpop.f32.mrf.mxu1 }
 0x855   :  { %v945_v29 = vadd.f32 %v4632_v58, %v944_v27  ;;  %v990_v34 = vpop.f32.mrf.mxu0 }
 0x858   :  { %v964_v21 = vpop.f32.mrf.mxu2 }
 0x859   :  { %v965_v22 = vadd.f32 %v964_v21, %v942_v19  ;;  %v1010_v25 = vpop.f32.mrf.mxu3 }
 0x85b   :  { %v988_v26 = vadd.f32 %v987_v20, %v965_v22 }
 0x85d   :  { %v1011_v28 = vadd.f32 %v1010_v25, %v988_v26 }
 0x85f   :  { %v1016_v30 = vadd.f32 %v1011_v28, %v5294_v24 }
 0x860   :  { %v967_v31 = vpop.f32.mrf.mxu2 }
 0x861   :  { %v968_v32 = vadd.f32 %v967_v31, %v945_v29  ;;  %v1020_v62 = vsel %vm100_vm1, %v1016_v30, 0.0  ;;  %v1013_v36 = vpop.f32.mrf.mxu3 }
 0x862   :  { %1021 = vadd.xlane.f32.xlu2 %v1020_v62 }
 0x863   :  { %v991_v35 = vadd.f32 %v990_v34, %v968_v32  ;;  %v5446_v32 = vld [vmem:[%s6810_s2] sm:$0xff] }
 0x865   :  { %v1014_v37 = vadd.f32 %v1013_v36, %v991_v35 }
 0x867   :  { %v1017_v39 = vadd.f32 %v1014_v37, %v5318_v33  ;;  %v4119_v33 = vld [vmem:[%s6808_s3 + $0x38] sm:$0xff]  ;;  %v5453_v37 = vld [vmem:[%s6810_s2 + $0x8] sm:$0xff] }
 0x868   :  { %1102 = vmatpush.msra.mxu1 %v4119_v33 }
 0x869   :  { %v1023_v40 = vsel %vm100_vm1, %v1017_v39, 0.0 }
 0x86a   :  { %1024 = vadd.xlane.f32.xlu2 %v1023_v40  ;;  %1103 = vmatpush.msra.mxu1 %v4118_v48  ;;  %v4123_v48 = vld [vmem:[%s6811_s5 + $0x20] sm:$0xff] }
 0x86c   :  { %1104 = vmatpush.msra.mxu1 %v4117_v16 }
 0x86e   :  { %1105 = vmatpush.msra.mxu1 %v4116_v49 }
 0x8d5   :  { %v1022_v18 = vpop.xlane.xlu2 %1021 }
 0x8d6   :  { %v1026_v41 = vmul.f32 %v1022_v18, %v5079_v8 }
 0x8d8   :  { %v1028_v42 = vsub.f32 %v1016_v30, %v1026_v41 }
 0x8da   :  { %v1030_v43 = vmul.f32 %v1028_v42, %v1028_v42 }
 0x8dc   :  { %v1032_v24 = vsel %vm100_vm1, %v1030_v43, 0.0 }
 0x8dd   :  { %1033 = vadd.xlane.f32.xlu2 %v1032_v24  ;;  %v1025_v44 = vpop.xlane.xlu2 %1024 }
 0x8de   :  { %v1027_v45 = vmul.f32 %v1025_v44, %v5079_v8 }
 0x8e0   :  { %v1029_v46 = vsub.f32 %v1017_v39, %v1027_v45 }
 0x8e2   :  { %v1031_v23 = vmul.f32 %v1029_v46, %v1029_v46 }
 0x8e4   :  { %v1035_v47 = vsel %vm100_vm1, %v1031_v23, 0.0 }
 0x8e5   :  { %1036 = vadd.xlane.f32.xlu0 %v1035_v47 }
 0x950   :  { %v1034_v50 = vpop.xlane.xlu2 %1033 }
 0x951   :  { %v1038_v51 = vmul.f32 %v1034_v50, %v5079_v8 }
 0x953   :  { %v1040_v52 = vadd.f32 1e-05, %v1038_v51 }
 0x955   :  { %4695 = vrsqrt.f32 %v1040_v52  ;;  %vm1048_vm11 = vweird.f32 %v1040_v52 }
 0x958   :  { %v1037_v53 = vpop.xlane.xlu0 %1036 }
 0x959   :  { %v1039_v54 = vmul.f32 %v1037_v53, %v5079_v8 }
 0x95b   :  { %v4696_v17 = vpop.eup %4695  ;;  %v1041_v55 = vadd.f32 1e-05, %v1039_v54 }
 0x95c   :  { %v1043_v56 = vmul.f32 %v4696_v17, %v1040_v52  ;;  %vm1049_vm10 = vweird.f32 %v4696_v17 }
 0x95d   :  { %4697 = vrsqrt.f32 %v1041_v55  ;;  %vm1050_vm12 = vmor %vm1048_vm11, %vm1049_vm10  ;;  %vm1058_vm14 = vweird.f32 %v1041_v55 }
 0x95e   :  { %v1044_v57 = vmul.f32 %v4696_v17, %v1043_v56 }
 0x960   :  { %v1045_v9 = vmul.f32 0.5, %v1044_v57 }
 0x962   :  { %v1046_v59 = vsub.f32 1.5, %v1045_v9 }
 0x963   :  { %v4698_v60 = vpop.eup %4697 }
 0x964   :  { %v1047_v61 = vmul.f32 %v4696_v17, %v1046_v59  ;;  %v1053_v63 = vmul.f32 %v4698_v60, %v1041_v55  ;;  %vm1059_vm13 = vweird.f32 %v4698_v60 }
 0x965   :  { %vm1060_vm15 = vmor %vm1058_vm14, %vm1059_vm13 }
 0x966   :  { %v1051_v38 = vsel %vm1050_vm12, %v4696_v17, %v1047_v61  ;;  %v1054_v1 = vmul.f32 %v4698_v60, %v1053_v63 }
 0x967   :  { %v1062_v2 = vmul.f32 %v1051_v38, %v1028_v42 }
 0x968   :  { %v1055_v4 = vmul.f32 0.5, %v1054_v1 }
 0x969   :  { %v1067_v5 = vmul.f32 %v4633_v0, %v1062_v2 }
 0x96a   :  { %v1056_v6 = vsub.f32 1.5, %v1055_v4 }
 0x96b   :  { %v5416_v7 = vadd.f32 %v4634_v3, %v1067_v5 }
 0x96c   :  { %v1057_v10 = vmul.f32 %v4698_v60, %v1056_v6 }
 0x96d   :  { %4121 = vmatmul.msk.f32.vlgmr.msra.gmra.mxu1 %vm100_vm1, %v5416_v7 }
 0x96e   :  { %v1061_v11 = vsel %vm1060_vm15, %v4698_v60, %v1057_v10 }
 0x96f   :  { %v1063_v12 = vmul.f32 %v1061_v11, %v1029_v46 }
 0x971   :  { %v1068_v13 = vmul.f32 %v4633_v0, %v1063_v12 }
 0x973   :  { %v5420_v14 = vadd.f32 %v4634_v3, %v1068_v13 }
 0x975   :  { %4122 = vmatmul.msk.f32.gmra.mxu1 %vm100_vm1, %v5420_v14 }
 0x9ea   :  { %v1107_v58 = vpop.f32.mrf.mxu1 }
 0x9eb   :  { %v1108_v19 = vadd.f32 %v4635_v15, %v1107_v58 }
 0x9ed   :  { %1120 = vrot.lane.b32.xlu0 %v1108_v19, %s6846_s29 }
 0x9f2   :  { %v1110_v20 = vpop.f32.mrf.mxu1 }
 0x9f3   :  { %v1111_v21 = vadd.f32 %v4635_v15, %v1110_v20 }
 0x9f5   :  { %1122 = vrot.lane.b32.xlu2 %v1111_v21, %s6846_s29  ;;  %v5429_v22 = vpack.i.bf16 %v1108_v19, %v1111_v21 }
 0x9fd   :  { %4569 = vrot.lane.b32.xlu2 %v5429_v22, %s6844_s23 }
 0xa05   :  { %1220 = vrot.lane.b32.xlu2 %v1108_v19, %s6842_s0 }
 0xa0d   :  { %1216 = vrot.lane.b32.xlu2 %v1108_v19, %s6840_s24 }
 0xa15   :  { %1218 = vrot.lane.b32.xlu2 %v1111_v21, %s6840_s24  ;;  %s6870_s24 = smov 120  }
 0xa1d   :  { %1378 = vrot.lane.b32.xlu2 %v1108_v19, %s6838_s21 }
 0xa25   :  { %1511 = vrot.lane.b32.xlu2 %v1111_v21, %s6861_s26 }
 0xa2d   :  { %1505 = vrot.lane.b32.xlu2 %v1108_v19, %s6862_s27 }
 0xa4f   :  { %v1123_v25 = vpop.permute.xlu2 %1122 }
 0xa50   :  { %4127 = vmatpush.xpose.msk.msra.mxu2 %vm140_vm2, %v1123_v25 }
 0xa57   :  { %v4570_v26 = vpop.permute.xlu2 %4569 }
 0xa58   :  { %v4571_v27 = vunpack.i.l.bf16 %v4570_v26  ;;  %v4572_v28 = vunpack.i.h.bf16 %v4570_v26 }
 0xa5a   :  { %1207 = vmatpush.msra.mxu0 %v4571_v27 }
 0xa5c   :  { %1208 = vmatpush.msra.mxu0 %v4572_v28 }
 0xa5e   :  { %1366 = vmatpush.msrb.mxu0 %v4123_v48 }
 0xa5f   :  { %v1121_v29 = vpop.permute.xlu0 %1120  ;;  %v1221_v33 = vpop.permute.xlu2 %1220 }
 0xa60   :  { %4128 = vmatpush.xpose.msk.msra.mxu2 %vm140_vm2, %v1121_v29 }
 0xa63   :  { %4129 = vmatmul.msk.f32.vlgmr.msra.gmra.mxu2 %vm140_vm2, %v1108_v19 }
 0xa67   :  { %v1217_v16 = vpop.permute.xlu2 %1216 }
 0xa6b   :  { %4130 = vmatmul.msk.f32.gmra.mxu2 %vm140_vm2, %v1111_v21 }
 0xa6f   :  { %v1219_v49 = vpop.permute.xlu2 %1218 }
 0xa77   :  { %v1379_v50 = vpop.permute.xlu2 %1378 }
 0xa7f   :  { %v1512_v17 = vpop.permute.xlu2 %1511 }
 0xa87   :  { %v1506_v38 = vpop.permute.xlu2 %1505 }
 0xae6   :  { %v1149_v30 = vpop.f32.mrf.mxu2 }
 0xae7   :  { %v1155_v31 = vmul.f32 0.35355338, %v1149_v30 }
 0xae9   :  { %v1157_v62 = vadd.f32 %v5446_v32, %v1155_v31 }
 0xaeb   :  { %v1159_v34 = vsel %vm62_vm0, %v1157_v62, -inf }
 0xaec   :  { %1160 = vmax.xlane.f32.xlu1 %v1159_v34 }
 0xaee   :  { %v1152_v35 = vpop.f32.mrf.mxu2 }
 0xaef   :  { %v1156_v36 = vmul.f32 0.35355338, %v1152_v35 }
 0xaf1   :  { %v1158_v39 = vadd.f32 %v5453_v37, %v1156_v36 }
 0xaf3   :  { %v1162_v40 = vsel %vm62_vm0, %v1158_v39, -inf }
 0xaf4   :  { %1163 = vmax.xlane.f32.xlu1 %v1162_v40 }
 0xb5f   :  { %v1161_v18 = vpop.xlane.xlu1 %1160 }
 0xb60   :  { %v1165_v41 = vsub.f32 %v1157_v62, %v1161_v18 }
 0xb62   :  { %v1167_v42 = vmul.f32 1.442695, %v1165_v41 }
 0xb64   :  { %4699 = vpow2.f32 %v1167_v42 }
 0xb67   :  { %v1164_v43 = vpop.xlane.xlu1 %1163 }
 0xb68   :  { %v1166_v24 = vsub.f32 %v1158_v39, %v1164_v43 }
 0xb6a   :  { %v4700_v44 = vpop.eup %4699  ;;  %v1169_v45 = vmul.f32 1.442695, %v1166_v24 }
 0xb6b   :  { %v1171_v46 = vsel %vm62_vm0, %v4700_v44, 0.0 }
 0xb6c   :  { %4701 = vpow2.f32 %v1169_v45  ;;  %1172 = vadd.xlane.f32.xlu1 %v1171_v46 }
 0xb72   :  { %v4702_v23 = vpop.eup %4701 }
 0xb73   :  { %v1174_v47 = vsel %vm62_vm0, %v4702_v23, 0.0 }
 0xb74   :  { %1175 = vadd.xlane.f32.xlu0 %v1174_v47 }
 0xb85   :  { %1222 = vrot.lane.b32.xlu1 %v1111_v21, %s6842_s0  ;;  %s6871_s0 = smov 80  }
 0xb88   :  { %1509 = vrot.lane.b32.xlu0 %v1108_v19, %s6861_s26 }
 0xb8d   :  { %1380 = vrot.lane.b32.xlu1 %v1111_v21, %s6838_s21  ;;  %s6869_s21 = smov 88  }
 0xb95   :  { %1374 = vrot.lane.b32.xlu1 %v1108_v19, %s6863_s20 }
 0xb9d   :  { %1376 = vrot.lane.b32.xlu1 %v1111_v21, %s6863_s20 }
 0xba5   :  { %1507 = vrot.lane.b32.xlu1 %v1111_v21, %s6862_s27 }
 0xbdf   :  { %v1173_v51 = vpop.xlane.xlu1 %1172 }
 0xbe0   :  { %4703 = vrcp.f32 %v1173_v51 }
 0xbe6   :  { %v4704_v52 = vpop.eup %4703 }
 0xbe7   :  { %v1179_v53 = vmul.f32 %v4704_v52, %v4700_v44  ;;  %v1176_v54 = vpop.xlane.xlu0 %1175 }
 0xbe8   :  { %4705 = vrcp.f32 %v1176_v54 }
 0xbe9   :  { %4131 = vmatmul.msk.f32.vlgmr.msra.gmra.mxu0 %vm62_vm0, %v1179_v53 }
 0xbea   :  { %4151 = vmatpush.xpose.msk.msra.mxu0 %vm140_vm2, %v1512_v17 }
 0xbee   :  { %v4706_v55 = vpop.eup %4705 }
 0xbef   :  { %v1180_v56 = vmul.f32 %v4706_v55, %v4702_v23 }
 0xbf1   :  { %4132 = vmatmul.msk.f32.gmra.mxu0 %vm62_vm0, %v1180_v56 }
 0xbf7   :  { %v1223_v57 = vpop.permute.xlu1 %1222 }
 0xbf8   :  { %4133 = vmatpush.xpose.msk.msra.mxu3 %vm140_vm2, %v1223_v57 }
 0xbfa   :  { %v1510_v9 = vpop.permute.xlu0 %1509 }
 0xbfb   :  { %4152 = vmatpush.xpose.msk.msra.mxu0 %vm140_vm2, %v1510_v9 }
 0xbfc   :  { %4134 = vmatpush.xpose.msk.msra.mxu3 %vm140_vm2, %v1221_v33 }
 0xbff   :  { %4135 = vmatmul.msk.f32.vlgmr.msra.gmra.mxu3 %vm140_vm2, %v1217_v16  ;;  %v1381_v59 = vpop.permute.xlu1 %1380 }
 0xc00   :  { %4143 = vmatpush.xpose.msk.msrb.mxu3 %vm140_vm2, %v1381_v59 }
 0xc04   :  { %4144 = vmatpush.xpose.msk.msrb.mxu3 %vm140_vm2, %v1379_v50 }
 0xc07   :  { %4136 = vmatmul.msk.f32.gmra.mxu3 %vm140_vm2, %v1219_v49  ;;  %v1375_v60 = vpop.permute.xlu1 %1374 }
 0xc0f   :  { %4145 = vmatmul.msk.f32.vlgmr.msrb.gmra.mxu3 %vm140_vm2, %v1375_v60  ;;  %v1377_v61 = vpop.permute.xlu1 %1376 }
 0xc17   :  { %4146 = vmatmul.msk.f32.gmra.mxu3 %vm140_vm2, %v1377_v61  ;;  %v1508_v1 = vpop.permute.xlu1 %1507 }
 0xc66   :  { %v1210_v63 = vpop.f32.mrf.mxu0 }
 0xc67   :  { %4141 = vmatmul.msk.f32.vlgmr.msrb.gmra.mxu0 %vm140_vm2, %v1210_v63 }
 0xc6e   :  { %v1213_v0 = vpop.f32.mrf.mxu0 }
 0xc6f   :  { %4142 = vmatmul.msk.f32.gmra.mxu0 %vm140_vm2, %v1213_v0 }
 0xc77   :  { %4153 = vmatmul.msk.f32.vlgmr.msra.gmra.mxu0 %vm140_vm2, %v1506_v38 }
 0xc7f   :  { %4154 = vmatmul.msk.f32.gmra.mxu0 %vm140_vm2, %v1508_v1 }
 0xc82   :  { %v1249_v2 = vpop.f32.mrf.mxu3 }
 0xc83   :  { %v1255_v3 = vmul.f32 0.35355338, %v1249_v2 }
 0xc85   :  { %v1257_v4 = vadd.f32 %v5446_v32, %v1255_v3 }
 0xc87   :  { %v1259_v5 = vsel %vm62_vm0, %v1257_v4, -inf }
 0xc88   :  { %1260 = vmax.xlane.f32.xlu2 %v1259_v5 }
 0xc8a   :  { %v1252_v6 = vpop.f32.mrf.mxu3 }
 0xc8b   :  { %v1256_v10 = vmul.f32 0.35355338, %v1252_v6 }
 0xc8d   :  { %v1258_v11 = vadd.f32 %v5453_v37, %v1256_v10 }
 0xc8f   :  { %v1262_v12 = vsel %vm62_vm0, %v1258_v11, -inf }
 0xc90   :  { %1263 = vmax.xlane.f32.xlu1 %v1262_v12 }
 0xc92   :  { %v1407_v13 = vpop.f32.mrf.mxu3 }
 0xc93   :  { %v1413_v15 = vmul.f32 0.35355338, %v1407_v13 }
 0xc95   :  { %v1415_v58 = vadd.f32 %v5446_v32, %v1413_v15 }
 0xc97   :  { %v1417_v19 = vsel %vm62_vm0, %v1415_v58, -inf }
 0xc98   :  { %1418 = vmax.xlane.f32.xlu0 %v1417_v19 }
 0xc9a   :  { %v1410_v20 = vpop.f32.mrf.mxu3 }
 0xc9b   :  { %v1414_v21 = vmul.f32 0.35355338, %v1410_v20 }
 0xc9d   :  { %v1416_v25 = vadd.f32 %v5453_v37, %v1414_v21 }
 0xc9f   :  { %v1420_v26 = vsel %vm62_vm0, %v1416_v25, -inf }
 0xca0   :  { %1421 = vmax.xlane.f32.xlu1 %v1420_v26 }
 0xcb9   :  { %4574 = vrot.lane.b32.xlu1 %v5429_v22, %s6864_s19 }
 0xce4   :  { %v5494_v27 = vpop.f32.mrf.mxu0 }
 0xcec   :  { %v5496_v28 = vpop.f32.mrf.mxu0 }
 0xcf4   :  { %v1538_v29 = vpop.f32.mrf.mxu0 }
 0xcf5   :  { %v1544_v30 = vmul.f32 0.35355338, %v1538_v29 }
 0xcf7   :  { %v1546_v31 = vadd.f32 %v5446_v32, %v1544_v30 }
 0xcf9   :  { %v1548_v62 = vsel %vm62_vm0, %v1546_v31, -inf }
 0xcfa   :  { %1549 = vmax.xlane.f32.xlu2 %v1548_v62 }
 0xcfb   :  { %v1261_v34 = vpop.xlane.xlu2 %1260 }
 0xcfc   :  { %v1265_v35 = vsub.f32 %v1257_v4, %v1261_v34  ;;  %v1541_v24 = vpop.f32.mrf.mxu0 }
 0xcfd   :  { %v1545_v46 = vmul.f32 0.35355338, %v1541_v24 }
 0xcfe   :  { %v1267_v36 = vmul.f32 1.442695, %v1265_v35 }
 0xcff   :  { %v1547_v33 = vadd.f32 %v5453_v37, %v1545_v46 }
 0xd00   :  { %4707 = vpow2.f32 %v1267_v36 }
 0xd01   :  { %v1551_v51 = vsel %vm62_vm0, %v1547_v33, -inf }
 0xd03   :  { %v1264_v39 = vpop.xlane.xlu1 %1263 }
 0xd04   :  { %v1266_v40 = vsub.f32 %v1258_v11, %v1264_v39 }
 0xd06   :  { %v4708_v18 = vpop.eup %4707  ;;  %v1269_v41 = vmul.f32 1.442695, %v1266_v40 }
 0xd07   :  { %v1271_v42 = vsel %vm62_vm0, %v4708_v18, 0.0 }
 0xd08   :  { %4709 = vpow2.f32 %v1269_v41  ;;  %1272 = vadd.xlane.f32.xlu2 %v1271_v42 }
 0xd0b   :  { %v1419_v43 = vpop.xlane.xlu0 %1418 }
 0xd0c   :  { %v1423_v44 = vsub.f32 %v1415_v58, %v1419_v43  ;;  %v4126_v43 = vld [vmem:[%s6811_s5 + $0x38] sm:$0xff] }
 0xd0e   :  { %v4710_v45 = vpop.eup %4709  ;;  %v1425_v32 = vmul.f32 1.442695, %v1423_v44 }
 0xd0f   :  { %v1274_v23 = vsel %vm62_vm0, %v4710_v45, 0.0 }
 0xd10   :  { %4711 = vpow2.f32 %v1425_v32  ;;  %1275 = vadd.xlane.f32.xlu0 %v1274_v23 }
 0xd13   :  { %v1422_v47 = vpop.xlane.xlu1 %1421 }
 0xd14   :  { %v1424_v48 = vsub.f32 %v1416_v25, %v1422_v47  ;;  %v4125_v25 = vld [vmem:[%s6811_s5 + $0x30] sm:$0xff] }
 0xd16   :  { %v4712_v16 = vpop.eup %4711  ;;  %v1427_v49 = vmul.f32 1.442695, %v1424_v48 }
 0xd17   :  { %v1429_v50 = vsel %vm62_vm0, %v4712_v16, 0.0 }
 0xd18   :  { %4713 = vpow2.f32 %v1427_v49  ;;  %1430 = vadd.xlane.f32.xlu2 %v1429_v50  ;;  %1552 = vmax.xlane.f32.xlu0 %v1551_v51 }
 0xd1e   :  { %v4714_v52 = vpop.eup %4713 }
 0xd1f   :  { %v1432_v53 = vsel %vm62_vm0, %v4714_v52, 0.0 }
 0xd20   :  { %1433 = vadd.xlane.f32.xlu0 %v1432_v53 }
 0xd2b   :  { %v4575_v54 = vpop.permute.xlu1 %4574 }
 0xd2c   :  { %v4576_v17 = vunpack.i.l.bf16 %v4575_v54  ;;  %v4577_v55 = vunpack.i.h.bf16 %v4575_v54 }
 0xd2e   :  { %1307 = vmatpush.msrb.mxu1 %v4576_v17 }
 0xd30   :  { %4579 = vrot.lane.b32.xlu2 %v5429_v22, %s6865_s1  ;;  %1308 = vmatpush.msrb.mxu1 %v4577_v55 }
 0xd6d   :  { %v1550_v37 = vpop.xlane.xlu2 %1549 }
 0xd6e   :  { %v1554_v56 = vsub.f32 %v1546_v31, %v1550_v37 }
 0xd70   :  { %v1556_v57 = vmul.f32 1.442695, %v1554_v56 }
 0xd72   :  { %4715 = vpow2.f32 %v1556_v57 }
 0xd78   :  { %v4716_v9 = vpop.eup %4715 }
 0xd79   :  { %v1560_v59 = vsel %vm62_vm0, %v4716_v9, 0.0 }
 0xd7a   :  { %1561 = vadd.xlane.f32.xlu0 %v1560_v59 }
 0xd7b   :  { %v1273_v60 = vpop.xlane.xlu2 %1272 }
 0xd7c   :  { %4717 = vrcp.f32 %v1273_v60 }
 0xd82   :  { %v4718_v61 = vpop.eup %4717 }
 0xd83   :  { %v1279_v63 = vmul.f32 %v4718_v61, %v4708_v18  ;;  %v1276_v0 = vpop.xlane.xlu0 %1275 }
 0xd84   :  { %4719 = vrcp.f32 %v1276_v0 }
 0xd85   :  { %4137 = vmatmul.msk.f32.vlgmr.msrb.gmra.mxu1 %vm62_vm0, %v1279_v63 }
 0xd8a   :  { %v4720_v38 = vpop.eup %4719 }
 0xd8b   :  { %v1431_v1 = vpop.xlane.xlu2 %1430  ;;  %v1553_v2 = vpop.xlane.xlu0 %1552  ;;  %v1280_v3 = vmul.f32 %v4720_v38, %v4710_v45  ;;  %v4174_v38 = vld [vmem:[%s6815_s9 + $0xe0] sm:$0xff] }
 0xd8c   :  { %v1555_v4 = vsub.f32 %v1547_v33, %v1553_v2  ;;  %4721 = vrcp.f32 %v1431_v1  ;;  %v4636_v33 = vld [vmem:[%s6812_s6 + $0x1] ss:$0 sm:$0xff]  ;;  %v4175_v1 = vld [vmem:[%s6815_s9 + $0xe8] sm:$0xff]  ;;  %v4176_v2 = vld [vmem:[%s6815_s9 + $0xf0] sm:$0xff] }
 0xd8d   :  { %4138 = vmatmul.msk.f32.gmra.mxu1 %vm62_vm0, %v1280_v3  ;;  %1772 = vmatpush.msrb.mxu0 %v4175_v1  ;;  %v4177_v3 = vld [vmem:[%s6815_s9 + $0xf8] sm:$0xff] }
 0xd8e   :  { %v1558_v5 = vmul.f32 1.442695, %v1555_v4  ;;  %4584 = vrot.lane.b32.xlu0 %v5429_v22, %s6866_s30  ;;  %v4124_v22 = vld [vmem:[%s6811_s5 + $0x28] sm:$0xff]  ;;  %v4170_v4 = vld [vmem:[%s6815_s9 + $0xc0] sm:$0xff] }
 0xd8f   :  { %1337 = vmatpush.msrb.mxu2 %v4124_v22 }
 0xd90   :  { %4723 = vpow2.f32 %v1558_v5  ;;  %v4171_v5 = vld [vmem:[%s6815_s9 + $0xc8] sm:$0xff] }
 0xd91   :  { %1495 = vmatpush.msra.mxu2 %v4125_v25  ;;  %1773 = vmatpush.msrb.mxu0 %v4171_v5  ;;  %v4196_v5 = vld [vmem:[%s6816_s11 + $0x248] sm:$0xff] }
 0xd92   :  { %v4722_v11 = vpop.eup %4721 }
 0xd93   :  { %v4580_v6 = vpop.permute.xlu2 %4579  ;;  %v1434_v10 = vpop.xlane.xlu0 %1433  ;;  %v1437_v58 = vmul.f32 %v4722_v11, %v4712_v16  ;;  %v4166_v11 = vld [vmem:[%s6815_s9 + $0xa0] sm:$0xff] }
 0xd94   :  { %v4581_v12 = vunpack.i.l.bf16 %v4580_v6  ;;  %v4582_v15 = vunpack.i.h.bf16 %v4580_v6  ;;  %4725 = vrcp.f32 %v1434_v10  ;;  %v4172_v6 = vld [vmem:[%s6815_s9 + $0xd0] sm:$0xff]  ;;  %v4173_v10 = vld [vmem:[%s6815_s9 + $0xd8] sm:$0xff] }
 0xd96   :  { %v4724_v13 = vpop.eup %4723  ;;  %1465 = vmatpush.msra.mxu1 %v4581_v12  ;;  %v4167_v12 = vld [vmem:[%s6815_s9 + $0xa8] sm:$0xff] }
 0xd97   :  { %v1563_v19 = vsel %vm62_vm0, %v4724_v13, 0.0  ;;  %1774 = vmatpush.msrb.mxu0 %v4167_v12 }
 0xd98   :  { %1564 = vadd.xlane.f32.xlu1 %v1563_v19  ;;  %1466 = vmatpush.msra.mxu1 %v4582_v15  ;;  %v4169_v15 = vld [vmem:[%s6815_s9 + $0xb8] sm:$0xff]  ;;  %v4163_v19 = vld [vmem:[%s6815_s9 + $0x88] sm:$0xff] }
 0xd99   :  { %4147 = vmatmul.msk.f32.vlgmr.msra.gmra.mxu1 %vm62_vm0, %v1437_v58  ;;  %v4162_v58 = vld [vmem:[%s6815_s9 + $0x80] sm:$0xff]  ;;  %1775 = vmatpush.msrb.mxu0 %v4163_v19  ;;  %v4240_v19 = vld [vmem:[%s6816_s11 + $0x3a8] sm:$0xff] }
 0xd9a   :  { %v4726_v20 = vpop.eup %4725  ;;  %1626 = vmatpush.msrb.mxu1 %v4126_v43 }
 0xd9b   :  { %v1438_v21 = vmul.f32 %v4726_v20, %v4714_v52  ;;  %v4164_v20 = vld [vmem:[%s6815_s9 + $0x90] sm:$0xff] }
 0xd9c   :  { %1818 = vmatpush.msra.mxu1 %v4177_v3  ;;  %v4242_v3 = vld [vmem:[%s6816_s11 + $0x3b8] sm:$0xff] }
 0xd9e   :  { %1819 = vmatpush.msra.mxu1 %v4173_v10  ;;  %v4209_v10 = vld [vmem:[%s6816_s11 + $0x2b0] sm:$0xff] }
 0xda0   :  { %1820 = vmatpush.msra.mxu1 %v4169_v15  ;;  %v4227_v15 = vld [vmem:[%s6816_s11 + $0x340] sm:$0xff] }
 0xda1   :  { %4148 = vmatmul.msk.f32.gmra.mxu1 %vm62_vm0, %v1438_v21  ;;  %v4165_v21 = vld [vmem:[%s6815_s9 + $0x98] sm:$0xff] }
 0xda2   :  { %1821 = vmatpush.msra.mxu1 %v4165_v21  ;;  %v4194_v21 = vld [vmem:[%s6816_s11 + $0x238] sm:$0xff] }
 0xded   :  { %v1562_v26 = vpop.xlane.xlu0 %1561 }
 0xdee   :  { %4727 = vrcp.f32 %v1562_v26 }
 0xdf4   :  { %v4728_v30 = vpop.eup %4727 }
 0xdf5   :  { %v1568_v35 = vmul.f32 %v4728_v30, %v4716_v9 }
 0xe00   :  { %v4585_v29 = vpop.permute.xlu0 %4584 }
 0xe01   :  { %v4586_v31 = vunpack.i.l.bf16 %v4585_v29  ;;  %v4587_v34 = vunpack.i.h.bf16 %v4585_v29 }
 0xe02   :  { %v1310_v62 = vpop.f32.mrf.mxu1 }
 0xe03   :  { %4139 = vmatmul.msk.f32.vlgmr.msrb.gmra.mxu2 %vm140_vm2, %v1310_v62  ;;  %1596 = vmatpush.msra.mxu3 %v4586_v31  ;;  %v4218_v31 = vld [vmem:[%s6816_s11 + $0x2f8] sm:$0xff] }
 0xe04   :  { %1749 = vmatpush.msrb.mxu2 %v4174_v38  ;;  %v4250_v62 = vld [vmem:[%s6816_s11 + $0x3f8] sm:$0xff]  ;;  %1930 = vmatpush.msra.mxu0 %v4218_v31  ;;  %v4225_v31 = vld [vmem:[%s6816_s11 + $0x330] sm:$0xff] }
 0xe05   :  { %1597 = vmatpush.msra.mxu3 %v4587_v34 }
 0xe06   :  { %4155 = vmatmul.msk.f32.vlgmr.msra.gmra.mxu3 %vm62_vm0, %v1568_v35  ;;  %1750 = vmatpush.msrb.mxu2 %v4170_v4  ;;  %v4217_v35 = vld [vmem:[%s6816_s11 + $0x2f0] sm:$0xff] }
 0xe07   :  { %1795 = vmatpush.msrb.mxu3 %v4176_v2  ;;  %1931 = vmatpush.msra.mxu0 %v4217_v35  ;;  %v4210_v2 = vld [vmem:[%s6816_s11 + $0x2b8] sm:$0xff] }
 0xe08   :  { %1751 = vmatpush.msrb.mxu2 %v4166_v11  ;;  %v4241_v11 = vld [vmem:[%s6816_s11 + $0x3b0] sm:$0xff] }
 0xe09   :  { %1796 = vmatpush.msrb.mxu3 %v4172_v6  ;;  %v4228_v6 = vld [vmem:[%s6816_s11 + $0x348] sm:$0xff] }
 0xe0a   :  { %v1313_v36 = vpop.f32.mrf.mxu1  ;;  %1752 = vmatpush.msrb.mxu2 %v4162_v58  ;;  %v4208_v58 = vld [vmem:[%s6816_s11 + $0x2a8] sm:$0xff] }
 0xe0b   :  { %v1565_v39 = vpop.xlane.xlu1 %1564  ;;  %4140 = vmatmul.msk.f32.gmra.mxu2 %vm140_vm2, %v1313_v36  ;;  %v4249_v36 = vld [vmem:[%s6816_s11 + $0x3f0] sm:$0xff] }
 0xe0c   :  { %4729 = vrcp.f32 %v1565_v39 }
 0xe12   :  { %v4730_v40 = vpop.eup %4729 }
 0xe13   :  { %v1569_v18 = vmul.f32 %v4730_v40, %v4724_v13  ;;  %v4168_v13 = vld [vmem:[%s6815_s9 + $0xb0] sm:$0xff]  ;;  %v4216_v40 = vld [vmem:[%s6816_s11 + $0x2e8] sm:$0xff] }
 0xe14   :  { %1797 = vmatpush.msrb.mxu3 %v4168_v13  ;;  %1932 = vmatpush.msra.mxu0 %v4216_v40  ;;  %v4195_v13 = vld [vmem:[%s6816_s11 + $0x240] sm:$0xff] }
 0xe15   :  { %4156 = vmatmul.msk.f32.gmra.mxu3 %vm62_vm0, %v1569_v18  ;;  %v4248_v18 = vld [vmem:[%s6816_s11 + $0x3e8] sm:$0xff] }
 0xe16   :  { %v1468_v41 = vpop.f32.mrf.mxu1  ;;  %1798 = vmatpush.msrb.mxu3 %v4164_v20 }
 0xe17   :  { %4149 = vmatmul.msk.f32.vlgmr.msra.gmra.mxu2 %vm140_vm2, %v1468_v41  ;;  %v4202_v41 = vld [vmem:[%s6816_s11 + $0x278] sm:$0xff] }
 0xe18   :  { %1907 = vmatpush.msra.mxu2 %v4202_v41  ;;  %v4224_v41 = vld [vmem:[%s6816_s11 + $0x328] sm:$0xff] }
 0xe1e   :  { %v1471_v42 = vpop.f32.mrf.mxu1 }
 0xe1f   :  { %4150 = vmatmul.msk.f32.gmra.mxu2 %vm140_vm2, %v1471_v42 }
 0xe86   :  { %v1339_v45 = vpop.f32.mrf.mxu2 }
 0xe87   :  { %v1369_v23 = vadd.f32 %v5494_v27, %v1339_v45  ;;  %v4215_v45 = vld [vmem:[%s6816_s11 + $0x2e0] sm:$0xff] }
 0xe88   :  { %1933 = vmatpush.msra.mxu0 %v4215_v45  ;;  %v4236_v45 = vld [vmem:[%s6816_s11 + $0x388] sm:$0xff] }
 0xe89   :  { %v1599_v24 = vpop.f32.mrf.mxu3 }
 0xe8a   :  { %4157 = vmatmul.msk.f32.vlgmr.msrb.gmra.mxu1 %vm140_vm2, %v1599_v24  ;;  %v4234_v24 = vld [vmem:[%s6816_s11 + $0x378] sm:$0xff] }
 0xe8b   :  { %1976 = vmatpush.msrb.mxu1 %v4250_v62  ;;  %1953 = vmatpush.msra.mxu3 %v4234_v24  ;;  %v4206_v62 = vld [vmem:[%s6816_s11 + $0x298] sm:$0xff]  ;;  %v4204_v24 = vld [vmem:[%s6816_s11 + $0x288] sm:$0xff] }
 0xe8d   :  { %1977 = vmatpush.msrb.mxu1 %v4249_v36 }
 0xe8e   :  { %v1342_v32 = vpop.f32.mrf.mxu2 }
 0xe8f   :  { %v1372_v53 = vadd.f32 %v5496_v28, %v1342_v32  ;;  %v4247_v32 = vld [vmem:[%s6816_s11 + $0x3e0] sm:$0xff]  ;;  %1978 = vmatpush.msrb.mxu1 %v4248_v18  ;;  %v4205_v18 = vld [vmem:[%s6816_s11 + $0x290] sm:$0xff] }
 0xe91   :  { %1979 = vmatpush.msrb.mxu1 %v4247_v32  ;;  %v4190_v32 = vld [vmem:[%s6816_s11 + $0x218] sm:$0xff] }
 0xe98   :  { %v1602_v44 = vpop.f32.mrf.mxu3 }
 0xe99   :  { %4158 = vmatmul.msk.f32.gmra.mxu1 %vm140_vm2, %v1602_v44  ;;  %v4201_v44 = vld [vmem:[%s6816_s11 + $0x270] sm:$0xff] }
 0xe9a   :  { %v1497_v46 = vpop.f32.mrf.mxu2  ;;  %1908 = vmatpush.msra.mxu2 %v4201_v44  ;;  %v4223_v44 = vld [vmem:[%s6816_s11 + $0x320] sm:$0xff] }
 0xe9b   :  { %v1503_v47 = vadd.f32 %v1497_v46, %v1369_v23  ;;  %v4233_v46 = vld [vmem:[%s6816_s11 + $0x370] sm:$0xff] }
 0xe9c   :  { %1954 = vmatpush.msra.mxu3 %v4233_v46  ;;  %v4203_v46 = vld [vmem:[%s6816_s11 + $0x280] sm:$0xff] }
 0xea2   :  { %v1500_v52 = vpop.f32.mrf.mxu2 }
 0xea3   :  { %v1504_v54 = vadd.f32 %v1500_v52, %v1372_v53  ;;  %v4199_v52 = vld [vmem:[%s6816_s11 + $0x260] sm:$0xff] }
 0xea4   :  { %v4231_v53 = vld [vmem:[%s6816_s11 + $0x360] sm:$0xff] }
 0xf07   :  { %v1628_v48 = vpop.f32.mrf.mxu1 }
 0xf08   :  { %v1634_v16 = vadd.f32 %v1628_v48, %v1503_v47  ;;  %v4232_v48 = vld [vmem:[%s6816_s11 + $0x368] sm:$0xff] }
 0xf09   :  { %1955 = vmatpush.msra.mxu3 %v4232_v48  ;;  %v4221_v48 = vld [vmem:[%s6816_s11 + $0x310] sm:$0xff] }
 0xf0a   :  { %v1641_v49 = vadd.f32 %v4636_v33, %v1634_v16  ;;  %v4214_v16 = vld [vmem:[%s6816_s11 + $0x2d8] sm:$0xff] }
 0xf0b   :  { %1934 = vmatpush.msra.mxu0 %v4214_v16  ;;  %1956 = vmatpush.msra.mxu3 %v4231_v53  ;;  %v4188_v16 = vld [vmem:[%s6816_s11 + $0x208] sm:$0xff] }
 0xf0c   :  { %v1643_v50 = vadd.f32 %v1641_v49, %v5416_v7  ;;  %v4246_v49 = vld [vmem:[%s6816_s11 + $0x3d8] sm:$0xff] }
 0xf0d   :  { %1980 = vmatpush.msrb.mxu1 %v4246_v49  ;;  %v4220_v49 = vld [vmem:[%s6816_s11 + $0x308] sm:$0xff] }
 0xf0e   :  { %v1649_v51 = vsel %vm100_vm1, %v1643_v50, 0.0 }
 0xf0f   :  { %1650 = vadd.xlane.f32.xlu2 %v1649_v51 }
 0xf16   :  { %v1631_v17 = vpop.f32.mrf.mxu1 }
 0xf17   :  { %v1635_v55 = vadd.f32 %v1631_v17, %v1504_v54  ;;  %v4213_v54 = vld [vmem:[%s6816_s11 + $0x2d0] sm:$0xff] }
 0xf18   :  { %v4245_v17 = vld [vmem:[%s6816_s11 + $0x3d0] sm:$0xff]  ;;  %1935 = vmatpush.msra.mxu0 %v4213_v54 }
 0xf19   :  { %v1642_v27 = vadd.f32 %v4636_v33, %v1635_v55  ;;  %v4200_v33 = vld [vmem:[%s6816_s11 + $0x268] sm:$0xff]  ;;  %1981 = vmatpush.msrb.mxu1 %v4245_v17 }
 0xf1a   :  { %1909 = vmatpush.msra.mxu2 %v4200_v33  ;;  %v4189_v33 = vld [vmem:[%s6816_s11 + $0x210] sm:$0xff] }
 0xf1b   :  { %v1644_v37 = vadd.f32 %v1642_v27, %v5420_v14  ;;  %v4198_v27 = vld [vmem:[%s6816_s11 + $0x258] sm:$0xff] }
 0xf1c   :  { %1910 = vmatpush.msra.mxu2 %v4199_v52  ;;  %v4178_v52 = vld [vmem:[%s6818_s10 + $0x4] sm:$0xf] }
 0xf1d   :  { %v1652_v56 = vsel %vm100_vm1, %v1644_v37, 0.0  ;;  %v1724_v53 = vperm.slane %v4178_v52, 1  ;;  %v1726_v54 = vperm.slane %v4178_v52, 3 }
 0xf1e   :  { %1653 = vadd.xlane.f32.xlu0 %v1652_v56  ;;  %1911 = vmatpush.msra.mxu2 %v4198_v27 }
 0xf82   :  { %v1651_v57 = vpop.xlane.xlu2 %1650 }
 0xf83   :  { %v1655_v9 = vmul.f32 %v1651_v57, %v5079_v8  ;;  %v5683_v57 = vld [vmem:[%s6814_s8 + $0x1] ss:$0 sm:$0xff] }
 0xf85   :  { %v5543_v59 = vsub.f32 %v1643_v50, %v1655_v9  ;;  %v5657_v50 = vld [vmem:[%s6813_s7 + $0x1] ss:$0 sm:$0xff]  ;;  %v4212_v9 = vld [vmem:[%s6816_s11 + $0x2c8] sm:$0xff] }
 0xf86   :  { %1936 = vmatpush.msra.mxu0 %v4212_v9 }
 0xf87   :  { %v1659_v7 = vmul.f32 %v5543_v59, %v5543_v59 }
 0xf89   :  { %v1661_v60 = vsel %vm100_vm1, %v1659_v7, 0.0  ;;  %v4244_v7 = vld [vmem:[%s6816_s11 + $0x3c8] sm:$0xff] }
 0xf8a   :  { %1662 = vadd.xlane.f32.xlu1 %v1661_v60  ;;  %v4229_v60 = vld [vmem:[%s6816_s11 + $0x350] sm:$0xff]  ;;  %1982 = vmatpush.msrb.mxu1 %v4244_v7  ;;  %v1725_v7 = vperm.slane %v4178_v52, 2 }
 0xf91   :  { %v1654_v28 = vpop.xlane.xlu0 %1653 }
 0xf92   :  { %v1656_v61 = vmul.f32 %v1654_v28, %v5079_v8 }
 0xf94   :  { %v5549_v63 = vsub.f32 %v1644_v37, %v1656_v61  ;;  %v4230_v37 = vld [vmem:[%s6816_s11 + $0x358] sm:$0xff]  ;;  %v4211_v61 = vld [vmem:[%s6816_s11 + $0x2c0] sm:$0xff] }
 0xf95   :  { %1957 = vmatpush.msra.mxu3 %v4230_v37  ;;  %1937 = vmatpush.msra.mxu0 %v4211_v61 }
 0xf96   :  { %v1660_v14 = vmul.f32 %v5549_v63, %v5549_v63 }
 0xf97   :  { %1958 = vmatpush.msra.mxu3 %v4229_v60  ;;  %1938 = vmatpush.msra.mxu0 %v4210_v2 }
 0xf98   :  { %v1664_v0 = vsel %vm100_vm1, %v1660_v14, 0.0  ;;  %v4243_v14 = vld [vmem:[%s6816_s11 + $0x3c0] sm:$0xff] }
 0xf99   :  { %1665 = vadd.xlane.f32.xlu2 %v1664_v0  ;;  %1983 = vmatpush.msrb.mxu1 %v4243_v14 }
 0xf9a   :  { %1959 = vmatpush.msra.mxu3 %v4228_v6  ;;  %1939 = vmatpush.msra.mxu0 %v4209_v10 }
 0xf9b   :  { %1984 = vmatpush.msrb.mxu1 %v4242_v3 }
 0xf9c   :  { %1960 = vmatpush.msra.mxu3 %v4227_v15  ;;  %1940 = vmatpush.msra.mxu0 %v4208_v58 }
 0xf9d   :  { %1985 = vmatpush.msrb.mxu1 %v4241_v11 }
 0xf9f   :  { %1986 = vmatpush.msrb.mxu1 %v4240_v19  ;;  %v4639_v19 = vld [vmem:[%s6817_s12 + $0x1] ss:$0 sm:$0xff] }
 0xffd   :  { %v1663_v22 = vpop.xlane.xlu1 %1662 }
 0xffe   :  { %v1667_v25 = vmul.f32 %v1663_v22, %v5079_v8  ;;  %v4226_v22 = vld [vmem:[%s6816_s11 + $0x338] sm:$0xff] }
 0xfff   :  { %1961 = vmatpush.msra.mxu3 %v4226_v22 }
0x1000   :  { %v1669_v26 = vadd.f32 1e-05, %v1667_v25  ;;  %v4207_v25 = vld [vmem:[%s6816_s11 + $0x2a0] sm:$0xff] }
0x1001   :  { %1941 = vmatpush.msra.mxu0 %v4207_v25  ;;  %1962 = vmatpush.msra.mxu3 %v4225_v31 }
0x1002   :  { %4731 = vrsqrt.f32 %v1669_v26  ;;  %vm1677_vm4 = vweird.f32 %v1669_v26 }
0x1003   :  { %1942 = vmatpush.msra.mxu0 %v4206_v62  ;;  %1963 = vmatpush.msra.mxu3 %v4224_v41 }
0x1005   :  { %1943 = vmatpush.msra.mxu0 %v4205_v18  ;;  %1964 = vmatpush.msra.mxu3 %v4223_v44 }
0x1007   :  { %1944 = vmatpush.msra.mxu0 %v4204_v24 }
0x1008   :  { %v4732_v29 = vpop.eup %4731 }
0x1009   :  { %v1672_v30 = vmul.f32 %v4732_v29, %v1669_v26  ;;  %vm1678_vm3 = vweird.f32 %v4732_v29  ;;  %v4239_v26 = vld [vmem:[%s6816_s11 + $0x3a0] sm:$0xff]  ;;  %1945 = vmatpush.msra.mxu0 %v4203_v46 }
0x100a   :  { %vm1679_vm5 = vmor %vm1677_vm4, %vm1678_vm3  ;;  %1987 = vmatpush.msrb.mxu1 %v4239_v26 }
0x100b   :  { %v1673_v34 = vmul.f32 %v4732_v29, %v1672_v30  ;;  %v4193_v30 = vld [vmem:[%s6816_s11 + $0x230] sm:$0xff] }
0x100c   :  { %v1666_v39 = vpop.xlane.xlu2 %1665 }
0x100d   :  { %v1674_v42 = vmul.f32 0.5, %v1673_v34  ;;  %v1668_v43 = vmul.f32 %v1666_v39, %v5079_v8  ;;  %v4238_v34 = vld [vmem:[%s6816_s11 + $0x398] sm:$0xff] }
0x100e   :  { %1988 = vmatpush.msrb.mxu1 %v4238_v34 }
0x100f   :  { %v1675_v23 = vsub.f32 1.5, %v1674_v42  ;;  %v5640_v47 = vadd.f32 1e-05, %v1668_v43  ;;  %v4237_v42 = vld [vmem:[%s6816_s11 + $0x390] sm:$0xff]  ;;  %v4191_v43 = vld [vmem:[%s6816_s11 + $0x220] sm:$0xff] }
0x1010   :  { %1989 = vmatpush.msrb.mxu1 %v4237_v42 }
0x1011   :  { %v1676_v51 = vmul.f32 %v4732_v29, %v1675_v23  ;;  %4733 = vrsqrt.f32 %v5640_v47  ;;  %vm1687_vm7 = vweird.f32 %v5640_v47  ;;  %v4222_v23 = vld [vmem:[%s6816_s11 + $0x318] sm:$0xff] }
0x1012   :  { %1990 = vmatpush.msrb.mxu1 %v4236_v45  ;;  %1965 = vmatpush.msra.mxu3 %v4222_v23 }
0x1013   :  { %v1680_v55 = vsel %vm1679_vm5, %v4732_v29, %v1676_v51  ;;  %v4219_v51 = vld [vmem:[%s6816_s11 + $0x300] sm:$0xff] }
0x1014   :  { %v1691_v56 = vmul.f32 %v1680_v55, %v5543_v59  ;;  %v4197_v59 = vld [vmem:[%s6816_s11 + $0x250] sm:$0xff]  ;;  %1966 = vmatpush.msra.mxu3 %v4221_v48 }
0x1015   :  { %1912 = vmatpush.msra.mxu2 %v4197_v59 }
0x1016   :  { %v1696_v28 = vmul.f32 %v5657_v50, %v1691_v56  ;;  %1967 = vmatpush.msra.mxu3 %v4220_v49 }
0x1017   :  { %v4734_v0 = vpop.eup %4733  ;;  %1913 = vmatpush.msra.mxu2 %v4196_v5 }
0x1018   :  { %v1682_v38 = vmul.f32 %v4734_v0, %v5640_v47  ;;  %v5706_v1 = vadd.f32 %v5683_v57, %v1696_v28  ;;  %vm1688_vm6 = vweird.f32 %v4734_v0  ;;  %v4235_v47 = vld [vmem:[%s6816_s11 + $0x380] sm:$0xff]  ;;  %1968 = vmatpush.msra.mxu3 %v4219_v51  ;;  %v4255_v51 = vld [vmem:[%s6808_s3 + $0x48] sm:$0xff] }
0x1019   :  { %1914 = vmatpush.msra.mxu2 %v4195_v13  ;;  %vm1689_vm8 = vmor %vm1687_vm7, %vm1688_vm6  ;;  %1991 = vmatpush.msrb.mxu1 %v4235_v47 }
0x101a   :  { %v1683_v4 = vmul.f32 %v4734_v0, %v1682_v38  ;;  %4179 = vmatmul.msk.f32.vlgmr.msrb.gmra.mxu2 %vm100_vm1, %v5706_v1  ;;  %4181 = vmatmul.msk.f32.vlgmr.msrb.gmra.mxu0 %vm100_vm1, %v5706_v1 }
0x101b   :  { %4183 = vmatmul.msk.f32.vlgmr.msrb.gmra.mxu3 %vm100_vm1, %v5706_v1  ;;  %4185 = vmatmul.msk.f32.vlgmr.msra.gmra.mxu1 %vm100_vm1, %v5706_v1 }
0x101c   :  { %v1684_v12 = vmul.f32 0.5, %v1683_v4  ;;  %1915 = vmatpush.msra.mxu2 %v4194_v21 }
0x101e   :  { %v1685_v20 = vsub.f32 1.5, %v1684_v12  ;;  %1916 = vmatpush.msra.mxu2 %v4193_v30 }
0x1020   :  { %v1686_v29 = vmul.f32 %v4734_v0, %v1685_v20 }
0x1022   :  { %v1690_v35 = vsel %vm1689_vm8, %v4734_v0, %v1686_v29 }
0x1023   :  { %v1692_v36 = vmul.f32 %v1690_v35, %v5549_v63  ;;  %v4192_v63 = vld [vmem:[%s6816_s11 + $0x228] sm:$0xff] }
0x1024   :  { %1917 = vmatpush.msra.mxu2 %v4192_v63 }
0x1025   :  { %v1697_v39 = vmul.f32 %v5657_v50, %v1692_v36  ;;  %v4187_v50 = vld [vmem:[%s6816_s11 + $0x200] sm:$0xff] }
0x1026   :  { %1918 = vmatpush.msra.mxu2 %v4191_v43 }
0x1027   :  { %v5775_v40 = vadd.f32 %v5683_v57, %v1697_v39  ;;  %v1723_v57 = vperm.slane %v4178_v52, 0  ;;  %v4254_v52 = vld [vmem:[%s6808_s3 + $0x40] sm:$0xff] }
0x1028   :  { %1919 = vmatpush.msra.mxu2 %v4190_v32 }
0x1029   :  { %4180 = vmatmul.msk.f32.gmra.mxu2 %vm100_vm1, %v5775_v40  ;;  %4182 = vmatmul.msk.f32.gmra.mxu0 %vm100_vm1, %v5775_v40 }
0x102a   :  { %4184 = vmatmul.msk.f32.gmra.mxu3 %vm100_vm1, %v5775_v40  ;;  %4186 = vmatmul.msk.f32.gmra.mxu1 %vm100_vm1, %v5775_v40 }
0x102b   :  { %1920 = vmatpush.msra.mxu2 %v4189_v33 }
0x102d   :  { %1921 = vmatpush.msra.mxu2 %v4188_v16 }
0x102f   :  { %1922 = vmatpush.msra.mxu2 %v4187_v50  ;;  %v4256_v50 = vld [vmem:[%s6808_s3 + $0x50] sm:$0xff] }
0x1097   :  { %v1777_v17 = vpop.f32.mrf.mxu0 }
0x1098   :  { %v1778_v55 = vadd.f32 %v1777_v17, %v1724_v53  ;;  %v1823_v27 = vpop.f32.mrf.mxu1 }
0x1099   :  { %v1824_v37 = vadd.f32 %v1823_v27, %v1726_v54 }
0x109a   :  { %v1830_v56 = vmax.f32 %v1778_v55, 0.0 }
0x109b   :  { %v1832_v9 = vmax.f32 %v1824_v37, 0.0 }
0x109c   :  { %1946 = vmatmul.f32.vlgmr.msra.gmra.mxu0 %v1830_v56 }
0x109d   :  { %1992 = vmatmul.f32.vlgmr.msrb.gmra.mxu1 %v1832_v9  ;;  %v1754_v59 = vpop.f32.mrf.mxu2 }
0x109e   :  { %v1755_v60 = vadd.f32 %v1754_v59, %v1723_v57  ;;  %v1800_v28 = vpop.f32.mrf.mxu3 }
0x109f   :  { %v1801_v61 = vadd.f32 %v1800_v28, %v1725_v7  ;;  %v4640_v28 = vld [vmem:[%s6819_s13 + $0x1] ss:$0 sm:$0xff] }
0x10a0   :  { %v1829_v14 = vmax.f32 %v1755_v60, 0.0 }
0x10a1   :  { %v1831_v0 = vmax.f32 %v1801_v61, 0.0 }
0x10a2   :  { %1923 = vmatmul.f32.vlgmr.msra.gmra.mxu2 %v1829_v14 }
0x10a3   :  { %1969 = vmatmul.f32.vlgmr.msra.gmra.mxu3 %v1831_v0  ;;  %v4641_v0 = vld [vmem:[%s6820_s14 + $0x1] ss:$0 sm:$0xff] }
0x10a6   :  { %v1780_v38 = vpop.f32.mrf.mxu0 }
0x10a7   :  { %v1781_v2 = vadd.f32 %v1780_v38, %v1724_v53  ;;  %v1826_v3 = vpop.f32.mrf.mxu1 }
0x10a8   :  { %v1827_v4 = vadd.f32 %v1826_v3, %v1726_v54 }
0x10a9   :  { %v1834_v5 = vmax.f32 %v1781_v2, 0.0 }
0x10aa   :  { %v1836_v6 = vmax.f32 %v1827_v4, 0.0 }
0x10ab   :  { %1949 = vmatmul.f32.gmra.mxu0 %v1834_v5 }
0x10ac   :  { %1995 = vmatmul.f32.gmra.mxu1 %v1836_v6  ;;  %v1757_v10 = vpop.f32.mrf.mxu2 }
0x10ad   :  { %v1758_v11 = vadd.f32 %v1757_v10, %v1723_v57  ;;  %v1803_v12 = vpop.f32.mrf.mxu3 }
0x10ae   :  { %v1804_v13 = vadd.f32 %v1803_v12, %v1725_v7 }
0x10af   :  { %v1833_v15 = vmax.f32 %v1758_v11, 0.0 }
0x10b0   :  { %v1835_v58 = vmax.f32 %v1804_v13, 0.0 }
0x10b1   :  { %1926 = vmatmul.f32.gmra.mxu2 %v1833_v15 }
0x10b2   :  { %1972 = vmatmul.f32.gmra.mxu3 %v1835_v58 }
0x1119   :  { %v1947_v22 = vpop.f32.mrf.mxu0 }
0x111a   :  { %v1993_v30 = vpop.f32.mrf.mxu1 }
0x1125   :  { %v1924_v20 = vpop.f32.mrf.mxu2 }
0x1126   :  { %v1925_v21 = vadd.f32 %v4639_v19, %v1924_v20  ;;  %v1970_v26 = vpop.f32.mrf.mxu3 }
0x1128   :  { %v1948_v25 = vadd.f32 %v1947_v22, %v1925_v21  ;;  %v1950_v39 = vpop.f32.mrf.mxu0 }
0x1129   :  { %v1996_v42 = vpop.f32.mrf.mxu1 }
0x112a   :  { %v1971_v29 = vadd.f32 %v1970_v26, %v1948_v25 }
0x112c   :  { %v1994_v31 = vadd.f32 %v1993_v30, %v1971_v29 }
0x112e   :  { %v1999_v62 = vadd.f32 %v1994_v31, %v5706_v1 }
0x1130   :  { %v2005_v34 = vsel %vm100_vm1, %v1999_v62, 0.0 }
0x1131   :  { %2006 = vadd.xlane.f32.xlu1 %v2005_v34 }
0x1134   :  { %v1927_v35 = vpop.f32.mrf.mxu2 }
0x1135   :  { %v1928_v36 = vadd.f32 %v4639_v19, %v1927_v35  ;;  %v1973_v18 = vpop.f32.mrf.mxu3  ;;  %v4642_v19 = vld [vmem:[%s6809_s4 + $0x2] ss:$0 sm:$0xff] }
0x1137   :  { %v1951_v63 = vadd.f32 %v1950_v39, %v1928_v36  ;;  %v5903_v39 = vld [vmem:[%s6810_s2] sm:$0xff] }
0x1139   :  { %v1974_v41 = vadd.f32 %v1973_v18, %v1951_v63 }
0x113b   :  { %v1997_v43 = vadd.f32 %v1996_v42, %v1974_v41 }
0x113d   :  { %v2000_v24 = vadd.f32 %v1997_v43, %v5775_v40  ;;  %v4257_v40 = vld [vmem:[%s6808_s3 + $0x58] sm:$0xff]  ;;  %v5910_v43 = vld [vmem:[%s6810_s2 + $0x8] sm:$0xff] }
0x113e   :  { %2087 = vmatpush.msrb.mxu2 %v4257_v40  ;;  %v4261_v40 = vld [vmem:[%s6811_s5 + $0x40] sm:$0xff] }
0x113f   :  { %v2008_v44 = vsel %vm100_vm1, %v2000_v24, 0.0 }
0x1140   :  { %2009 = vadd.xlane.f32.xlu2 %v2008_v44  ;;  %2088 = vmatpush.msrb.mxu2 %v4256_v50 }
0x1142   :  { %2089 = vmatpush.msrb.mxu2 %v4255_v51 }
0x1144   :  { %2090 = vmatpush.msrb.mxu2 %v4254_v52 }
0x11a4   :  { %v2007_v45 = vpop.xlane.xlu1 %2006 }
0x11a5   :  { %v2011_v32 = vmul.f32 %v2007_v45, %v5079_v8 }
0x11a7   :  { %v2013_v1 = vsub.f32 %v1999_v62, %v2011_v32 }
0x11a9   :  { %v2015_v46 = vmul.f32 %v2013_v1, %v2013_v1 }
0x11ab   :  { %v2017_v23 = vsel %vm100_vm1, %v2015_v46, 0.0 }
0x11ac   :  { %2018 = vadd.xlane.f32.xlu1 %v2017_v23 }
0x11b3   :  { %v2010_v47 = vpop.xlane.xlu2 %2009 }
0x11b4   :  { %v2012_v33 = vmul.f32 %v2010_v47, %v5079_v8 }
0x11b6   :  { %v2014_v48 = vsub.f32 %v2000_v24, %v2012_v33 }
0x11b8   :  { %v2016_v16 = vmul.f32 %v2014_v48, %v2014_v48 }
0x11ba   :  { %v2020_v49 = vsel %vm100_vm1, %v2016_v16, 0.0 }
0x11bb   :  { %2021 = vadd.xlane.f32.xlu0 %v2020_v49 }
0x121f   :  { %v2019_v53 = vpop.xlane.xlu1 %2018 }
0x1220   :  { %v2023_v54 = vmul.f32 %v2019_v53, %v5079_v8 }
0x1222   :  { %v2025_v17 = vadd.f32 1e-05, %v2023_v54 }
0x1224   :  { %4735 = vrsqrt.f32 %v2025_v17  ;;  %vm2033_vm10 = vweird.f32 %v2025_v17 }
0x122a   :  { %v4736_v55 = vpop.eup %4735 }
0x122b   :  { %v2028_v27 = vmul.f32 %v4736_v55, %v2025_v17  ;;  %vm2034_vm9 = vweird.f32 %v4736_v55 }
0x122c   :  { %vm2035_vm11 = vmor %vm2033_vm10, %vm2034_vm9 }
0x122d   :  { %v2029_v37 = vmul.f32 %v4736_v55, %v2028_v27 }
0x122e   :  { %v2022_v56 = vpop.xlane.xlu0 %2021 }
0x122f   :  { %v2030_v57 = vmul.f32 0.5, %v2029_v37  ;;  %v2024_v9 = vmul.f32 %v2022_v56, %v5079_v8 }
0x1231   :  { %v2031_v7 = vsub.f32 1.5, %v2030_v57  ;;  %v2026_v59 = vadd.f32 1e-05, %v2024_v9 }
0x1233   :  { %v2032_v60 = vmul.f32 %v4736_v55, %v2031_v7  ;;  %4737 = vrsqrt.f32 %v2026_v59  ;;  %vm2043_vm13 = vweird.f32 %v2026_v59 }
0x1235   :  { %v2036_v61 = vsel %vm2035_vm11, %v4736_v55, %v2032_v60 }
0x1236   :  { %v2047_v14 = vmul.f32 %v2036_v61, %v2013_v1 }
0x1238   :  { %v2052_v38 = vmul.f32 %v4640_v28, %v2047_v14 }
0x1239   :  { %v4738_v2 = vpop.eup %4737 }
0x123a   :  { %v2038_v3 = vmul.f32 %v4738_v2, %v2026_v59  ;;  %v5873_v4 = vadd.f32 %v4641_v0, %v2052_v38  ;;  %vm2044_vm12 = vweird.f32 %v4738_v2 }
0x123b   :  { %vm2045_vm14 = vmor %vm2043_vm13, %vm2044_vm12 }
0x123c   :  { %v2039_v5 = vmul.f32 %v4738_v2, %v2038_v3  ;;  %4259 = vmatmul.msk.f32.vlgmr.msrb.gmra.mxu2 %vm100_vm1, %v5873_v4 }
0x123e   :  { %v2040_v6 = vmul.f32 0.5, %v2039_v5 }
0x1240   :  { %v2041_v10 = vsub.f32 1.5, %v2040_v6 }
0x1242   :  { %v2042_v11 = vmul.f32 %v4738_v2, %v2041_v10 }
0x1244   :  { %v2046_v12 = vsel %vm2045_vm14, %v4738_v2, %v2042_v11 }
0x1245   :  { %v2048_v13 = vmul.f32 %v2046_v12, %v2014_v48 }
0x1247   :  { %v2053_v15 = vmul.f32 %v4640_v28, %v2048_v13 }
0x1249   :  { %v5877_v58 = vadd.f32 %v4641_v0, %v2053_v15 }
0x124b   :  { %4260 = vmatmul.msk.f32.gmra.mxu2 %vm100_vm1, %v5877_v58 }
0x12bf   :  { %v2092_v20 = vpop.f32.mrf.mxu2 }
0x12c0   :  { %v2093_v21 = vadd.f32 %v4642_v19, %v2092_v20 }
0x12c2   :  { %2105 = vrot.lane.b32.xlu1 %v2093_v21, %s6867_s22 }
0x12ce   :  { %v2095_v22 = vpop.f32.mrf.mxu2 }
0x12cf   :  { %v2096_v25 = vadd.f32 %v4642_v19, %v2095_v22 }
0x12d1   :  { %2107 = vrot.lane.b32.xlu2 %v2096_v25, %s6867_s22  ;;  %v5886_v26 = vpack.i.bf16 %v2093_v21, %v2096_v25 }
0x12d9   :  { %4589 = vrot.lane.b32.xlu2 %v5886_v26, %s6868_s18 }
0x12e1   :  { %2205 = vrot.lane.b32.xlu2 %v2093_v21, %s6869_s21 }
0x12e9   :  { %2201 = vrot.lane.b32.xlu2 %v2093_v21, %s6870_s24 }
0x12f1   :  { %2496 = vrot.lane.b32.xlu2 %v2096_v25, %s6861_s26 }
0x12f9   :  { %2365 = vrot.lane.b32.xlu2 %v2096_v25, %s6871_s0 }
0x1301   :  { %2490 = vrot.lane.b32.xlu2 %v2093_v21, %s6862_s27 }
0x1309   :  { %2492 = vrot.lane.b32.xlu2 %v2096_v25, %s6862_s27 }
0x132b   :  { %v2108_v29 = vpop.permute.xlu2 %2107 }
0x132c   :  { %4265 = vmatpush.xpose.msk.msrb.mxu0 %vm140_vm2, %v2108_v29 }
0x1333   :  { %v4590_v30 = vpop.permute.xlu2 %4589 }
0x1334   :  { %v4591_v31 = vunpack.i.l.bf16 %v4590_v30  ;;  %v2106_v62 = vpop.permute.xlu1 %2105  ;;  %v4592_v34 = vunpack.i.h.bf16 %v4590_v30 }
0x1335   :  { %4266 = vmatpush.xpose.msk.msrb.mxu0 %vm140_vm2, %v2106_v62 }
0x1336   :  { %2192 = vmatpush.msrb.mxu3 %v4591_v31 }
0x1338   :  { %4267 = vmatmul.msk.f32.vlgmr.msrb.gmra.mxu0 %vm140_vm2, %v2093_v21  ;;  %2193 = vmatpush.msrb.mxu3 %v4592_v34 }
0x133a   :  { %2351 = vmatpush.msra.mxu3 %v4261_v40 }
0x133b   :  { %v2206_v50 = vpop.permute.xlu2 %2205 }
0x1340   :  { %4268 = vmatmul.msk.f32.gmra.mxu0 %vm140_vm2, %v2096_v25 }
0x1343   :  { %v2202_v51 = vpop.permute.xlu2 %2201 }
0x134b   :  { %v2497_v55 = vpop.permute.xlu2 %2496 }
0x1353   :  { %v2366_v57 = vpop.permute.xlu2 %2365 }
0x135b   :  { %v2491_v2 = vpop.permute.xlu2 %2490 }
0x1363   :  { %v2493_v12 = vpop.permute.xlu2 %2492 }
0x13b5   :  { %v2134_v35 = vpop.f32.mrf.mxu0 }
0x13b6   :  { %v2140_v36 = vmul.f32 0.35355338, %v2134_v35 }
0x13b8   :  { %v2142_v63 = vadd.f32 %v5903_v39, %v2140_v36 }
0x13ba   :  { %v2144_v18 = vsel %vm62_vm0, %v2142_v63, -inf }
0x13bb   :  { %2145 = vmax.xlane.f32.xlu0 %v2144_v18 }
0x13bd   :  { %v2137_v41 = vpop.f32.mrf.mxu0 }
0x13be   :  { %v2141_v42 = vmul.f32 0.35355338, %v2137_v41 }
0x13c0   :  { %v2143_v24 = vadd.f32 %v5910_v43, %v2141_v42 }
0x13c2   :  { %v2147_v44 = vsel %vm62_vm0, %v2143_v24, -inf }
0x13c3   :  { %2148 = vmax.xlane.f32.xlu0 %v2147_v44 }
0x142e   :  { %v2146_v45 = vpop.xlane.xlu0 %2145 }
0x142f   :  { %v2150_v32 = vsub.f32 %v2142_v63, %v2146_v45 }
0x1431   :  { %v2152_v1 = vmul.f32 1.442695, %v2150_v32 }
0x1433   :  { %4739 = vpow2.f32 %v2152_v1 }
0x1436   :  { %v2149_v46 = vpop.xlane.xlu0 %2148 }
0x1437   :  { %v2151_v23 = vsub.f32 %v2143_v24, %v2149_v46 }
0x1439   :  { %v4740_v47 = vpop.eup %4739  ;;  %v2154_v33 = vmul.f32 1.442695, %v2151_v23 }
0x143a   :  { %v2156_v48 = vsel %vm62_vm0, %v4740_v47, 0.0 }
0x143b   :  { %4741 = vpow2.f32 %v2154_v33  ;;  %2157 = vadd.xlane.f32.xlu0 %v2156_v48 }
0x1441   :  { %v4742_v16 = vpop.eup %4741 }
0x1442   :  { %v2159_v49 = vsel %vm62_vm0, %v4742_v16, 0.0 }
0x1443   :  { %2160 = vadd.xlane.f32.xlu1 %v2159_v49 }
0x144f   :  { %2207 = vrot.lane.b32.xlu0 %v2096_v25, %s6869_s21 }
0x1457   :  { %2203 = vrot.lane.b32.xlu0 %v2096_v25, %s6870_s24 }
0x145c   :  { %2359 = vrot.lane.b32.xlu1 %v2093_v21, %s6863_s20 }
0x145f   :  { %2494 = vrot.lane.b32.xlu0 %v2093_v21, %s6861_s26 }
0x1467   :  { %2363 = vrot.lane.b32.xlu0 %v2093_v21, %s6871_s0 }
0x146f   :  { %2361 = vrot.lane.b32.xlu0 %v2096_v25, %s6863_s20 }
0x14ae   :  { %v2158_v52 = vpop.xlane.xlu0 %2157 }
0x14af   :  { %4743 = vrcp.f32 %v2158_v52 }
0x14b5   :  { %v4744_v53 = vpop.eup %4743 }
0x14b6   :  { %v2164_v54 = vmul.f32 %v4744_v53, %v4740_v47  ;;  %v2161_v17 = vpop.xlane.xlu1 %2160 }
0x14b7   :  { %4745 = vrcp.f32 %v2161_v17 }
0x14b8   :  { %4269 = vmatmul.msk.f32.vlgmr.msrb.gmra.mxu3 %vm62_vm0, %v2164_v54 }
0x14b9   :  { %4289 = vmatpush.xpose.msk.msrb.mxu3 %vm140_vm2, %v2497_v55 }
0x14bd   :  { %v4746_v27 = vpop.eup %4745 }
0x14be   :  { %v2165_v37 = vmul.f32 %v4746_v27, %v4742_v16 }
0x14c0   :  { %4270 = vmatmul.msk.f32.gmra.mxu3 %vm62_vm0, %v2165_v37 }
0x14c1   :  { %v2208_v56 = vpop.permute.xlu0 %2207 }
0x14c2   :  { %4271 = vmatpush.xpose.msk.msra.mxu1 %vm140_vm2, %v2208_v56 }
0x14c6   :  { %4272 = vmatpush.xpose.msk.msra.mxu1 %vm140_vm2, %v2206_v50 }
0x14c9   :  { %v2204_v9 = vpop.permute.xlu0 %2203  ;;  %4273 = vmatmul.msk.f32.vlgmr.msra.gmra.mxu1 %vm140_vm2, %v2202_v51 }
0x14ca   :  { %4281 = vmatpush.xpose.msk.msrb.mxu1 %vm140_vm2, %v2366_v57 }
0x14ce   :  { %v2360_v60 = vpop.permute.xlu1 %2359 }
0x14d1   :  { %v2495_v7 = vpop.permute.xlu0 %2494  ;;  %4274 = vmatmul.msk.f32.gmra.mxu1 %vm140_vm2, %v2204_v9 }
0x14d2   :  { %4290 = vmatpush.xpose.msk.msrb.mxu3 %vm140_vm2, %v2495_v7 }
0x14d9   :  { %v2364_v59 = vpop.permute.xlu0 %2363 }
0x14da   :  { %4282 = vmatpush.xpose.msk.msrb.mxu1 %vm140_vm2, %v2364_v59 }
0x14dd   :  { %4283 = vmatmul.msk.f32.vlgmr.msrb.gmra.mxu1 %vm140_vm2, %v2360_v60 }
0x14e1   :  { %v2362_v28 = vpop.permute.xlu0 %2361 }
0x14e5   :  { %4284 = vmatmul.msk.f32.gmra.mxu1 %vm140_vm2, %v2362_v28 }
0x153b   :  { %v2195_v61 = vpop.f32.mrf.mxu3 }
0x153c   :  { %4279 = vmatmul.msk.f32.vlgmr.msra.gmra.mxu3 %vm140_vm2, %v2195_v61 }
0x1543   :  { %v2198_v14 = vpop.f32.mrf.mxu3 }
0x1544   :  { %4280 = vmatmul.msk.f32.gmra.mxu3 %vm140_vm2, %v2198_v14 }
0x1546   :  { %v2234_v0 = vpop.f32.mrf.mxu1 }
0x1547   :  { %v2240_v38 = vmul.f32 0.35355338, %v2234_v0 }
0x1549   :  { %v2242_v3 = vadd.f32 %v5903_v39, %v2240_v38 }
0x154b   :  { %v2244_v5 = vsel %vm62_vm0, %v2242_v3, -inf }
0x154c   :  { %2245 = vmax.xlane.f32.xlu2 %v2244_v5  ;;  %4291 = vmatmul.msk.f32.vlgmr.msrb.gmra.mxu3 %vm140_vm2, %v2491_v2 }
0x154e   :  { %v2237_v6 = vpop.f32.mrf.mxu1 }
0x154f   :  { %v2241_v10 = vmul.f32 0.35355338, %v2237_v6 }
0x1551   :  { %v2243_v11 = vadd.f32 %v5910_v43, %v2241_v10 }
0x1553   :  { %v2247_v13 = vsel %vm62_vm0, %v2243_v11, -inf }
0x1554   :  { %2248 = vmax.xlane.f32.xlu0 %v2247_v13  ;;  %4292 = vmatmul.msk.f32.gmra.mxu3 %vm140_vm2, %v2493_v12 }
0x155a   :  { %v2392_v15 = vpop.f32.mrf.mxu1 }
0x155b   :  { %v2398_v19 = vmul.f32 0.35355338, %v2392_v15 }
0x155d   :  { %v2400_v20 = vadd.f32 %v5903_v39, %v2398_v19 }
0x155f   :  { %v2402_v21 = vsel %vm62_vm0, %v2400_v20, -inf }
0x1560   :  { %2403 = vmax.xlane.f32.xlu1 %v2402_v21 }
0x1562   :  { %v2395_v22 = vpop.f32.mrf.mxu1 }
0x1563   :  { %v2399_v25 = vmul.f32 0.35355338, %v2395_v22 }
0x1565   :  { %v2401_v29 = vadd.f32 %v5910_v43, %v2399_v25 }
0x1567   :  { %v2405_v30 = vsel %vm62_vm0, %v2401_v29, -inf }
0x1568   :  { %2406 = vmax.xlane.f32.xlu0 %v2405_v30 }
0x1579   :  { %4594 = vrot.lane.b32.xlu1 %v5886_v26, %s6864_s19 }
0x1581   :  { %4604 = vrot.lane.b32.xlu1 %v5886_v26, %s6866_s30 }
0x15bf   :  { %v2246_v31 = vpop.xlane.xlu2 %2245  ;;  %v5953_v62 = vpop.f32.mrf.mxu3 }
0x15c0   :  { %v2250_v34 = vsub.f32 %v2242_v3, %v2246_v31  ;;  %v4262_v31 = vld [vmem:[%s6811_s5 + $0x48] sm:$0xff] }
0x15c1   :  { %2322 = vmatpush.msra.mxu0 %v4262_v31  ;;  %v4340_v31 = vld [vmem:[%s6816_s11 + $0x478] sm:$0xff] }
0x15c2   :  { %v2252_v35 = vmul.f32 1.442695, %v2250_v34 }
0x15c4   :  { %4747 = vpow2.f32 %v2252_v35 }
0x15c7   :  { %v5955_v36 = vpop.f32.mrf.mxu3  ;;  %v2249_v42 = vpop.xlane.xlu0 %2248 }
0x15c8   :  { %v2251_v45 = vsub.f32 %v2243_v11, %v2249_v42 }
0x15ca   :  { %v4748_v63 = vpop.eup %4747  ;;  %v2254_v47 = vmul.f32 1.442695, %v2251_v45 }
0x15cb   :  { %v2256_v18 = vsel %vm62_vm0, %v4748_v63, 0.0 }
0x15cc   :  { %2257 = vadd.xlane.f32.xlu0 %v2256_v18  ;;  %v4263_v18 = vld [vmem:[%s6811_s5 + $0x50] sm:$0xff] }
0x15cd   :  { %2480 = vmatpush.msrb.mxu0 %v4263_v18 }
0x15cf   :  { %v2523_v41 = vpop.f32.mrf.mxu3 }
0x15d0   :  { %v2529_v24 = vmul.f32 0.35355338, %v2523_v41 }
0x15d2   :  { %v2531_v44 = vadd.f32 %v5903_v39, %v2529_v24 }
0x15d3   :  { %v2404_v32 = vpop.xlane.xlu1 %2403 }
0x15d4   :  { %v2408_v1 = vsub.f32 %v2400_v20, %v2404_v32  ;;  %v2533_v46 = vsel %vm62_vm0, %v2531_v44, -inf }
0x15d5   :  { %2534 = vmax.xlane.f32.xlu2 %v2533_v46  ;;  %v4264_v46 = vld [vmem:[%s6811_s5 + $0x58] sm:$0xff] }
0x15d6   :  { %v2410_v23 = vmul.f32 1.442695, %v2408_v1 }
0x15d7   :  { %v2526_v33 = vpop.f32.mrf.mxu3 }
0x15d8   :  { %4749 = vpow2.f32 %v2410_v23  ;;  %v2530_v48 = vmul.f32 0.35355338, %v2526_v33 }
0x15d9   :  { %4751 = vpow2.f32 %v2254_v47 }
0x15da   :  { %v2532_v16 = vadd.f32 %v5910_v43, %v2530_v48 }
0x15db   :  { %v2407_v49 = vpop.xlane.xlu0 %2406 }
0x15dc   :  { %v2409_v40 = vsub.f32 %v2401_v29, %v2407_v49  ;;  %v2536_v50 = vsel %vm62_vm0, %v2532_v16, -inf }
0x15dd   :  { %2537 = vmax.xlane.f32.xlu2 %v2536_v50  ;;  %v4643_v50 = vld [vmem:[%s6812_s6 + $0x2] ss:$0 sm:$0xff] }
0x15de   :  { %v4750_v39 = vpop.eup %4749  ;;  %v2412_v51 = vmul.f32 1.442695, %v2409_v40 }
0x15df   :  { %v2414_v52 = vsel %vm62_vm0, %v4750_v39, 0.0  ;;  %v4752_v53 = vpop.eup %4751 }
0x15e0   :  { %2415 = vadd.xlane.f32.xlu0 %v2414_v52  ;;  %4753 = vpow2.f32 %v2412_v51  ;;  %v2259_v54 = vsel %vm62_vm0, %v4752_v53, 0.0 }
0x15e5   :  { %2260 = vadd.xlane.f32.xlu2 %v2259_v54 }
0x15e6   :  { %v4754_v17 = vpop.eup %4753 }
0x15e7   :  { %v2417_v43 = vsel %vm62_vm0, %v4754_v17, 0.0 }
0x15eb   :  { %v4595_v55 = vpop.permute.xlu1 %4594 }
0x15ec   :  { %v4596_v27 = vunpack.i.l.bf16 %v4595_v55  ;;  %v4597_v37 = vunpack.i.h.bf16 %v4595_v55 }
0x15ed   :  { %2418 = vadd.xlane.f32.xlu2 %v2417_v43 }
0x15ee   :  { %2292 = vmatpush.msra.mxu2 %v4596_v27 }
0x15f0   :  { %2293 = vmatpush.msra.mxu2 %v4597_v37 }
0x15f3   :  { %v4605_v56 = vpop.permute.xlu1 %4604 }
0x15f4   :  { %v4606_v57 = vunpack.i.l.bf16 %v4605_v56  ;;  %4599 = vrot.lane.b32.xlu0 %v5886_v26, %s6865_s1  ;;  %v4607_v9 = vunpack.i.h.bf16 %v4605_v56 }
0x15f6   :  { %2581 = vmatpush.msra.mxu1 %v4606_v57 }
0x15f8   :  { %2582 = vmatpush.msra.mxu1 %v4607_v9 }
0x163f   :  { %v2258_v7 = vpop.xlane.xlu0 %2257 }
0x1640   :  { %4755 = vrcp.f32 %v2258_v7 }
0x1646   :  { %v4756_v59 = vpop.eup %4755 }
0x1647   :  { %v2264_v60 = vmul.f32 %v4756_v59, %v4748_v63 }
0x1648   :  { %v2535_v28 = vpop.xlane.xlu2 %2534 }
0x1649   :  { %v2539_v61 = vsub.f32 %v2531_v44, %v2535_v28  ;;  %4275 = vmatmul.msk.f32.vlgmr.msra.gmra.mxu2 %vm62_vm0, %v2264_v60 }
0x164b   :  { %v2541_v14 = vmul.f32 1.442695, %v2539_v61 }
0x164d   :  { %4757 = vpow2.f32 %v2541_v14 }
0x1650   :  { %v2538_v0 = vpop.xlane.xlu2 %2537 }
0x1651   :  { %v2540_v38 = vsub.f32 %v2532_v16, %v2538_v0  ;;  %v4312_v0 = vld [vmem:[%s6815_s9 + $0x160] sm:$0xff] }
0x1653   :  { %v4758_v2 = vpop.eup %4757  ;;  %v2543_v3 = vmul.f32 1.442695, %v2540_v38  ;;  %v2416_v11 = vpop.xlane.xlu0 %2415  ;;  %v4313_v38 = vld [vmem:[%s6815_s9 + $0x168] sm:$0xff] }
0x1654   :  { %v2545_v5 = vsel %vm62_vm0, %v4758_v2, 0.0  ;;  %2757 = vmatpush.msra.mxu3 %v4313_v38  ;;  %v4364_v38 = vld [vmem:[%s6816_s11 + $0x538] sm:$0xff] }
0x1655   :  { %4759 = vpow2.f32 %v2543_v3  ;;  %2546 = vadd.xlane.f32.xlu2 %v2545_v5  ;;  %v4315_v3 = vld [vmem:[%s6815_s9 + $0x178] sm:$0xff]  ;;  %v4308_v5 = vld [vmem:[%s6815_s9 + $0x140] sm:$0xff] }
0x1658   :  { %v2261_v26 = vpop.xlane.xlu2 %2260 }
0x1659   :  { %4761 = vrcp.f32 %v2261_v26  ;;  %v4309_v26 = vld [vmem:[%s6815_s9 + $0x148] sm:$0xff] }
0x165a   :  { %4763 = vrcp.f32 %v2416_v11  ;;  %2758 = vmatpush.msra.mxu3 %v4309_v26  ;;  %v4304_v11 = vld [vmem:[%s6815_s9 + $0x120] sm:$0xff] }
0x165b   :  { %v4760_v6 = vpop.eup %4759 }
0x165c   :  { %v2548_v10 = vsel %vm62_vm0, %v4760_v6, 0.0 }
0x165d   :  { %2549 = vadd.xlane.f32.xlu2 %v2548_v10  ;;  %v4311_v10 = vld [vmem:[%s6815_s9 + $0x158] sm:$0xff] }
0x165f   :  { %v4762_v12 = vpop.eup %4761 }
0x1660   :  { %v2265_v13 = vmul.f32 %v4762_v12, %v4752_v53  ;;  %v2419_v15 = vpop.xlane.xlu2 %2418  ;;  %v4764_v20 = vpop.eup %4763  ;;  %v4305_v12 = vld [vmem:[%s6815_s9 + $0x128] sm:$0xff] }
0x1661   :  { %4765 = vrcp.f32 %v2419_v15  ;;  %v2422_v25 = vmul.f32 %v4764_v20, %v4750_v39  ;;  %2759 = vmatpush.msra.mxu3 %v4305_v12  ;;  %v4307_v15 = vld [vmem:[%s6815_s9 + $0x138] sm:$0xff]  ;;  %v4301_v20 = vld [vmem:[%s6815_s9 + $0x108] sm:$0xff] }
0x1662   :  { %4276 = vmatmul.msk.f32.gmra.mxu2 %vm62_vm0, %v2265_v13  ;;  %v4306_v13 = vld [vmem:[%s6815_s9 + $0x130] sm:$0xff] }
0x1663   :  { %2760 = vmatpush.msra.mxu3 %v4301_v20  ;;  %v4330_v20 = vld [vmem:[%s6816_s11 + $0x428] sm:$0xff] }
0x1666   :  { %v4600_v19 = vpop.permute.xlu0 %4599 }
0x1667   :  { %v4601_v21 = vunpack.i.l.bf16 %v4600_v19  ;;  %v4602_v22 = vunpack.i.h.bf16 %v4600_v19  ;;  %v4766_v29 = vpop.eup %4765  ;;  %v4300_v19 = vld [vmem:[%s6815_s9 + $0x100] sm:$0xff] }
0x1668   :  { %v2423_v30 = vmul.f32 %v4766_v29, %v4754_v17 }
0x1669   :  { %2450 = vmatpush.msrb.mxu2 %v4601_v21  ;;  %v4302_v21 = vld [vmem:[%s6815_s9 + $0x110] sm:$0xff] }
0x166b   :  { %2451 = vmatpush.msrb.mxu2 %v4602_v22  ;;  %v4303_v22 = vld [vmem:[%s6815_s9 + $0x118] sm:$0xff] }
0x166c   :  { %4285 = vmatmul.msk.f32.vlgmr.msrb.gmra.mxu2 %vm62_vm0, %v2422_v25 }
0x166d   :  { %2611 = vmatpush.msra.mxu2 %v4264_v46  ;;  %v4369_v46 = vld [vmem:[%s6816_s11 + $0x560] sm:$0xff] }
0x166f   :  { %2803 = vmatpush.msrb.mxu2 %v4315_v3  ;;  %v4381_v3 = vld [vmem:[%s6816_s11 + $0x5c0] sm:$0xff] }
0x1671   :  { %2804 = vmatpush.msrb.mxu2 %v4311_v10  ;;  %v4363_v10 = vld [vmem:[%s6816_s11 + $0x530] sm:$0xff] }
0x1673   :  { %2805 = vmatpush.msrb.mxu2 %v4307_v15  ;;  %v4380_v15 = vld [vmem:[%s6816_s11 + $0x5b8] sm:$0xff] }
0x1674   :  { %4286 = vmatmul.msk.f32.gmra.mxu2 %vm62_vm0, %v2423_v30 }
0x1675   :  { %2806 = vmatpush.msrb.mxu2 %v4303_v22  ;;  %v4347_v22 = vld [vmem:[%s6816_s11 + $0x4b0] sm:$0xff] }
0x16c8   :  { %v2547_v34 = vpop.xlane.xlu2 %2546 }
0x16c9   :  { %4767 = vrcp.f32 %v2547_v34  ;;  %v4372_v34 = vld [vmem:[%s6816_s11 + $0x578] sm:$0xff] }
0x16cc   :  { %v2295_v35 = vpop.f32.mrf.mxu2 }
0x16cd   :  { %4277 = vmatmul.msk.f32.vlgmr.msra.gmra.mxu0 %vm140_vm2, %v2295_v35  ;;  %v4339_v35 = vld [vmem:[%s6816_s11 + $0x470] sm:$0xff] }
0x16ce   :  { %2734 = vmatpush.msra.mxu0 %v4312_v0  ;;  %v4332_v0 = vld [vmem:[%s6816_s11 + $0x438] sm:$0xff] }
0x16cf   :  { %v4768_v63 = vpop.eup %4767 }
0x16d0   :  { %v2553_v41 = vmul.f32 %v4768_v63, %v4758_v2  ;;  %v2550_v42 = vpop.xlane.xlu2 %2549  ;;  %v4314_v2 = vld [vmem:[%s6815_s9 + $0x170] sm:$0xff]  ;;  %2735 = vmatpush.msra.mxu0 %v4308_v5 }
0x16d1   :  { %4769 = vrcp.f32 %v2550_v42  ;;  %2780 = vmatpush.msrb.mxu1 %v4314_v2  ;;  %v4371_v63 = vld [vmem:[%s6816_s11 + $0x570] sm:$0xff]  ;;  %v4370_v42 = vld [vmem:[%s6816_s11 + $0x568] sm:$0xff]  ;;  %v4349_v2 = vld [vmem:[%s6816_s11 + $0x4c0] sm:$0xff] }
0x16d2   :  { %4293 = vmatmul.msk.f32.vlgmr.msra.gmra.mxu1 %vm62_vm0, %v2553_v41  ;;  %2736 = vmatpush.msra.mxu0 %v4304_v11  ;;  %v4338_v41 = vld [vmem:[%s6816_s11 + $0x468] sm:$0xff]  ;;  %v4645_v11 = vld [vmem:[%s6814_s8 + $0x2] ss:$0 sm:$0xff] }
0x16d4   :  { %2737 = vmatpush.msra.mxu0 %v4300_v19 }
0x16d7   :  { %v4770_v24 = vpop.eup %4769 }
0x16d8   :  { %v2554_v44 = vmul.f32 %v4770_v24, %v4760_v6  ;;  %v4310_v6 = vld [vmem:[%s6815_s9 + $0x150] sm:$0xff]  ;;  %v4356_v24 = vld [vmem:[%s6816_s11 + $0x4f8] sm:$0xff] }
0x16d9   :  { %2781 = vmatpush.msrb.mxu1 %v4310_v6  ;;  %2915 = vmatpush.msrb.mxu3 %v4356_v24  ;;  %v4331_v6 = vld [vmem:[%s6816_s11 + $0x430] sm:$0xff] }
0x16da   :  { %4294 = vmatmul.msk.f32.gmra.mxu1 %vm62_vm0, %v2554_v44 }
0x16db   :  { %2782 = vmatpush.msrb.mxu1 %v4306_v13  ;;  %v4348_v13 = vld [vmem:[%s6816_s11 + $0x4b8] sm:$0xff] }
0x16dd   :  { %2783 = vmatpush.msrb.mxu1 %v4302_v21 }
0x16df   :  { %2938 = vmatpush.msra.mxu1 %v4372_v34  ;;  %v4329_v34 = vld [vmem:[%s6816_s11 + $0x420] sm:$0xff] }
0x16e1   :  { %2939 = vmatpush.msra.mxu1 %v4371_v63 }
0x16e3   :  { %2940 = vmatpush.msra.mxu1 %v4370_v42 }
0x16e5   :  { %v2298_v45 = vpop.f32.mrf.mxu2  ;;  %2941 = vmatpush.msra.mxu1 %v4369_v46  ;;  %v4326_v46 = vld [vmem:[%s6816_s11 + $0x408] sm:$0xff] }
0x16e6   :  { %4278 = vmatmul.msk.f32.gmra.mxu0 %vm140_vm2, %v2298_v45  ;;  %v4388_v45 = vld [vmem:[%s6816_s11 + $0x5f8] sm:$0xff] }
0x16ef   :  { %v2453_v32 = vpop.f32.mrf.mxu2 }
0x16f0   :  { %4287 = vmatmul.msk.f32.vlgmr.msrb.gmra.mxu0 %vm140_vm2, %v2453_v32  ;;  %v4355_v32 = vld [vmem:[%s6816_s11 + $0x4f0] sm:$0xff] }
0x16f1   :  { %2892 = vmatpush.msrb.mxu0 %v4340_v31  ;;  %2916 = vmatpush.msrb.mxu3 %v4355_v32  ;;  %v4359_v32 = vld [vmem:[%s6816_s11 + $0x510] sm:$0xff] }
0x16f3   :  { %2893 = vmatpush.msrb.mxu0 %v4339_v35  ;;  %v4361_v35 = vld [vmem:[%s6816_s11 + $0x520] sm:$0xff] }
0x16f5   :  { %2894 = vmatpush.msrb.mxu0 %v4338_v41  ;;  %v4360_v41 = vld [vmem:[%s6816_s11 + $0x518] sm:$0xff] }
0x16f7   :  { %v2456_v1 = vpop.f32.mrf.mxu2 }
0x16f8   :  { %4288 = vmatmul.msk.f32.gmra.mxu0 %vm140_vm2, %v2456_v1  ;;  %v4337_v1 = vld [vmem:[%s6816_s11 + $0x460] sm:$0xff] }
0x16f9   :  { %2895 = vmatpush.msrb.mxu0 %v4337_v1  ;;  %v4378_v1 = vld [vmem:[%s6816_s11 + $0x5a8] sm:$0xff] }
0x174a   :  { %v2324_v33 = vpop.f32.mrf.mxu0 }
0x174b   :  { %v2354_v49 = vadd.f32 %v5953_v62, %v2324_v33 }
0x174f   :  { %v2584_v23 = vpop.f32.mrf.mxu1 }
0x1750   :  { %4295 = vmatmul.msk.f32.vlgmr.msra.gmra.mxu2 %vm140_vm2, %v2584_v23  ;;  %v4387_v23 = vld [vmem:[%s6816_s11 + $0x5f0] sm:$0xff] }
0x1751   :  { %2961 = vmatpush.msra.mxu2 %v4388_v45  ;;  %v4346_v45 = vld [vmem:[%s6816_s11 + $0x4a8] sm:$0xff] }
0x1753   :  { %2962 = vmatpush.msra.mxu2 %v4387_v23  ;;  %v4345_v23 = vld [vmem:[%s6816_s11 + $0x4a0] sm:$0xff] }
0x1757   :  { %v2587_v47 = vpop.f32.mrf.mxu1 }
0x1758   :  { %4296 = vmatmul.msk.f32.gmra.mxu2 %vm140_vm2, %v2587_v47 }
0x1763   :  { %v2327_v48 = vpop.f32.mrf.mxu0 }
0x1764   :  { %v2357_v54 = vadd.f32 %v5955_v36, %v2327_v48  ;;  %v4354_v48 = vld [vmem:[%s6816_s11 + $0x4e8] sm:$0xff] }
0x1765   :  { %2917 = vmatpush.msrb.mxu3 %v4354_v48  ;;  %v4325_v48 = vld [vmem:[%s6816_s11 + $0x400] sm:$0xff] }
0x176d   :  { %v2482_v16 = vpop.f32.mrf.mxu0 }
0x176e   :  { %v2488_v40 = vadd.f32 %v2482_v16, %v2354_v49  ;;  %v4386_v16 = vld [vmem:[%s6816_s11 + $0x5e8] sm:$0xff] }
0x176f   :  { %2963 = vmatpush.msra.mxu2 %v4386_v16  ;;  %v4344_v16 = vld [vmem:[%s6816_s11 + $0x498] sm:$0xff] }
0x1775   :  { %v2485_v53 = vpop.f32.mrf.mxu0 }
0x1776   :  { %v2489_v55 = vadd.f32 %v2485_v53, %v2357_v54  ;;  %v4335_v53 = vld [vmem:[%s6816_s11 + $0x450] sm:$0xff] }
0x1777   :  { %v4367_v54 = vld [vmem:[%s6816_s11 + $0x550] sm:$0xff] }
0x17d3   :  { %v2613_v39 = vpop.f32.mrf.mxu2 }
0x17d4   :  { %v2619_v51 = vadd.f32 %v2613_v39, %v2488_v40  ;;  %v4336_v40 = vld [vmem:[%s6816_s11 + $0x458] sm:$0xff]  ;;  %v4353_v39 = vld [vmem:[%s6816_s11 + $0x4e0] sm:$0xff] }
0x17d5   :  { %2896 = vmatpush.msrb.mxu0 %v4336_v40  ;;  %2918 = vmatpush.msrb.mxu3 %v4353_v39  ;;  %v4376_v40 = vld [vmem:[%s6816_s11 + $0x598] sm:$0xff]  ;;  %v4375_v39 = vld [vmem:[%s6816_s11 + $0x590] sm:$0xff] }
0x17d6   :  { %v2626_v52 = vadd.f32 %v4643_v50, %v2619_v51  ;;  %v4385_v51 = vld [vmem:[%s6816_s11 + $0x5e0] sm:$0xff] }
0x17d7   :  { %2964 = vmatpush.msra.mxu2 %v4385_v51  ;;  %2897 = vmatpush.msrb.mxu0 %v4335_v53  ;;  %v4342_v51 = vld [vmem:[%s6816_s11 + $0x488] sm:$0xff]  ;;  %v4341_v53 = vld [vmem:[%s6816_s11 + $0x480] sm:$0xff] }
0x17d8   :  { %v2628_v17 = vadd.f32 %v2626_v52, %v5873_v4 }
0x17da   :  { %v2634_v27 = vsel %vm100_vm1, %v2628_v17, 0.0 }
0x17db   :  { %v2616_v43 = vpop.f32.mrf.mxu2  ;;  %2635 = vadd.xlane.f32.xlu0 %v2634_v27 }
0x17dc   :  { %v2620_v37 = vadd.f32 %v2616_v43, %v2489_v55  ;;  %v4384_v55 = vld [vmem:[%s6816_s11 + $0x5d8] sm:$0xff]  ;;  %v4334_v43 = vld [vmem:[%s6816_s11 + $0x448] sm:$0xff] }
0x17dd   :  { %2965 = vmatpush.msra.mxu2 %v4384_v55  ;;  %2898 = vmatpush.msrb.mxu0 %v4334_v43 }
0x17de   :  { %v2627_v62 = vadd.f32 %v4643_v50, %v2620_v37  ;;  %v4368_v50 = vld [vmem:[%s6816_s11 + $0x558] sm:$0xff]  ;;  %v4366_v37 = vld [vmem:[%s6816_s11 + $0x548] sm:$0xff] }
0x17df   :  { %2942 = vmatpush.msra.mxu1 %v4368_v50  ;;  %v4343_v50 = vld [vmem:[%s6816_s11 + $0x490] sm:$0xff] }
0x17e0   :  { %v2629_v56 = vadd.f32 %v2627_v62, %v5877_v58  ;;  %v4351_v62 = vld [vmem:[%s6816_s11 + $0x4d0] sm:$0xff] }
0x17e1   :  { %2943 = vmatpush.msra.mxu1 %v4367_v54  ;;  %v4373_v54 = vld [vmem:[%s6816_s11 + $0x580] sm:$0xff] }
0x17e2   :  { %v2637_v57 = vsel %vm100_vm1, %v2629_v56, 0.0 }
0x17e3   :  { %2638 = vadd.xlane.f32.xlu1 %v2637_v57  ;;  %2944 = vmatpush.msra.mxu1 %v4366_v37 }
0x184e   :  { %v2636_v9 = vpop.xlane.xlu0 %2635 }
0x184f   :  { %v2640_v7 = vmul.f32 %v2636_v9, %v5079_v8  ;;  %v4333_v9 = vld [vmem:[%s6816_s11 + $0x440] sm:$0xff] }
0x1850   :  { %2899 = vmatpush.msrb.mxu0 %v4333_v9 }
0x1851   :  { %v6000_v59 = vsub.f32 %v2628_v17, %v2640_v7  ;;  %v4352_v17 = vld [vmem:[%s6816_s11 + $0x4d8] sm:$0xff]  ;;  %v4365_v7 = vld [vmem:[%s6816_s11 + $0x540] sm:$0xff] }
0x1852   :  { %2919 = vmatpush.msrb.mxu3 %v4352_v17  ;;  %2945 = vmatpush.msra.mxu1 %v4365_v7  ;;  %v4316_v17 = vld [vmem:[%s6818_s10 + $0x8] sm:$0xf] }
0x1853   :  { %v2644_v4 = vmul.f32 %v6000_v59, %v6000_v59  ;;  %2900 = vmatpush.msrb.mxu0 %v4332_v0  ;;  %v2708_v55 = vperm.slane %v4316_v17, 0  ;;  %v2709_v9 = vperm.slane %v4316_v17, 1 }
0x1854   :  { %2920 = vmatpush.msrb.mxu3 %v4351_v62  ;;  %2946 = vmatpush.msra.mxu1 %v4364_v38 }
0x1855   :  { %v2646_v36 = vsel %vm100_vm1, %v2644_v4, 0.0  ;;  %2901 = vmatpush.msrb.mxu0 %v4331_v6 }
0x1856   :  { %v2639_v60 = vpop.xlane.xlu1 %2638  ;;  %2647 = vadd.xlane.f32.xlu2 %v2646_v36  ;;  %v4350_v36 = vld [vmem:[%s6816_s11 + $0x4c8] sm:$0xff]  ;;  %2947 = vmatpush.msra.mxu1 %v4363_v10 }
0x1857   :  { %v2641_v28 = vmul.f32 %v2639_v60, %v5079_v8  ;;  %v4382_v60 = vld [vmem:[%s6816_s11 + $0x5c8] sm:$0xff]  ;;  %2921 = vmatpush.msrb.mxu3 %v4350_v36  ;;  %2902 = vmatpush.msrb.mxu0 %v4330_v20 }
0x1859   :  { %v6006_v61 = vsub.f32 %v2629_v56, %v2641_v28  ;;  %v4383_v56 = vld [vmem:[%s6816_s11 + $0x5d0] sm:$0xff]  ;;  %v4644_v28 = vld [vmem:[%s6813_s7 + $0x2] ss:$0 sm:$0xff]  ;;  %2922 = vmatpush.msrb.mxu3 %v4349_v2  ;;  %2903 = vmatpush.msrb.mxu0 %v4329_v34 }
0x185a   :  { %2966 = vmatpush.msra.mxu2 %v4383_v56 }
0x185b   :  { %v2645_v58 = vmul.f32 %v6006_v61, %v6006_v61  ;;  %2923 = vmatpush.msrb.mxu3 %v4348_v13 }
0x185c   :  { %2967 = vmatpush.msra.mxu2 %v4382_v60 }
0x185d   :  { %v2649_v14 = vsel %vm100_vm1, %v2645_v58, 0.0  ;;  %2924 = vmatpush.msrb.mxu3 %v4347_v22 }
0x185e   :  { %2650 = vadd.xlane.f32.xlu2 %v2649_v14  ;;  %2968 = vmatpush.msra.mxu2 %v4381_v3 }
0x185f   :  { %2925 = vmatpush.msrb.mxu3 %v4346_v45 }
0x1860   :  { %2969 = vmatpush.msra.mxu2 %v4380_v15 }
0x1861   :  { %2926 = vmatpush.msrb.mxu3 %v4345_v23 }
0x1863   :  { %2927 = vmatpush.msrb.mxu3 %v4344_v16 }
0x1865   :  { %2928 = vmatpush.msrb.mxu3 %v4343_v50 }
0x1867   :  { %2929 = vmatpush.msrb.mxu3 %v4342_v51 }
0x1869   :  { %2930 = vmatpush.msrb.mxu3 %v4341_v53  ;;  %v4394_v53 = vld [vmem:[%s6808_s3 + $0x70] sm:$0xff] }
0x18c9   :  { %v2648_v25 = vpop.xlane.xlu2 %2647 }
0x18ca   :  { %v2652_v29 = vmul.f32 %v2648_v25, %v5079_v8  ;;  %v4379_v25 = vld [vmem:[%s6816_s11 + $0x5b0] sm:$0xff] }
0x18cb   :  { %2970 = vmatpush.msra.mxu2 %v4379_v25 }
0x18cc   :  { %v6060_v30 = vadd.f32 1e-05, %v2652_v29 }
0x18cd   :  { %2971 = vmatpush.msra.mxu2 %v4378_v1 }
0x18ce   :  { %4771 = vrsqrt.f32 %v6060_v30  ;;  %vm2662_vm3 = vweird.f32 %v6060_v30 }
0x18d1   :  { %v2651_v18 = vpop.xlane.xlu2 %2650 }
0x18d2   :  { %v2653_v44 = vmul.f32 %v2651_v18, %v5079_v8  ;;  %v4328_v18 = vld [vmem:[%s6816_s11 + $0x418] sm:$0xff] }
0x18d3   :  { %2904 = vmatpush.msrb.mxu0 %v4328_v18 }
0x18d4   :  { %v6100_v47 = vpop.eup %4771  ;;  %v6102_v33 = vadd.f32 1e-05, %v2653_v44 }
0x18d5   :  { %v2657_v49 = vmul.f32 %v6100_v47, %v6060_v30  ;;  %vm2663_vm15 = vweird.f32 %v6100_v47 }
0x18d6   :  { %4773 = vrsqrt.f32 %v6102_v33  ;;  %vm2664_vm4 = vmor %vm2662_vm3, %vm2663_vm15  ;;  %vm2672_vm6 = vweird.f32 %v6102_v33 }
0x18d7   :  { %v2658_v52 = vmul.f32 %v6100_v47, %v2657_v49  ;;  %v4357_v49 = vld [vmem:[%s6816_s11 + $0x500] sm:$0xff] }
0x18d9   :  { %v2659_v27 = vmul.f32 0.5, %v2658_v52  ;;  %v4374_v52 = vld [vmem:[%s6816_s11 + $0x588] sm:$0xff] }
0x18db   :  { %v2660_v57 = vsub.f32 1.5, %v2659_v27  ;;  %v2710_v27 = vperm.slane %v4316_v17, 2 }
0x18dc   :  { %v4774_v4 = vpop.eup %4773 }
0x18dd   :  { %v2661_v58 = vmul.f32 %v6100_v47, %v2660_v57  ;;  %v2667_v14 = vmul.f32 %v4774_v4, %v6102_v33  ;;  %vm2673_vm5 = vweird.f32 %v4774_v4  ;;  %v4377_v33 = vld [vmem:[%s6816_s11 + $0x5a0] sm:$0xff] }
0x18de   :  { %vm2674_vm7 = vmor %vm2672_vm6, %vm2673_vm5  ;;  %2972 = vmatpush.msra.mxu2 %v4377_v33 }
0x18df   :  { %v2665_v5 = vsel %vm2664_vm4, %v6100_v47, %v2661_v58  ;;  %v2668_v26 = vmul.f32 %v4774_v4, %v2667_v14  ;;  %v4358_v47 = vld [vmem:[%s6816_s11 + $0x508] sm:$0xff] }
0x18e0   :  { %v2676_v12 = vmul.f32 %v2665_v5, %v6000_v59  ;;  %v4362_v59 = vld [vmem:[%s6816_s11 + $0x528] sm:$0xff]  ;;  %2973 = vmatpush.msra.mxu2 %v4376_v40 }
0x18e1   :  { %v2669_v19 = vmul.f32 0.5, %v2668_v26  ;;  %2948 = vmatpush.msra.mxu1 %v4362_v59  ;;  %v4646_v59 = vld [vmem:[%s6817_s12 + $0x2] ss:$0 sm:$0xff] }
0x18e2   :  { %v2681_v21 = vmul.f32 %v4644_v28, %v2676_v12  ;;  %2974 = vmatpush.msra.mxu2 %v4375_v39 }
0x18e3   :  { %v2670_v29 = vsub.f32 1.5, %v2669_v19  ;;  %2949 = vmatpush.msra.mxu1 %v4361_v35 }
0x18e4   :  { %v6212_v30 = vadd.f32 %v4645_v11, %v2681_v21  ;;  %2975 = vmatpush.msra.mxu2 %v4374_v52 }
0x18e5   :  { %v2671_v31 = vmul.f32 %v4774_v4, %v2670_v29  ;;  %2950 = vmatpush.msra.mxu1 %v4360_v41 }
0x18e6   :  { %4317 = vmatmul.msk.f32.vlgmr.msra.gmra.mxu0 %vm100_vm1, %v6212_v30  ;;  %4319 = vmatmul.msk.f32.vlgmr.msra.gmra.mxu3 %vm100_vm1, %v6212_v30 }
0x18e7   :  { %v2675_v63 = vsel %vm2674_vm7, %v4774_v4, %v2671_v31  ;;  %4321 = vmatmul.msk.f32.vlgmr.msrb.gmra.mxu1 %vm100_vm1, %v6212_v30  ;;  %4323 = vmatmul.msk.f32.vlgmr.msrb.gmra.mxu2 %vm100_vm1, %v6212_v30  ;;  %v2711_v4 = vperm.slane %v4316_v17, 3  ;;  %v4392_v17 = vld [vmem:[%s6808_s3 + $0x60] sm:$0xff] }
0x18e8   :  { %v2677_v42 = vmul.f32 %v2675_v63, %v6006_v61  ;;  %v4327_v61 = vld [vmem:[%s6816_s11 + $0x410] sm:$0xff]  ;;  %2951 = vmatpush.msra.mxu1 %v4359_v32  ;;  %2976 = vmatpush.msra.mxu2 %v4373_v54  ;;  %v4393_v54 = vld [vmem:[%s6808_s3 + $0x68] sm:$0xff] }
0x18e9   :  { %2905 = vmatpush.msrb.mxu0 %v4327_v61 }
0x18ea   :  { %v2682_v24 = vmul.f32 %v4644_v28, %v2677_v42  ;;  %2952 = vmatpush.msra.mxu1 %v4358_v47 }
0x18eb   :  { %2906 = vmatpush.msrb.mxu0 %v4326_v46 }
0x18ec   :  { %v6236_v44 = vadd.f32 %v4645_v11, %v2682_v24  ;;  %2953 = vmatpush.msra.mxu1 %v4357_v49 }
0x18ed   :  { %2907 = vmatpush.msrb.mxu0 %v4325_v48 }
0x18ee   :  { %4318 = vmatmul.msk.f32.gmra.mxu0 %vm100_vm1, %v6236_v44  ;;  %4320 = vmatmul.msk.f32.gmra.mxu3 %vm100_vm1, %v6236_v44 }
0x18ef   :  { %4322 = vmatmul.msk.f32.gmra.mxu1 %vm100_vm1, %v6236_v44  ;;  %4324 = vmatmul.msk.f32.gmra.mxu2 %vm100_vm1, %v6236_v44 }
0x1963   :  { %v2739_v43 = vpop.f32.mrf.mxu0 }
0x1964   :  { %v2740_v37 = vadd.f32 %v2739_v43, %v2708_v55  ;;  %v2785_v62 = vpop.f32.mrf.mxu1 }
0x1965   :  { %v2786_v56 = vadd.f32 %v2785_v62, %v2710_v27 }
0x1966   :  { %v2814_v57 = vmax.f32 %v2740_v37, 0.0 }
0x1967   :  { %v2816_v7 = vmax.f32 %v2786_v56, 0.0 }
0x1968   :  { %2908 = vmatmul.f32.vlgmr.msrb.gmra.mxu0 %v2814_v57 }
0x1969   :  { %2954 = vmatmul.f32.vlgmr.msra.gmra.mxu1 %v2816_v7  ;;  %v2762_v36 = vpop.f32.mrf.mxu3 }
0x196a   :  { %v2763_v60 = vadd.f32 %v2762_v36, %v2709_v9  ;;  %v2808_v28 = vpop.f32.mrf.mxu2 }
0x196b   :  { %v2809_v58 = vadd.f32 %v2808_v28, %v2711_v4  ;;  %v2742_v14 = vpop.f32.mrf.mxu0 }
0x196c   :  { %v2815_v0 = vmax.f32 %v2763_v60, 0.0  ;;  %v2743_v38 = vadd.f32 %v2742_v14, %v2708_v55  ;;  %v2788_v2 = vpop.f32.mrf.mxu1  ;;  %v4647_v14 = vld [vmem:[%s6819_s13 + $0x2] ss:$0 sm:$0xff] }
0x196d   :  { %v2817_v3 = vmax.f32 %v2809_v58, 0.0  ;;  %v2789_v5 = vadd.f32 %v2788_v2, %v2710_v27  ;;  %v4648_v2 = vld [vmem:[%s6820_s14 + $0x2] ss:$0 sm:$0xff] }
0x196e   :  { %v2818_v26 = vmax.f32 %v2743_v38, 0.0  ;;  %2931 = vmatmul.f32.vlgmr.msrb.gmra.mxu3 %v2815_v0 }
0x196f   :  { %v2820_v6 = vmax.f32 %v2789_v5, 0.0  ;;  %2977 = vmatmul.f32.vlgmr.msra.gmra.mxu2 %v2817_v3 }
0x1970   :  { %2911 = vmatmul.f32.gmra.mxu0 %v2818_v26 }
0x1971   :  { %2957 = vmatmul.f32.gmra.mxu1 %v2820_v6  ;;  %v2765_v10 = vpop.f32.mrf.mxu3 }
0x1972   :  { %v2766_v11 = vadd.f32 %v2765_v10, %v2709_v9  ;;  %v2811_v12 = vpop.f32.mrf.mxu2 }
0x1973   :  { %v2812_v13 = vadd.f32 %v2811_v12, %v2711_v4 }
0x1974   :  { %v2819_v15 = vmax.f32 %v2766_v11, 0.0 }
0x1975   :  { %v2821_v19 = vmax.f32 %v2812_v13, 0.0 }
0x1976   :  { %2934 = vmatmul.f32.gmra.mxu3 %v2819_v15 }
0x1977   :  { %2980 = vmatmul.f32.gmra.mxu2 %v2821_v19 }
0x19e5   :  { %v2909_v20 = vpop.f32.mrf.mxu0 }
0x19e6   :  { %v2910_v21 = vadd.f32 %v4646_v59, %v2909_v20  ;;  %v2955_v22 = vpop.f32.mrf.mxu1  ;;  %v4649_v20 = vld [vmem:[%s6809_s4 + $0x3] ss:$0 sm:$0xff] }
0x19ed   :  { %v2912_v35 = vpop.f32.mrf.mxu0 }
0x19ee   :  { %v2913_v18 = vadd.f32 %v4646_v59, %v2912_v35  ;;  %v2958_v45 = vpop.f32.mrf.mxu1 }
0x19f1   :  { %v2932_v25 = vpop.f32.mrf.mxu3 }
0x19f2   :  { %v2933_v29 = vadd.f32 %v2932_v25, %v2910_v21  ;;  %v2978_v31 = vpop.f32.mrf.mxu2 }
0x19f4   :  { %v2956_v34 = vadd.f32 %v2955_v22, %v2933_v29 }
0x19f6   :  { %v2979_v63 = vadd.f32 %v2978_v31, %v2956_v34 }
0x19f8   :  { %v2984_v41 = vadd.f32 %v2979_v63, %v6212_v30 }
0x19f9   :  { %v2935_v42 = vpop.f32.mrf.mxu3 }
0x19fa   :  { %v2936_v24 = vadd.f32 %v2935_v42, %v2913_v18  ;;  %v2990_v61 = vsel %vm100_vm1, %v2984_v41, 0.0  ;;  %v2981_v1 = vpop.f32.mrf.mxu2 }
0x19fb   :  { %2991 = vadd.xlane.f32.xlu2 %v2990_v61 }
0x19fc   :  { %v2959_v32 = vadd.f32 %v2958_v45, %v2936_v24  ;;  %v6364_v24 = vld [vmem:[%s6810_s2] sm:$0xff] }
0x19fe   :  { %v2982_v46 = vadd.f32 %v2981_v1, %v2959_v32 }
0x1a00   :  { %v2985_v23 = vadd.f32 %v2982_v46, %v6236_v44  ;;  %v4395_v44 = vld [vmem:[%s6808_s3 + $0x78] sm:$0xff]  ;;  %v6371_v46 = vld [vmem:[%s6810_s2 + $0x8] sm:$0xff] }
0x1a01   :  { %3072 = vmatpush.msra.mxu0 %v4395_v44 }
0x1a02   :  { %v2993_v47 = vsel %vm100_vm1, %v2985_v23, 0.0 }
0x1a03   :  { %2994 = vadd.xlane.f32.xlu2 %v2993_v47  ;;  %3073 = vmatpush.msra.mxu0 %v4394_v53  ;;  %v4399_v53 = vld [vmem:[%s6811_s5 + $0x60] sm:$0xff] }
0x1a05   :  { %3074 = vmatpush.msra.mxu0 %v4393_v54 }
0x1a07   :  { %3075 = vmatpush.msra.mxu0 %v4392_v17 }
0x1a6e   :  { %v2992_v33 = vpop.xlane.xlu2 %2991 }
0x1a6f   :  { %v2996_v48 = vmul.f32 %v2992_v33, %v5079_v8 }
0x1a71   :  { %v2998_v16 = vsub.f32 %v2984_v41, %v2996_v48 }
0x1a73   :  { %v3000_v49 = vmul.f32 %v2998_v16, %v2998_v16 }
0x1a75   :  { %v3002_v30 = vsel %vm100_vm1, %v3000_v49, 0.0 }
0x1a76   :  { %3003 = vadd.xlane.f32.xlu2 %v3002_v30  ;;  %v2995_v40 = vpop.xlane.xlu2 %2994 }
0x1a77   :  { %v2997_v50 = vmul.f32 %v2995_v40, %v5079_v8 }
0x1a79   :  { %v2999_v39 = vsub.f32 %v2985_v23, %v2997_v50 }
0x1a7b   :  { %v3001_v51 = vmul.f32 %v2999_v39, %v2999_v39 }
0x1a7d   :  { %v3005_v52 = vsel %vm100_vm1, %v3001_v51, 0.0 }
0x1a7e   :  { %3006 = vadd.xlane.f32.xlu0 %v3005_v52 }
0x1ae9   :  { %v3004_v55 = vpop.xlane.xlu2 %3003 }
0x1aea   :  { %v3008_v27 = vmul.f32 %v3004_v55, %v5079_v8 }
0x1aec   :  { %v3010_v43 = vadd.f32 1e-05, %v3008_v27 }
0x1aee   :  { %4775 = vrsqrt.f32 %v3010_v43  ;;  %vm3018_vm9 = vweird.f32 %v3010_v43 }
0x1af1   :  { %v3007_v37 = vpop.xlane.xlu0 %3006 }
0x1af2   :  { %v3009_v62 = vmul.f32 %v3007_v37, %v5079_v8 }
0x1af4   :  { %v4776_v56 = vpop.eup %4775  ;;  %v3011_v57 = vadd.f32 1e-05, %v3009_v62 }
0x1af5   :  { %v3013_v9 = vmul.f32 %v4776_v56, %v3010_v43  ;;  %vm3019_vm8 = vweird.f32 %v4776_v56 }
0x1af6   :  { %4777 = vrsqrt.f32 %v3011_v57  ;;  %vm3020_vm10 = vmor %vm3018_vm9, %vm3019_vm8  ;;  %vm3028_vm12 = vweird.f32 %v3011_v57 }
0x1af7   :  { %v3014_v7 = vmul.f32 %v4776_v56, %v3013_v9 }
0x1af9   :  { %v3015_v4 = vmul.f32 0.5, %v3014_v7 }
0x1afb   :  { %v3016_v36 = vsub.f32 1.5, %v3015_v4 }
0x1afc   :  { %v4778_v60 = vpop.eup %4777 }
0x1afd   :  { %v3017_v28 = vmul.f32 %v4776_v56, %v3016_v36  ;;  %v3023_v58 = vmul.f32 %v4778_v60, %v3011_v57  ;;  %vm3029_vm11 = vweird.f32 %v4778_v60 }
0x1afe   :  { %vm3030_vm13 = vmor %vm3028_vm12, %vm3029_vm11 }
0x1aff   :  { %v3021_v0 = vsel %vm3020_vm10, %v4776_v56, %v3017_v28  ;;  %v3024_v38 = vmul.f32 %v4778_v60, %v3023_v58 }
0x1b00   :  { %v3032_v3 = vmul.f32 %v3021_v0, %v2998_v16 }
0x1b01   :  { %v3025_v5 = vmul.f32 0.5, %v3024_v38 }
0x1b02   :  { %v3037_v26 = vmul.f32 %v4647_v14, %v3032_v3 }
0x1b03   :  { %v3026_v6 = vsub.f32 1.5, %v3025_v5 }
0x1b04   :  { %v6334_v10 = vadd.f32 %v4648_v2, %v3037_v26 }
0x1b05   :  { %v3027_v11 = vmul.f32 %v4778_v60, %v3026_v6 }
0x1b06   :  { %4397 = vmatmul.msk.f32.vlgmr.msra.gmra.mxu0 %vm100_vm1, %v6334_v10 }
0x1b07   :  { %v3031_v12 = vsel %vm3030_vm13, %v4778_v60, %v3027_v11 }
0x1b08   :  { %v3033_v13 = vmul.f32 %v3031_v12, %v2999_v39 }
0x1b0a   :  { %v3038_v15 = vmul.f32 %v4647_v14, %v3033_v13 }
0x1b0c   :  { %v6338_v19 = vadd.f32 %v4648_v2, %v3038_v15 }
0x1b0e   :  { %4398 = vmatmul.msk.f32.gmra.mxu0 %vm100_vm1, %v6338_v19 }
0x1b83   :  { %v3077_v59 = vpop.f32.mrf.mxu0 }
0x1b84   :  { %v3078_v21 = vadd.f32 %v4649_v20, %v3077_v59 }
0x1b86   :  { %3090 = vrot.lane.b32.xlu1 %v3078_v21, %s6867_s22 }
0x1b8b   :  { %v3080_v22 = vpop.f32.mrf.mxu0 }
0x1b8c   :  { %v3081_v25 = vadd.f32 %v4649_v20, %v3080_v22 }
0x1b8e   :  { %3092 = vrot.lane.b32.xlu2 %v3081_v25, %s6867_s22  ;;  %v6347_v29 = vpack.i.bf16 %v3078_v21, %v3081_v25  ;;  %s6877_s22 = sld [smem:[#allocation7_spill]] }
0x1b96   :  { %4609 = vrot.lane.b32.xlu2 %v6347_v29, %s6868_s18 }
0x1b9e   :  { %3190 = vrot.lane.b32.xlu2 %v3078_v21, %s6869_s21 }
0x1ba6   :  { %3186 = vrot.lane.b32.xlu2 %v3078_v21, %s6870_s24 }
0x1bae   :  { %3188 = vrot.lane.b32.xlu2 %v3081_v25, %s6870_s24 }
0x1bb6   :  { %3348 = vrot.lane.b32.xlu2 %v3078_v21, %s6871_s0 }
0x1bbe   :  { %3481 = vrot.lane.b32.xlu2 %v3081_v25, %s6861_s26 }
0x1bc6   :  { %3475 = vrot.lane.b32.xlu2 %v3078_v21, %s6862_s27 }
0x1be8   :  { %v3093_v31 = vpop.permute.xlu2 %3092 }
0x1be9   :  { %4403 = vmatpush.xpose.msk.msra.mxu3 %vm140_vm2, %v3093_v31 }
0x1bf0   :  { %v4610_v34 = vpop.permute.xlu2 %4609 }
0x1bf1   :  { %v4611_v35 = vunpack.i.l.bf16 %v4610_v34  ;;  %v4612_v63 = vunpack.i.h.bf16 %v4610_v34 }
0x1bf3   :  { %3177 = vmatpush.msrb.mxu1 %v4611_v35 }
0x1bf5   :  { %3178 = vmatpush.msrb.mxu1 %v4612_v63 }
0x1bf7   :  { %3336 = vmatpush.msra.mxu1 %v4399_v53 }
0x1bf8   :  { %v3091_v18 = vpop.permute.xlu1 %3090  ;;  %v3191_v44 = vpop.permute.xlu2 %3190 }
0x1bf9   :  { %4404 = vmatpush.xpose.msk.msra.mxu3 %vm140_vm2, %v3091_v18 }
0x1bfc   :  { %4405 = vmatmul.msk.f32.vlgmr.msra.gmra.mxu3 %vm140_vm2, %v3078_v21 }
0x1c00   :  { %v3187_v54 = vpop.permute.xlu2 %3186 }
0x1c04   :  { %4406 = vmatmul.msk.f32.gmra.mxu3 %vm140_vm2, %v3081_v25 }
0x1c08   :  { %v3189_v17 = vpop.permute.xlu2 %3188 }
0x1c10   :  { %v3349_v55 = vpop.permute.xlu2 %3348 }
0x1c18   :  { %v3482_v56 = vpop.permute.xlu2 %3481 }
0x1c20   :  { %v3476_v0 = vpop.permute.xlu2 %3475 }
0x1c7f   :  { %v3119_v41 = vpop.f32.mrf.mxu3 }
0x1c80   :  { %v3125_v42 = vmul.f32 0.35355338, %v3119_v41 }
0x1c82   :  { %v3127_v61 = vadd.f32 %v6364_v24, %v3125_v42 }
0x1c84   :  { %v3129_v45 = vsel %vm62_vm0, %v3127_v61, -inf }
0x1c85   :  { %3130 = vmax.xlane.f32.xlu0 %v3129_v45 }
0x1c87   :  { %v3122_v32 = vpop.f32.mrf.mxu3 }
0x1c88   :  { %v3126_v1 = vmul.f32 0.35355338, %v3122_v32 }
0x1c8a   :  { %v3128_v23 = vadd.f32 %v6371_v46, %v3126_v1 }
0x1c8c   :  { %v3132_v47 = vsel %vm62_vm0, %v3128_v23, -inf }
0x1c8d   :  { %3133 = vmax.xlane.f32.xlu0 %v3132_v47 }
0x1cf8   :  { %v3131_v33 = vpop.xlane.xlu0 %3130 }
0x1cf9   :  { %v3135_v48 = vsub.f32 %v3127_v61, %v3131_v33 }
0x1cfb   :  { %v3137_v16 = vmul.f32 1.442695, %v3135_v48 }
0x1cfd   :  { %4779 = vpow2.f32 %v3137_v16 }
0x1d00   :  { %v3134_v49 = vpop.xlane.xlu0 %3133 }
0x1d01   :  { %v3136_v30 = vsub.f32 %v3128_v23, %v3134_v49 }
0x1d03   :  { %v4780_v40 = vpop.eup %4779  ;;  %v3139_v50 = vmul.f32 1.442695, %v3136_v30 }
0x1d04   :  { %v3141_v39 = vsel %vm62_vm0, %v4780_v40, 0.0 }
0x1d05   :  { %4781 = vpow2.f32 %v3139_v50  ;;  %3142 = vadd.xlane.f32.xlu0 %v3141_v39 }
0x1d0b   :  { %v4782_v51 = vpop.eup %4781 }
0x1d0c   :  { %v3144_v52 = vsel %vm62_vm0, %v4782_v51, 0.0 }
0x1d0d   :  { %3145 = vadd.xlane.f32.xlu1 %v3144_v52 }
0x1d19   :  { %3192 = vrot.lane.b32.xlu0 %v3081_v25, %s6869_s21 }
0x1d21   :  { %3350 = vrot.lane.b32.xlu0 %v3081_v25, %s6871_s0  ;;  %s6875_s0 = sld [smem:[#allocation6_spill]] }
0x1d26   :  { %3346 = vrot.lane.b32.xlu1 %v3081_v25, %s6863_s20 }
0x1d29   :  { %3344 = vrot.lane.b32.xlu0 %v3078_v21, %s6863_s20 }
0x1d31   :  { %3479 = vrot.lane.b32.xlu0 %v3078_v21, %s6861_s26  ;;  %s6872_s26 = smov 40  }
0x1d39   :  { %3477 = vrot.lane.b32.xlu0 %v3081_v25, %s6862_s27  ;;  %s6873_s27 = smov 48  }
0x1d78   :  { %v3143_v27 = vpop.xlane.xlu0 %3142 }
0x1d79   :  { %4783 = vrcp.f32 %v3143_v27 }
0x1d7f   :  { %v4784_v43 = vpop.eup %4783 }
0x1d80   :  { %v3149_v37 = vmul.f32 %v4784_v43, %v4780_v40  ;;  %v3146_v62 = vpop.xlane.xlu1 %3145 }
0x1d81   :  { %4785 = vrcp.f32 %v3146_v62 }
0x1d82   :  { %4407 = vmatmul.msk.f32.vlgmr.msrb.gmra.mxu1 %vm62_vm0, %v3149_v37 }
0x1d83   :  { %4427 = vmatpush.xpose.msk.msrb.mxu1 %vm140_vm2, %v3482_v56 }
0x1d87   :  { %v4786_v57 = vpop.eup %4785 }
0x1d88   :  { %v3150_v9 = vmul.f32 %v4786_v57, %v4782_v51 }
0x1d8a   :  { %4408 = vmatmul.msk.f32.gmra.mxu1 %vm62_vm0, %v3150_v9 }
0x1d8b   :  { %v3193_v7 = vpop.permute.xlu0 %3192 }
0x1d8c   :  { %4409 = vmatpush.xpose.msk.msrb.mxu2 %vm140_vm2, %v3193_v7 }
0x1d90   :  { %4410 = vmatpush.xpose.msk.msrb.mxu2 %vm140_vm2, %v3191_v44 }
0x1d93   :  { %4411 = vmatmul.msk.f32.vlgmr.msrb.gmra.mxu2 %vm140_vm2, %v3187_v54  ;;  %v3351_v4 = vpop.permute.xlu0 %3350 }
0x1d94   :  { %4419 = vmatpush.xpose.msk.msra.mxu2 %vm140_vm2, %v3351_v4 }
0x1d98   :  { %4420 = vmatpush.xpose.msk.msra.mxu2 %vm140_vm2, %v3349_v55  ;;  %v3347_v28 = vpop.permute.xlu1 %3346 }
0x1d9b   :  { %4412 = vmatmul.msk.f32.gmra.mxu2 %vm140_vm2, %v3189_v17  ;;  %v3345_v36 = vpop.permute.xlu0 %3344 }
0x1da3   :  { %4421 = vmatmul.msk.f32.vlgmr.msra.gmra.mxu2 %vm140_vm2, %v3345_v36  ;;  %v3480_v60 = vpop.permute.xlu0 %3479 }
0x1da4   :  { %4428 = vmatpush.xpose.msk.msrb.mxu1 %vm140_vm2, %v3480_v60 }
0x1dab   :  { %4422 = vmatmul.msk.f32.gmra.mxu2 %vm140_vm2, %v3347_v28  ;;  %v3478_v2 = vpop.permute.xlu0 %3477 }
0x1dff   :  { %v3180_v58 = vpop.f32.mrf.mxu1 }
0x1e00   :  { %4417 = vmatmul.msk.f32.vlgmr.msra.gmra.mxu1 %vm140_vm2, %v3180_v58 }
0x1e07   :  { %v3183_v14 = vpop.f32.mrf.mxu1 }
0x1e08   :  { %4418 = vmatmul.msk.f32.gmra.mxu1 %vm140_vm2, %v3183_v14 }
0x1e10   :  { %4429 = vmatmul.msk.f32.vlgmr.msrb.gmra.mxu1 %vm140_vm2, %v3476_v0 }
0x1e16   :  { %v3219_v38 = vpop.f32.mrf.mxu2 }
0x1e17   :  { %v3225_v3 = vmul.f32 0.35355338, %v3219_v38 }
0x1e18   :  { %4430 = vmatmul.msk.f32.gmra.mxu1 %vm140_vm2, %v3478_v2 }
0x1e19   :  { %v3227_v5 = vadd.f32 %v6364_v24, %v3225_v3 }
0x1e1b   :  { %v3229_v26 = vsel %vm62_vm0, %v3227_v5, -inf }
0x1e1c   :  { %3230 = vmax.xlane.f32.xlu2 %v3229_v26 }
0x1e1e   :  { %v3222_v6 = vpop.f32.mrf.mxu2 }
0x1e1f   :  { %v3226_v11 = vmul.f32 0.35355338, %v3222_v6 }
0x1e21   :  { %v3228_v12 = vadd.f32 %v6371_v46, %v3226_v11 }
0x1e23   :  { %v3232_v13 = vsel %vm62_vm0, %v3228_v12, -inf }
0x1e24   :  { %3233 = vmax.xlane.f32.xlu0 %v3232_v13 }
0x1e26   :  { %v3377_v15 = vpop.f32.mrf.mxu2 }
0x1e27   :  { %v3383_v20 = vmul.f32 0.35355338, %v3377_v15 }
0x1e29   :  { %v3385_v59 = vadd.f32 %v6364_v24, %v3383_v20 }
0x1e2b   :  { %v3387_v21 = vsel %vm62_vm0, %v3385_v59, -inf }
0x1e2c   :  { %3388 = vmax.xlane.f32.xlu1 %v3387_v21 }
0x1e2e   :  { %v3380_v22 = vpop.f32.mrf.mxu2 }
0x1e2f   :  { %v3384_v25 = vmul.f32 0.35355338, %v3380_v22 }
0x1e31   :  { %v3386_v31 = vadd.f32 %v6371_v46, %v3384_v25 }
0x1e33   :  { %v3390_v34 = vsel %vm62_vm0, %v3386_v31, -inf }
0x1e34   :  { %3391 = vmax.xlane.f32.xlu0 %v3390_v34 }
0x1e45   :  { %4614 = vrot.lane.b32.xlu1 %v6347_v29, %s6864_s19 }
0x1e4d   :  { %4624 = vrot.lane.b32.xlu1 %v6347_v29, %s6872_s26 }
0x1e7d   :  { %v6414_v35 = vpop.f32.mrf.mxu1 }
0x1e85   :  { %v6416_v63 = vpop.f32.mrf.mxu1 }
0x1e8d   :  { %v3508_v18 = vpop.f32.mrf.mxu1 }
0x1e8e   :  { %v3514_v41 = vmul.f32 0.35355338, %v3508_v18  ;;  %v4400_v18 = vld [vmem:[%s6811_s5 + $0x68] sm:$0xff] }
0x1e8f   :  { %v3231_v42 = vpop.xlane.xlu2 %3230  ;;  %3307 = vmatpush.msrb.mxu3 %v4400_v18  ;;  %v4494_v18 = vld [vmem:[%s6816_s11 + $0x6f8] sm:$0xff] }
0x1e90   :  { %v3516_v61 = vadd.f32 %v6364_v24, %v3514_v41  ;;  %v3235_v45 = vsub.f32 %v3227_v5, %v3231_v42 }
0x1e92   :  { %v3237_v32 = vmul.f32 1.442695, %v3235_v45  ;;  %v3518_v1 = vsel %vm62_vm0, %v3516_v61, -inf }
0x1e93   :  { %3519 = vmax.xlane.f32.xlu2 %v3518_v1  ;;  %v4401_v1 = vld [vmem:[%s6811_s5 + $0x70] sm:$0xff] }
0x1e94   :  { %4787 = vpow2.f32 %v3237_v32  ;;  %3465 = vmatpush.msra.mxu3 %v4401_v1  ;;  %v4524_v1 = vld [vmem:[%s6816_s11 + $0x7e8] sm:$0xff] }
0x1e95   :  { %v3511_v23 = vpop.f32.mrf.mxu1 }
0x1e96   :  { %v3515_v47 = vmul.f32 0.35355338, %v3511_v23 }
0x1e97   :  { %v3234_v33 = vpop.xlane.xlu0 %3233 }
0x1e98   :  { %v3517_v48 = vadd.f32 %v6371_v46, %v3515_v47  ;;  %v3236_v16 = vsub.f32 %v3228_v12, %v3234_v33 }
0x1e9a   :  { %v4788_v49 = vpop.eup %4787  ;;  %v3239_v30 = vmul.f32 1.442695, %v3236_v16  ;;  %v3521_v40 = vsel %vm62_vm0, %v3517_v48, -inf }
0x1e9b   :  { %3522 = vmax.xlane.f32.xlu2 %v3521_v40  ;;  %v3241_v50 = vsel %vm62_vm0, %v4788_v49, 0.0 }
0x1e9c   :  { %4789 = vpow2.f32 %v3239_v30  ;;  %3242 = vadd.xlane.f32.xlu0 %v3241_v50 }
0x1e9f   :  { %v3389_v24 = vpop.xlane.xlu1 %3388 }
0x1ea0   :  { %v3393_v39 = vsub.f32 %v3385_v59, %v3389_v24 }
0x1ea2   :  { %v4790_v51 = vpop.eup %4789  ;;  %v3395_v52 = vmul.f32 1.442695, %v3393_v39 }
0x1ea3   :  { %v3244_v44 = vsel %vm62_vm0, %v4790_v51, 0.0 }
0x1ea4   :  { %4791 = vpow2.f32 %v3395_v52  ;;  %3245 = vadd.xlane.f32.xlu2 %v3244_v44  ;;  %v4650_v44 = vld [vmem:[%s6874_s25 + $0x3] ss:$0 sm:$0xff] }
0x1ea7   :  { %v3392_v53 = vpop.xlane.xlu0 %3391 }
0x1ea8   :  { %v3394_v46 = vsub.f32 %v3386_v31, %v3392_v53 }
0x1eaa   :  { %v4792_v54 = vpop.eup %4791  ;;  %v3397_v17 = vmul.f32 1.442695, %v3394_v46 }
0x1eab   :  { %v3399_v55 = vsel %vm62_vm0, %v4792_v54, 0.0 }
0x1eac   :  { %4793 = vpow2.f32 %v3397_v17  ;;  %3400 = vadd.xlane.f32.xlu0 %v3399_v55 }
0x1eb2   :  { %v4794_v27 = vpop.eup %4793 }
0x1eb3   :  { %v3402_v43 = vsel %vm62_vm0, %v4794_v27, 0.0 }
0x1eb4   :  { %3403 = vadd.xlane.f32.xlu2 %v3402_v43 }
0x1eb7   :  { %v4615_v37 = vpop.permute.xlu1 %4614 }
0x1eb8   :  { %v4616_v62 = vunpack.i.l.bf16 %v4615_v37  ;;  %v4617_v56 = vunpack.i.h.bf16 %v4615_v37 }
0x1eba   :  { %3277 = vmatpush.msrb.mxu0 %v4616_v62 }
0x1ebc   :  { %3278 = vmatpush.msrb.mxu0 %v4617_v56 }
0x1ebf   :  { %v4625_v57 = vpop.permute.xlu1 %4624 }
0x1ec0   :  { %v4626_v9 = vunpack.i.l.bf16 %v4625_v57  ;;  %4619 = vrot.lane.b32.xlu0 %v6347_v29, %s6873_s27  ;;  %v4627_v7 = vunpack.i.h.bf16 %v4625_v57 }
0x1ec2   :  { %3566 = vmatpush.msrb.mxu2 %v4626_v9 }
0x1ec4   :  { %3567 = vmatpush.msrb.mxu2 %v4627_v7 }
0x1f06   :  { %v3520_v4 = vpop.xlane.xlu2 %3519 }
0x1f07   :  { %v3524_v36 = vsub.f32 %v3516_v61, %v3520_v4 }
0x1f09   :  { %v3526_v60 = vmul.f32 1.442695, %v3524_v36 }
0x1f0b   :  { %4795 = vpow2.f32 %v3526_v60 }
0x1f0e   :  { %v3523_v28 = vpop.xlane.xlu2 %3522 }
0x1f0f   :  { %v3525_v58 = vsub.f32 %v3517_v48, %v3523_v28  ;;  %v3243_v14 = vpop.xlane.xlu0 %3242  ;;  %v4402_v48 = vld [vmem:[%s6811_s5 + $0x78] sm:$0xff] }
0x1f10   :  { %4797 = vrcp.f32 %v3243_v14 }
0x1f11   :  { %v4796_v0 = vpop.eup %4795  ;;  %v3528_v38 = vmul.f32 1.442695, %v3525_v58 }
0x1f12   :  { %v3530_v2 = vsel %vm62_vm0, %v4796_v0, 0.0 }
0x1f13   :  { %4799 = vpow2.f32 %v3528_v38  ;;  %3531 = vadd.xlane.f32.xlu2 %v3530_v2  ;;  %v4451_v38 = vld [vmem:[%s6815_s9 + $0x1e8] sm:$0xff]  ;;  %v4452_v2 = vld [vmem:[%s6815_s9 + $0x1f0] sm:$0xff] }
0x1f14   :  { %3742 = vmatpush.msra.mxu1 %v4451_v38  ;;  %3765 = vmatpush.msra.mxu2 %v4452_v2  ;;  %v4518_v38 = vld [vmem:[%s6816_s11 + $0x7b8] sm:$0xff]  ;;  %v4471_v2 = vld [vmem:[%s6816_s11 + $0x640] sm:$0xff] }
0x1f16   :  { %v4798_v3 = vpop.eup %4797 }
0x1f17   :  { %v3249_v5 = vmul.f32 %v4798_v3, %v4788_v49  ;;  %v3246_v29 = vpop.xlane.xlu2 %3245  ;;  %v4453_v3 = vld [vmem:[%s6815_s9 + $0x1f8] sm:$0xff] }
0x1f18   :  { %4801 = vrcp.f32 %v3246_v29  ;;  %v4447_v29 = vld [vmem:[%s6815_s9 + $0x1c8] sm:$0xff] }
0x1f19   :  { %v4800_v26 = vpop.eup %4799  ;;  %4413 = vmatmul.msk.f32.vlgmr.msrb.gmra.mxu0 %vm62_vm0, %v3249_v5  ;;  %v4446_v5 = vld [vmem:[%s6815_s9 + $0x1c0] sm:$0xff]  ;;  %3743 = vmatpush.msra.mxu1 %v4447_v29 }
0x1f1a   :  { %v3533_v6 = vsel %vm62_vm0, %v4800_v26, 0.0 }
0x1f1b   :  { %3534 = vadd.xlane.f32.xlu2 %v3533_v6  ;;  %v4449_v6 = vld [vmem:[%s6815_s9 + $0x1d8] sm:$0xff] }
0x1f1e   :  { %v4802_v11 = vpop.eup %4801 }
0x1f1f   :  { %v3250_v12 = vmul.f32 %v4802_v11, %v4790_v51  ;;  %v3401_v13 = vpop.xlane.xlu0 %3400  ;;  %v4442_v11 = vld [vmem:[%s6815_s9 + $0x1a0] sm:$0xff] }
0x1f20   :  { %4803 = vrcp.f32 %v3401_v13  ;;  %v4444_v13 = vld [vmem:[%s6815_s9 + $0x1b0] sm:$0xff] }
0x1f21   :  { %4414 = vmatmul.msk.f32.gmra.mxu0 %vm62_vm0, %v3250_v12  ;;  %v4443_v12 = vld [vmem:[%s6815_s9 + $0x1a8] sm:$0xff] }
0x1f22   :  { %3744 = vmatpush.msra.mxu1 %v4443_v12 }
0x1f26   :  { %v4804_v59 = vpop.eup %4803 }
0x1f27   :  { %v3404_v15 = vpop.xlane.xlu2 %3403  ;;  %v3407_v25 = vmul.f32 %v4804_v59, %v4792_v54  ;;  %v4439_v59 = vld [vmem:[%s6815_s9 + $0x188] sm:$0xff] }
0x1f28   :  { %4805 = vrcp.f32 %v3404_v15  ;;  %v4445_v15 = vld [vmem:[%s6815_s9 + $0x1b8] sm:$0xff]  ;;  %3745 = vmatpush.msra.mxu1 %v4439_v59  ;;  %v4484_v59 = vld [vmem:[%s6816_s11 + $0x6a8] sm:$0xff] }
0x1f2a   :  { %3900 = vmatpush.msrb.mxu1 %v4494_v18 }
0x1f2e   :  { %v4806_v31 = vpop.eup %4805 }
0x1f2f   :  { %v3408_v34 = vmul.f32 %v4806_v31, %v4794_v27 }
0x1f32   :  { %v4620_v20 = vpop.permute.xlu0 %4619 }
0x1f33   :  { %v4621_v21 = vunpack.i.l.bf16 %v4620_v20  ;;  %v4622_v22 = vunpack.i.h.bf16 %v4620_v20  ;;  %v4438_v20 = vld [vmem:[%s6815_s9 + $0x180] sm:$0xff] }
0x1f35   :  { %3435 = vmatpush.msra.mxu0 %v4621_v21  ;;  %v4440_v21 = vld [vmem:[%s6815_s9 + $0x190] sm:$0xff] }
0x1f37   :  { %3436 = vmatpush.msra.mxu0 %v4622_v22  ;;  %v4441_v22 = vld [vmem:[%s6815_s9 + $0x198] sm:$0xff] }
0x1f38   :  { %4423 = vmatmul.msk.f32.vlgmr.msra.gmra.mxu0 %vm62_vm0, %v3407_v25 }
0x1f39   :  { %3596 = vmatpush.msrb.mxu0 %v4402_v48  ;;  %v4477_v48 = vld [vmem:[%s6816_s11 + $0x670] sm:$0xff] }
0x1f3b   :  { %3788 = vmatpush.msra.mxu0 %v4453_v3  ;;  %v4503_v3 = vld [vmem:[%s6816_s11 + $0x740] sm:$0xff] }
0x1f3d   :  { %3789 = vmatpush.msra.mxu0 %v4449_v6  ;;  %v4517_v6 = vld [vmem:[%s6816_s11 + $0x7b0] sm:$0xff] }
0x1f3f   :  { %3790 = vmatpush.msra.mxu0 %v4445_v15  ;;  %v4502_v15 = vld [vmem:[%s6816_s11 + $0x738] sm:$0xff] }
0x1f40   :  { %4424 = vmatmul.msk.f32.gmra.mxu0 %vm62_vm0, %v3408_v34 }
0x1f41   :  { %3791 = vmatpush.msra.mxu0 %v4441_v22  ;;  %v4469_v22 = vld [vmem:[%s6816_s11 + $0x630] sm:$0xff] }
0x1f86   :  { %v3532_v41 = vpop.xlane.xlu2 %3531 }
0x1f87   :  { %4807 = vrcp.f32 %v3532_v41  ;;  %v4526_v41 = vld [vmem:[%s6816_s11 + $0x7f8] sm:$0xff] }
0x1f8d   :  { %v4808_v42 = vpop.eup %4807 }
0x1f8e   :  { %v3538_v61 = vmul.f32 %v4808_v42, %v4796_v0  ;;  %v3535_v45 = vpop.xlane.xlu2 %3534  ;;  %v4450_v0 = vld [vmem:[%s6815_s9 + $0x1e0] sm:$0xff]  ;;  %v4493_v42 = vld [vmem:[%s6816_s11 + $0x6f0] sm:$0xff] }
0x1f8f   :  { %4809 = vrcp.f32 %v3535_v45  ;;  %v4492_v45 = vld [vmem:[%s6816_s11 + $0x6e8] sm:$0xff]  ;;  %3901 = vmatpush.msrb.mxu1 %v4493_v42  ;;  %v4515_v42 = vld [vmem:[%s6816_s11 + $0x7a0] sm:$0xff] }
0x1f90   :  { %4431 = vmatmul.msk.f32.vlgmr.msrb.gmra.mxu2 %vm62_vm0, %v3538_v61  ;;  %v4525_v61 = vld [vmem:[%s6816_s11 + $0x7f0] sm:$0xff] }
0x1f91   :  { %3902 = vmatpush.msrb.mxu1 %v4492_v45  ;;  %v4482_v45 = vld [vmem:[%s6816_s11 + $0x698] sm:$0xff] }
0x1f95   :  { %v4810_v32 = vpop.eup %4809 }
0x1f96   :  { %v3280_v23 = vpop.f32.mrf.mxu0  ;;  %v3539_v47 = vmul.f32 %v4810_v32, %v4800_v26  ;;  %v4448_v26 = vld [vmem:[%s6815_s9 + $0x1d0] sm:$0xff] }
0x1f97   :  { %4415 = vmatmul.msk.f32.vlgmr.msrb.gmra.mxu3 %vm140_vm2, %v3280_v23  ;;  %3766 = vmatpush.msra.mxu2 %v4448_v26  ;;  %v4478_v23 = vld [vmem:[%s6816_s11 + $0x678] sm:$0xff]  ;;  %v4485_v26 = vld [vmem:[%s6816_s11 + $0x6b0] sm:$0xff] }
0x1f98   :  { %4432 = vmatmul.msk.f32.gmra.mxu2 %vm62_vm0, %v3539_v47  ;;  %3719 = vmatpush.msrb.mxu3 %v4450_v0  ;;  %v4510_v47 = vld [vmem:[%s6816_s11 + $0x778] sm:$0xff] }
0x1f99   :  { %3767 = vmatpush.msra.mxu2 %v4444_v13  ;;  %v4486_v0 = vld [vmem:[%s6816_s11 + $0x6b8] sm:$0xff] }
0x1f9a   :  { %3720 = vmatpush.msrb.mxu3 %v4446_v5  ;;  %v4470_v13 = vld [vmem:[%s6816_s11 + $0x638] sm:$0xff] }
0x1f9b   :  { %3768 = vmatpush.msra.mxu2 %v4440_v21 }
0x1f9c   :  { %3721 = vmatpush.msrb.mxu3 %v4442_v11  ;;  %v4652_v11 = vld [vmem:[%s6814_s8 + $0x3] ss:$0 sm:$0xff] }
0x1f9d   :  { %3923 = vmatpush.msrb.mxu2 %v4510_v47 }
0x1f9e   :  { %v3283_v33 = vpop.f32.mrf.mxu0  ;;  %3722 = vmatpush.msrb.mxu3 %v4438_v20 }
0x1f9f   :  { %4416 = vmatmul.msk.f32.gmra.mxu3 %vm140_vm2, %v3283_v33 }
0x1fb5   :  { %v3438_v16 = vpop.f32.mrf.mxu0 }
0x1fb6   :  { %4425 = vmatmul.msk.f32.vlgmr.msra.gmra.mxu3 %vm140_vm2, %v3438_v16  ;;  %v4491_v16 = vld [vmem:[%s6816_s11 + $0x6e0] sm:$0xff] }
0x1fb7   :  { %3877 = vmatpush.msra.mxu3 %v4478_v23  ;;  %3903 = vmatpush.msrb.mxu1 %v4491_v16  ;;  %v4513_v16 = vld [vmem:[%s6816_s11 + $0x790] sm:$0xff] }
0x1fb9   :  { %3878 = vmatpush.msra.mxu3 %v4477_v48  ;;  %v4500_v48 = vld [vmem:[%s6816_s11 + $0x728] sm:$0xff] }
0x1fbd   :  { %v3441_v49 = vpop.f32.mrf.mxu0 }
0x1fbe   :  { %4426 = vmatmul.msk.f32.gmra.mxu3 %vm140_vm2, %v3441_v49  ;;  %v4523_v49 = vld [vmem:[%s6816_s11 + $0x7e0] sm:$0xff] }
0x2013   :  { %v3569_v30 = vpop.f32.mrf.mxu2 }
0x2014   :  { %4433 = vmatmul.msk.f32.vlgmr.msrb.gmra.mxu0 %vm140_vm2, %v3569_v30  ;;  %v4509_v30 = vld [vmem:[%s6816_s11 + $0x770] sm:$0xff] }
0x2015   :  { %3946 = vmatpush.msrb.mxu0 %v4526_v41  ;;  %3924 = vmatpush.msrb.mxu2 %v4509_v30  ;;  %v4483_v41 = vld [vmem:[%s6816_s11 + $0x6a0] sm:$0xff]  ;;  %v4480_v30 = vld [vmem:[%s6816_s11 + $0x688] sm:$0xff] }
0x2017   :  { %3947 = vmatpush.msrb.mxu0 %v4525_v61 }
0x2019   :  { %3948 = vmatpush.msrb.mxu0 %v4524_v1 }
0x201a   :  { %v3309_v50 = vpop.f32.mrf.mxu3 }
0x201b   :  { %v3572_v40 = vpop.f32.mrf.mxu2  ;;  %v3339_v51 = vadd.f32 %v6414_v35, %v3309_v50  ;;  %3949 = vmatpush.msrb.mxu0 %v4523_v49  ;;  %v4467_v49 = vld [vmem:[%s6816_s11 + $0x620] sm:$0xff] }
0x201c   :  { %4434 = vmatmul.msk.f32.gmra.mxu0 %vm140_vm2, %v3572_v40 }
0x2022   :  { %v3312_v24 = vpop.f32.mrf.mxu3 }
0x2023   :  { %v3342_v55 = vadd.f32 %v6416_v63, %v3312_v24  ;;  %v4476_v24 = vld [vmem:[%s6816_s11 + $0x668] sm:$0xff] }
0x2024   :  { %3879 = vmatpush.msra.mxu3 %v4476_v24  ;;  %v4466_v24 = vld [vmem:[%s6816_s11 + $0x618] sm:$0xff] }
0x2039   :  { %v3467_v39 = vpop.f32.mrf.mxu3 }
0x203a   :  { %v3473_v52 = vadd.f32 %v3467_v39, %v3339_v51  ;;  %v4508_v39 = vld [vmem:[%s6816_s11 + $0x768] sm:$0xff] }
0x203b   :  { %3925 = vmatpush.msrb.mxu2 %v4508_v39  ;;  %v4479_v39 = vld [vmem:[%s6816_s11 + $0x680] sm:$0xff] }
0x2041   :  { %v3470_v17 = vpop.f32.mrf.mxu3 }
0x2042   :  { %v3474_v43 = vadd.f32 %v3470_v17, %v3342_v55  ;;  %v4489_v17 = vld [vmem:[%s6816_s11 + $0x6d0] sm:$0xff] }
0x2043   :  { %v4521_v55 = vld [vmem:[%s6816_s11 + $0x7d0] sm:$0xff] }
0x2091   :  { %v3598_v53 = vpop.f32.mrf.mxu0 }
0x2092   :  { %v3604_v46 = vadd.f32 %v3598_v53, %v3473_v52  ;;  %v4490_v52 = vld [vmem:[%s6816_s11 + $0x6d8] sm:$0xff]  ;;  %v4475_v53 = vld [vmem:[%s6816_s11 + $0x660] sm:$0xff] }
0x2093   :  { %3904 = vmatpush.msrb.mxu1 %v4490_v52  ;;  %3880 = vmatpush.msra.mxu3 %v4475_v53  ;;  %v4511_v52 = vld [vmem:[%s6816_s11 + $0x780] sm:$0xff]  ;;  %v4497_v53 = vld [vmem:[%s6816_s11 + $0x710] sm:$0xff] }
0x2094   :  { %v3611_v54 = vadd.f32 %v4650_v44, %v3604_v46  ;;  %v4507_v46 = vld [vmem:[%s6816_s11 + $0x760] sm:$0xff] }
0x2095   :  { %3926 = vmatpush.msrb.mxu2 %v4507_v46  ;;  %3905 = vmatpush.msrb.mxu1 %v4489_v17  ;;  %v4464_v46 = vld [vmem:[%s6816_s11 + $0x608] sm:$0xff]  ;;  %v4463_v17 = vld [vmem:[%s6816_s11 + $0x600] sm:$0xff] }
0x2096   :  { %v3613_v27 = vadd.f32 %v3611_v54, %v6334_v10 }
0x2098   :  { %v3619_v37 = vsel %vm100_vm1, %v3613_v27, 0.0 }
0x2099   :  { %3620 = vadd.xlane.f32.xlu1 %v3619_v37  ;;  %v3601_v62 = vpop.f32.mrf.mxu0 }
0x209a   :  { %v3605_v56 = vadd.f32 %v3601_v62, %v3474_v43  ;;  %v4506_v43 = vld [vmem:[%s6816_s11 + $0x758] sm:$0xff]  ;;  %v4488_v62 = vld [vmem:[%s6816_s11 + $0x6c8] sm:$0xff] }
0x209b   :  { %3927 = vmatpush.msrb.mxu2 %v4506_v43  ;;  %3906 = vmatpush.msrb.mxu1 %v4488_v62 }
0x209c   :  { %v3612_v35 = vadd.f32 %v4650_v44, %v3605_v56  ;;  %v4522_v44 = vld [vmem:[%s6816_s11 + $0x7d8] sm:$0xff]  ;;  %v4520_v56 = vld [vmem:[%s6816_s11 + $0x7c8] sm:$0xff] }
0x209d   :  { %3950 = vmatpush.msrb.mxu0 %v4522_v44  ;;  %v4465_v44 = vld [vmem:[%s6816_s11 + $0x610] sm:$0xff] }
0x209e   :  { %v3614_v57 = vadd.f32 %v3612_v35, %v6338_v19  ;;  %v4473_v35 = vld [vmem:[%s6816_s11 + $0x650] sm:$0xff] }
0x209f   :  { %3951 = vmatpush.msrb.mxu0 %v4521_v55  ;;  %v4495_v55 = vld [vmem:[%s6816_s11 + $0x700] sm:$0xff] }
0x20a0   :  { %v3622_v9 = vsel %vm100_vm1, %v3614_v57, 0.0 }
0x20a1   :  { %3623 = vadd.xlane.f32.xlu2 %v3622_v9  ;;  %3952 = vmatpush.msrb.mxu0 %v4520_v56 }
0x210c   :  { %v3621_v7 = vpop.xlane.xlu1 %3620 }
0x210d   :  { %v3625_v4 = vmul.f32 %v3621_v7, %v5079_v8  ;;  %v4487_v7 = vld [vmem:[%s6816_s11 + $0x6c0] sm:$0xff] }
0x210e   :  { %3907 = vmatpush.msrb.mxu1 %v4487_v7 }
0x210f   :  { %v6461_v36 = vsub.f32 %v3613_v27, %v3625_v4  ;;  %v4474_v27 = vld [vmem:[%s6816_s11 + $0x658] sm:$0xff]  ;;  %v4519_v4 = vld [vmem:[%s6816_s11 + $0x7c0] sm:$0xff] }
0x2110   :  { %3881 = vmatpush.msra.mxu3 %v4474_v27  ;;  %3953 = vmatpush.msrb.mxu0 %v4519_v4  ;;  %v4454_v27 = vld [vmem:[%s6818_s10 + $0xc] sm:$0xf] }
0x2111   :  { %v3629_v10 = vmul.f32 %v6461_v36, %v6461_v36  ;;  %3908 = vmatpush.msrb.mxu1 %v4486_v0  ;;  %v3694_v43 = vperm.slane %v4454_v27, 1  ;;  %v3693_v7 = vperm.slane %v4454_v27, 0 }
0x2112   :  { %3882 = vmatpush.msra.mxu3 %v4473_v35  ;;  %3954 = vmatpush.msrb.mxu0 %v4518_v38 }
0x2113   :  { %v3631_v63 = vsel %vm100_vm1, %v3629_v10, 0.0  ;;  %3909 = vmatpush.msrb.mxu1 %v4485_v26 }
0x2114   :  { %3632 = vadd.xlane.f32.xlu0 %v3631_v63  ;;  %v3624_v60 = vpop.xlane.xlu2 %3623  ;;  %v4472_v63 = vld [vmem:[%s6816_s11 + $0x648] sm:$0xff]  ;;  %3955 = vmatpush.msrb.mxu0 %v4517_v6 }
0x2115   :  { %v3626_v28 = vmul.f32 %v3624_v60, %v5079_v8  ;;  %v4504_v60 = vld [vmem:[%s6816_s11 + $0x748] sm:$0xff]  ;;  %3883 = vmatpush.msra.mxu3 %v4472_v63  ;;  %3910 = vmatpush.msrb.mxu1 %v4484_v59  ;;  %v4653_v59 = vld [vmem:[%s6817_s12 + $0x3] ss:$0 sm:$0xff] }
0x2117   :  { %v6467_v58 = vsub.f32 %v3614_v57, %v3626_v28  ;;  %v4505_v57 = vld [vmem:[%s6816_s11 + $0x750] sm:$0xff]  ;;  %v4651_v28 = vld [vmem:[%s6813_s7 + $0x3] ss:$0 sm:$0xff]  ;;  %3884 = vmatpush.msra.mxu3 %v4471_v2  ;;  %3911 = vmatpush.msrb.mxu1 %v4483_v41 }
0x2118   :  { %3928 = vmatpush.msrb.mxu2 %v4505_v57 }
0x2119   :  { %v3630_v19 = vmul.f32 %v6467_v58, %v6467_v58  ;;  %3885 = vmatpush.msra.mxu3 %v4470_v13  ;;  %3912 = vmatpush.msrb.mxu1 %v4482_v45 }
0x211a   :  { %3929 = vmatpush.msrb.mxu2 %v4504_v60 }
0x211b   :  { %v3634_v14 = vsel %vm100_vm1, %v3630_v19, 0.0  ;;  %3886 = vmatpush.msra.mxu3 %v4469_v22 }
0x211c   :  { %3635 = vadd.xlane.f32.xlu2 %v3634_v14  ;;  %3930 = vmatpush.msrb.mxu2 %v4503_v3 }
0x211e   :  { %3931 = vmatpush.msrb.mxu2 %v4502_v15 }
0x2187   :  { %v3633_v25 = vpop.xlane.xlu0 %3632 }
0x2188   :  { %v3637_v31 = vmul.f32 %v3633_v25, %v5079_v8  ;;  %v4501_v25 = vld [vmem:[%s6816_s11 + $0x730] sm:$0xff] }
0x2189   :  { %3932 = vmatpush.msrb.mxu2 %v4501_v25 }
0x218a   :  { %v6521_v34 = vadd.f32 1e-05, %v3637_v31 }
0x218b   :  { %3933 = vmatpush.msrb.mxu2 %v4500_v48 }
0x218c   :  { %4811 = vrsqrt.f32 %v6521_v34  ;;  %vm3647_vm2 = vweird.f32 %v6521_v34 }
0x218f   :  { %v3636_v32 = vpop.xlane.xlu2 %3635 }
0x2190   :  { %v3638_v33 = vmul.f32 %v3636_v32, %v5079_v8  ;;  %v4514_v32 = vld [vmem:[%s6816_s11 + $0x798] sm:$0xff] }
0x2192   :  { %v6561_v40 = vpop.eup %4811  ;;  %v6563_v50 = vadd.f32 1e-05, %v3638_v33  ;;  %v4481_v33 = vld [vmem:[%s6816_s11 + $0x690] sm:$0xff] }
0x2193   :  { %v3642_v51 = vmul.f32 %v6561_v40, %v6521_v34  ;;  %vm3648_vm0 = vweird.f32 %v6561_v40  ;;  %3913 = vmatpush.msrb.mxu1 %v4481_v33 }
0x2194   :  { %4813 = vrsqrt.f32 %v6563_v50  ;;  %vm3649_vm14 = vmor %vm3647_vm2, %vm3648_vm0  ;;  %vm3657_vm3 = vweird.f32 %v6563_v50 }
0x2195   :  { %v3643_v54 = vmul.f32 %v6561_v40, %v3642_v51  ;;  %3914 = vmatpush.msrb.mxu1 %v4480_v30  ;;  %v4498_v51 = vld [vmem:[%s6816_s11 + $0x718] sm:$0xff] }
0x2197   :  { %v3644_v37 = vmul.f32 0.5, %v3643_v54  ;;  %3915 = vmatpush.msrb.mxu1 %v4479_v39  ;;  %v4496_v54 = vld [vmem:[%s6816_s11 + $0x708] sm:$0xff] }
0x2199   :  { %v3645_v9 = vsub.f32 1.5, %v3644_v37  ;;  %v3696_v37 = vperm.slane %v4454_v27, 3 }
0x219a   :  { %v4814_v10 = vpop.eup %4813 }
0x219b   :  { %v3646_v19 = vmul.f32 %v6561_v40, %v3645_v9  ;;  %v3652_v14 = vmul.f32 %v4814_v10, %v6563_v50  ;;  %vm3658_vm15 = vweird.f32 %v4814_v10  ;;  %v4512_v50 = vld [vmem:[%s6816_s11 + $0x788] sm:$0xff] }
0x219c   :  { %vm3659_vm4 = vmor %vm3657_vm3, %vm3658_vm15 }
0x219d   :  { %v3650_v5 = vsel %vm3649_vm14, %v6561_v40, %v3646_v19  ;;  %v3653_v29 = vmul.f32 %v4814_v10, %v3652_v14  ;;  %v4499_v40 = vld [vmem:[%s6816_s11 + $0x720] sm:$0xff] }
0x219e   :  { %v3661_v12 = vmul.f32 %v3650_v5, %v6461_v36  ;;  %v4516_v36 = vld [vmem:[%s6816_s11 + $0x7a8] sm:$0xff]  ;;  %3934 = vmatpush.msrb.mxu2 %v4499_v40 }
0x219f   :  { %v3654_v20 = vmul.f32 0.5, %v3653_v29  ;;  %3956 = vmatpush.msrb.mxu0 %v4516_v36 }
0x21a0   :  { %v3666_v21 = vmul.f32 %v4651_v28, %v3661_v12  ;;  %3935 = vmatpush.msrb.mxu2 %v4498_v51 }
0x21a1   :  { %v3655_v31 = vsub.f32 1.5, %v3654_v20  ;;  %3957 = vmatpush.msrb.mxu0 %v4515_v42 }
0x21a2   :  { %v6673_v34 = vadd.f32 %v4652_v11, %v3666_v21  ;;  %3936 = vmatpush.msrb.mxu2 %v4497_v53 }
0x21a3   :  { %v3656_v18 = vmul.f32 %v4814_v10, %v3655_v31  ;;  %3958 = vmatpush.msrb.mxu0 %v4514_v32 }
0x21a4   :  { %4455 = vmatmul.msk.f32.vlgmr.msrb.gmra.mxu3 %vm100_vm1, %v6673_v34  ;;  %4457 = vmatmul.msk.f32.vlgmr.msra.gmra.mxu1 %vm100_vm1, %v6673_v34 }
0x21a5   :  { %v3660_v61 = vsel %vm3659_vm4, %v4814_v10, %v3656_v18  ;;  %4459 = vmatmul.msk.f32.vlgmr.msra.gmra.mxu2 %vm100_vm1, %v6673_v34  ;;  %4461 = vmatmul.msk.f32.vlgmr.msra.gmra.mxu0 %vm100_vm1, %v6673_v34  ;;  %v3695_v10 = vperm.slane %v4454_v27, 2  ;;  %v4029_v27 = vld [vmem:[%s6875_s0] sm:$0xff] }
0x21a6   :  { %v3662_v1 = vmul.f32 %v3660_v61, %v6467_v58  ;;  %v4468_v58 = vld [vmem:[%s6816_s11 + $0x628] sm:$0xff]  ;;  %3959 = vmatpush.msrb.mxu0 %v4513_v16  ;;  %3937 = vmatpush.msrb.mxu2 %v4496_v54 }
0x21a7   :  { %3887 = vmatpush.msra.mxu3 %v4468_v58 }
0x21a8   :  { %v3667_v23 = vmul.f32 %v4651_v28, %v3662_v1  ;;  %3960 = vmatpush.msrb.mxu0 %v4512_v50  ;;  %3938 = vmatpush.msrb.mxu2 %v4495_v55  ;;  %v4030_v55 = vld [vmem:[%s6875_s0 + $0x8] sm:$0xff] }
0x21a9   :  { %3888 = vmatpush.msra.mxu3 %v4467_v49 }
0x21aa   :  { %v6697_v47 = vadd.f32 %v4652_v11, %v3667_v23  ;;  %3961 = vmatpush.msrb.mxu0 %v4511_v52 }
0x21ab   :  { %3889 = vmatpush.msra.mxu3 %v4466_v24 }
0x21ac   :  { %4456 = vmatmul.msk.f32.gmra.mxu3 %vm100_vm1, %v6697_v47  ;;  %4458 = vmatmul.msk.f32.gmra.mxu1 %vm100_vm1, %v6697_v47 }
0x21ad   :  { %4460 = vmatmul.msk.f32.gmra.mxu2 %vm100_vm1, %v6697_v47  ;;  %4462 = vmatmul.msk.f32.gmra.mxu0 %vm100_vm1, %v6697_v47 }
0x21ae   :  { %3890 = vmatpush.msra.mxu3 %v4465_v44 }
0x21b0   :  { %3891 = vmatpush.msra.mxu3 %v4464_v46 }
0x21b2   :  { %3892 = vmatpush.msra.mxu3 %v4463_v17  ;;  %v4031_v17 = vld [vmem:[%s6875_s0 + $0x10] sm:$0xff] }
0x2221   :  { %v3747_v62 = vpop.f32.mrf.mxu1 }
0x2222   :  { %v3748_v56 = vadd.f32 %v3747_v62, %v3694_v43  ;;  %v3793_v35 = vpop.f32.mrf.mxu0 }
0x2223   :  { %v3794_v57 = vadd.f32 %v3793_v35, %v3696_v37 }
0x2224   :  { %v3800_v9 = vmax.f32 %v3748_v56, 0.0 }
0x2225   :  { %v3802_v4 = vmax.f32 %v3794_v57, 0.0 }
0x2226   :  { %3916 = vmatmul.f32.vlgmr.msrb.gmra.mxu1 %v3800_v9 }
0x2227   :  { %3962 = vmatmul.f32.vlgmr.msrb.gmra.mxu0 %v3802_v4  ;;  %v3724_v63 = vpop.f32.mrf.mxu3 }
0x2228   :  { %v3725_v60 = vadd.f32 %v3724_v63, %v3693_v7  ;;  %v3770_v28 = vpop.f32.mrf.mxu2 }
0x2229   :  { %v3771_v19 = vadd.f32 %v3770_v28, %v3695_v10  ;;  %v3750_v14 = vpop.f32.mrf.mxu1 }
0x222a   :  { %v3799_v0 = vmax.f32 %v3725_v60, 0.0  ;;  %v3751_v38 = vadd.f32 %v3750_v14, %v3694_v43  ;;  %v3796_v2 = vpop.f32.mrf.mxu0  ;;  %v4654_v14 = vld [vmem:[%s6819_s13 + $0x3] ss:$0 sm:$0xff] }
0x222b   :  { %v3801_v3 = vmax.f32 %v3771_v19, 0.0  ;;  %v3797_v5 = vadd.f32 %v3796_v2, %v3696_v37 }
0x222c   :  { %v3804_v29 = vmax.f32 %v3751_v38, 0.0  ;;  %3893 = vmatmul.f32.vlgmr.msra.gmra.mxu3 %v3799_v0 }
0x222d   :  { %v3806_v26 = vmax.f32 %v3797_v5, 0.0  ;;  %3939 = vmatmul.f32.vlgmr.msrb.gmra.mxu2 %v3801_v3 }
0x222e   :  { %3919 = vmatmul.f32.gmra.mxu1 %v3804_v29 }
0x222f   :  { %3965 = vmatmul.f32.gmra.mxu0 %v3806_v26  ;;  %v3727_v6 = vpop.f32.mrf.mxu3 }
0x2230   :  { %v3728_v11 = vadd.f32 %v3727_v6, %v3693_v7  ;;  %v3773_v12 = vpop.f32.mrf.mxu2 }
0x2231   :  { %v3774_v13 = vadd.f32 %v3773_v12, %v3695_v10 }
0x2232   :  { %v3803_v15 = vmax.f32 %v3728_v11, 0.0 }
0x2233   :  { %v3805_v20 = vmax.f32 %v3774_v13, 0.0 }
0x2234   :  { %3896 = vmatmul.f32.gmra.mxu3 %v3803_v15 }
0x2235   :  { %3942 = vmatmul.f32.gmra.mxu2 %v3805_v20 }
0x22a3   :  { %v3917_v36 = vpop.f32.mrf.mxu1 }
0x22a4   :  { %v3963_v18 = vpop.f32.mrf.mxu0 }
0x22ab   :  { %v3920_v1 = vpop.f32.mrf.mxu1 }
0x22ac   :  { %v3966_v16 = vpop.f32.mrf.mxu0 }
0x22af   :  { %v3894_v21 = vpop.f32.mrf.mxu3 }
0x22b0   :  { %v3895_v22 = vadd.f32 %v4653_v59, %v3894_v21  ;;  %v3940_v25 = vpop.f32.mrf.mxu2 }
0x22b2   :  { %v3918_v31 = vadd.f32 %v3917_v36, %v3895_v22 }
0x22b4   :  { %v3941_v41 = vadd.f32 %v3940_v25, %v3918_v31 }
0x22b6   :  { %v3964_v42 = vadd.f32 %v3963_v18, %v3941_v41 }
0x22b7   :  { %v3897_v61 = vpop.f32.mrf.mxu3 }
0x22b8   :  { %v3898_v45 = vadd.f32 %v4653_v59, %v3897_v61  ;;  %v3969_v32 = vadd.f32 %v3964_v42, %v6673_v34  ;;  %v3943_v33 = vpop.f32.mrf.mxu2 }
0x22ba   :  { %v3921_v23 = vadd.f32 %v3920_v1, %v3898_v45  ;;  %v3975_v58 = vsel %vm100_vm1, %v3969_v32, 0.0 }
0x22bb   :  { %3976 = vadd.xlane.f32.xlu2 %v3975_v58 }
0x22bc   :  { %v3944_v48 = vadd.f32 %v3943_v33, %v3921_v23 }
0x22be   :  { %v3967_v49 = vadd.f32 %v3966_v16, %v3944_v48 }
0x22c0   :  { %v3970_v30 = vadd.f32 %v3967_v49, %v6697_v47  ;;  %v4032_v47 = vld [vmem:[%s6875_s0 + $0x18] sm:$0xff] }
0x22c1   :  { %4055 = vmatpush.msrb.mxu3 %v4032_v47 }
0x22c2   :  { %v3978_v40 = vsel %vm100_vm1, %v3970_v30, 0.0 }
0x22c3   :  { %3979 = vadd.xlane.f32.xlu2 %v3978_v40  ;;  %4056 = vmatpush.msrb.mxu3 %v4031_v17 }
0x22c5   :  { %4057 = vmatpush.msrb.mxu3 %v4030_v55 }
0x22c7   :  { %4058 = vmatpush.msrb.mxu3 %v4029_v27 }
0x232e   :  { %v3977_v50 = vpop.xlane.xlu2 %3976 }
0x232f   :  { %v3981_v24 = vmul.f32 %v3977_v50, %v5079_v8 }
0x2331   :  { %v3983_v39 = vsub.f32 %v3969_v32, %v3981_v24 }
0x2333   :  { %v3985_v51 = vmul.f32 %v3983_v39, %v3983_v39 }
0x2335   :  { %v3987_v34 = vsel %vm100_vm1, %v3985_v51, 0.0 }
0x2336   :  { %3988 = vadd.xlane.f32.xlu2 %v3987_v34  ;;  %v3980_v52 = vpop.xlane.xlu2 %3979 }
0x2337   :  { %v3982_v44 = vmul.f32 %v3980_v52, %v5079_v8 }
0x2339   :  { %v3984_v53 = vsub.f32 %v3970_v30, %v3982_v44 }
0x233b   :  { %v3986_v46 = vmul.f32 %v3984_v53, %v3984_v53 }
0x233d   :  { %v3990_v54 = vsel %vm100_vm1, %v3986_v46, 0.0 }
0x233e   :  { %3991 = vadd.xlane.f32.xlu2 %v3990_v54 }
0x23a9   :  { %v3989_v43 = vpop.xlane.xlu2 %3988 }
0x23aa   :  { %v3993_v37 = vmul.f32 %v3989_v43, %v5079_v8 }
0x23ac   :  { %v3995_v62 = vadd.f32 1e-05, %v3993_v37 }
0x23ae   :  { %4815 = vrsqrt.f32 %v3995_v62  ;;  %vm4003_vm6 = vweird.f32 %v3995_v62 }
0x23b1   :  { %v3992_v56 = vpop.xlane.xlu2 %3991 }
0x23b2   :  { %v3994_v35 = vmul.f32 %v3992_v56, %v5079_v8  ;;  %v4655_v8 = vld [vmem:[%s6820_s14 + $0x3] ss:$0 sm:$0xff]  ;;  %s6876_s14 = sld [smem:[#allocation5_spill]] }
0x23b4   :  { %v4816_v57 = vpop.eup %4815  ;;  %v3996_v9 = vadd.f32 1e-05, %v3994_v35 }
0x23b5   :  { %v3998_v7 = vmul.f32 %v4816_v57, %v3995_v62  ;;  %vm4004_vm5 = vweird.f32 %v4816_v57 }
0x23b6   :  { %4817 = vrsqrt.f32 %v3996_v9  ;;  %vm4005_vm7 = vmor %vm4003_vm6, %vm4004_vm5  ;;  %vm4013_vm9 = vweird.f32 %v3996_v9 }
0x23b7   :  { %v3999_v4 = vmul.f32 %v4816_v57, %v3998_v7 }
0x23b8   :  { %v4656_v20 = vld [vmem:[%s6876_s14] ss:$0 sm:$0xff] }
0x23b9   :  { %v4000_v10 = vmul.f32 0.5, %v3999_v4 }
0x23bb   :  { %v4001_v63 = vsub.f32 1.5, %v4000_v10 }
0x23bc   :  { %v4818_v60 = vpop.eup %4817 }
0x23bd   :  { %v4002_v28 = vmul.f32 %v4816_v57, %v4001_v63  ;;  %v4008_v19 = vmul.f32 %v4818_v60, %v3996_v9  ;;  %vm4014_vm8 = vweird.f32 %v4818_v60 }
0x23be   :  { %vm4015_vm10 = vmor %vm4013_vm9, %vm4014_vm8 }
0x23bf   :  { %v4006_v0 = vsel %vm4005_vm7, %v4816_v57, %v4002_v28  ;;  %v4009_v38 = vmul.f32 %v4818_v60, %v4008_v19 }
0x23c0   :  { %v4017_v2 = vmul.f32 %v4006_v0, %v3983_v39 }
0x23c1   :  { %v4010_v3 = vmul.f32 0.5, %v4009_v38 }
0x23c2   :  { %v4022_v5 = vmul.f32 %v4654_v14, %v4017_v2 }
0x23c3   :  { %v4011_v29 = vsub.f32 1.5, %v4010_v3 }
0x23c4   :  { %v4027_v26 = vadd.f32 %v4655_v8, %v4022_v5 }
0x23c5   :  { %v4012_v6 = vmul.f32 %v4818_v60, %v4011_v29 }
0x23c6   :  { %4530 = vmatmul.msk.f32.vlgmr.msrb.gmra.mxu3 %vm100_vm1, %v4027_v26 }
0x23c7   :  { %v4016_v11 = vsel %vm4015_vm10, %v4818_v60, %v4012_v6 }
0x23c8   :  { %v4018_v12 = vmul.f32 %v4016_v11, %v3984_v53 }
0x23ca   :  { %v4023_v13 = vmul.f32 %v4654_v14, %v4018_v12 }
0x23cc   :  { %v4028_v15 = vadd.f32 %v4655_v8, %v4023_v13 }
0x23ce   :  { %4531 = vmatmul.msk.f32.gmra.mxu3 %vm100_vm1, %v4028_v15 }
0x2449   :  { %v4060_v59 = vpop.f32.mrf.mxu3 }
0x244a   :  { %v4061_v36 = vadd.f32 %v4656_v20, %v4060_v59 }
0x244c   :  { %4066 = vst [vmem:[%s6877_s22] sm:$0xff] %v4061_v36 }
0x2451   :  { %v4063_v21 = vpop.f32.mrf.mxu3 }
0x2452   :  { %v4064_v22 = vadd.f32 %v4656_v20, %v4063_v21 }
0x2454   :  { %4067 = vst [vmem:[%s6877_s22 + $0x8] sm:$0xff] %v4064_v22 }

</bundles_post_ra>
